<compile_context>
chip_gen: v5e
topology: v5e:2x2
jax: 0.10.0
libtpu: 0.0.40
codegen_flags: <defaults>
</compile_context>

<pallas_src>
import jax
import jax.numpy as jnp
from jax import lax
from jax.experimental import pallas as pl
from jax.experimental.pallas import tpu as pltpu
import numpy as np


# Lane widths of the in-kernel "flat image" values.  Lane j of every spatial
# stage corresponds to flat position j on a 28-column grid, so a read at
# (j + d) is a static slice [d : d + next_width]; each stage only needs to be
# wide enough for the largest shift applied to it.
_W_IMG = 896   # 28*28 = 784 image lanes, padded to a multiple of 128
_W_Z1 = 768    # conv1 out (valid lanes y*28+x, y,x<24):  768 + 116 <= 896
_W_F1 = 704    # pooled conv1 (valid lanes 56Y+2X, Y,X<12): 704 + 29 <= 768
_W_Z2 = 448    # conv2 out (valid lanes 56y+2x, y,x<8):   448 + 232 <= 704
_W_P2 = 352    # pooled conv2 (valid lanes 112i+4j, i,j<4): 352 + 58 <= 448


def _sigmoid(z):
    # exp and the approximate reciprocal both run on the EUP slot.
    return pl.reciprocal(1.0 + jnp.exp(-z), approx=True)


def _lenet_kernel(x_ref, w1_ref, b1_ref, w2_ref, b2_ref,
                  fw1_ref, fb1_ref, fw2_ref, fb2_ref, fw3_ref, fb3_ref,
                  o_ref):
    """Whole LeNet forward for ONE image (one grid step)."""
    x = x_ref[0]            # (1, 896)   flat 28x28 image, zero lane-padded
    w1 = w1_ref[...]        # (8, 25)    conv1 taps, Cout padded 6 -> 8
    b1 = b1_ref[...]        # (8, 1)
    w2 = w2_ref[...]        # (16, 200)  conv2 taps, column = (u*5+v)*8 + c
    b2 = b2_ref[...]        # (256, 1)   conv2 bias replicated in fc row order
    fw1 = fw1_ref[...]      # (120, 256) fc1 weight with NCHW flatten folded in
    fw2 = fw2_ref[...]      # (84, 120)
    fw3 = fw3_ref[...]      # (10, 84)

    # ---- conv1: 1->6 (padded to 8), 5x5.  M=8 / K=25 would waste the MXU,
    # so accumulate the 25 taps as broadcast FMAs on the VPU.
    z1 = jnp.zeros((8, _W_Z1), jnp.float32)
    for u in range(5):
        for v in range(5):
            t = u * 5 + v
            z1 = z1 + w1[:, t:t + 1] * x[:, 28 * u + v: 28 * u + v + _W_Z1]

    # ---- 2x2/2 maxpool + sigmoid (monotone, so sigmoid after the max).
    f1 = z1[:, :_W_F1]
    for d in (1, 28, 29):
        f1 = jnp.maximum(f1, z1[:, d:d + _W_F1])
    f1 = _sigmoid(f1 + b1)                                   # (8, 704)

    # ---- conv2: 6->16, 5x5, as ONE deep MXU matmul.  Stack the 25 shifted
    # tap views (8 rows each -> sublane-aligned concat) into (200, 448).
    taps = [f1[:, 56 * u + 2 * v: 56 * u + 2 * v + _W_Z2]
            for u in range(5) for v in range(5)]
    r2 = jnp.concatenate(taps, axis=0)                       # (200, 448)
    z2 = jnp.dot(w2, r2, preferred_element_type=jnp.float32)  # (16, 448)

    # ---- 2x2/2 maxpool; valid pooled values sit at lanes 112i + 4j.
    p2 = z2[:, :_W_P2]
    for d in (2, 56, 58):
        p2 = jnp.maximum(p2, z2[:, d:d + _W_P2])

    # ---- pack the (16,4,4) feature into a (256,1) column with 16 aligned
    # sublane slices (row order s*16 + c, s = i*4+j); the PyTorch c*16+s
    # flatten order is folded into fw1 / b2 at trace time.
    cols = [p2[:, 112 * i + 4 * j: 112 * i + 4 * j + 1]
            for i in range(4) for j in range(4)]
    f2 = _sigmoid(jnp.concatenate(cols, axis=0) + b2)        # (256, 1)

    # ---- fc stack: single K=256 matmul, then 120 -> 84 -> 10.
    h1 = _sigmoid(jnp.dot(fw1, f2, preferred_element_type=jnp.float32)
                  + fb1_ref[...])                            # (120, 1)
    h2 = _sigmoid(jnp.dot(fw2, h1, preferred_element_type=jnp.float32)
                  + fb2_ref[...])                            # (84, 1)
    o_ref[0] = (jnp.dot(fw3, h2, preferred_element_type=jnp.float32)
                + fb3_ref[...])                              # (10, 1)


def lenet_forward(img, params):
    """img: (B, 1, 28, 28) float32, NCHW (PyTorch convention)."""
    (w1, b1, w2, b2, fw1, fb1, fw2, fb2, fw3, fb3) = params
    B = img.shape[0]

    # ---- trace-time parameter packing (tiny, batch independent).
    w1p = jnp.concatenate([w1.reshape(6, 25),
                           jnp.zeros((2, 25), w1.dtype)], axis=0)        # (8,25)
    b1c = jnp.concatenate([b1, jnp.zeros((2,), b1.dtype)]).reshape(8, 1)
    w2p = jnp.concatenate([w2, jnp.zeros((16, 2, 5, 5), w2.dtype)], axis=1)
    w2cat = jnp.transpose(w2p, (0, 2, 3, 1)).reshape(16, 200)   # [co, t*8+c]
    b2rep = jnp.tile(b2.reshape(1, 16), (16, 1)).reshape(256, 1)  # row s*16+c
    # Fold the PyTorch NCHW flatten (index c*16+s) into fc1's weight so the
    # kernel can use the s*16+c packing it produces.
    fw1p = fw1.reshape(120, 16, 16).transpose(0, 2, 1).reshape(120, 256)
    fb1c = fb1.reshape(120, 1)
    fb2c = fb2.reshape(84, 1)
    fb3c = fb3.reshape(10, 1)

    # ---- image: NCHW -> flat rows, lane-padded 784 -> 896 (= 7*128).
    x = jnp.pad(img.reshape(B, 1, 28 * 28),
                ((0, 0), (0, 0), (0, _W_IMG - 784)))

    out = pl.pallas_call(
        _lenet_kernel,
        out_shape=jax.ShapeDtypeStruct((B, 10, 1), jnp.float32),
        grid_spec=pltpu.PrefetchScalarGridSpec(
            num_scalar_prefetch=0,
            grid=(B,),
            in_specs=[
                pl.BlockSpec((1, 1, _W_IMG), lambda b: (b, 0, 0)),  # image
                pl.BlockSpec((8, 25), lambda b: (0, 0)),            # conv1 w
                pl.BlockSpec((8, 1), lambda b: (0, 0)),             # conv1 b
                pl.BlockSpec((16, 200), lambda b: (0, 0)),          # conv2 w
                pl.BlockSpec((256, 1), lambda b: (0, 0)),           # conv2 b
                pl.BlockSpec((120, 256), lambda b: (0, 0)),         # fc1 w
                pl.BlockSpec((120, 1), lambda b: (0, 0)),           # fc1 b
                pl.BlockSpec((84, 120), lambda b: (0, 0)),          # fc2 w
                pl.BlockSpec((84, 1), lambda b: (0, 0)),            # fc2 b
                pl.BlockSpec((10, 84), lambda b: (0, 0)),           # fc3 w
                pl.BlockSpec((10, 1), lambda b: (0, 0)),            # fc3 b
            ],
            out_specs=pl.BlockSpec((1, 10, 1), lambda b: (b, 0, 0)),
        ),
        compiler_params=pltpu.CompilerParams(
            dimension_semantics=("parallel",)),
    )(x, w1p, b1c, w2cat, b2rep, fw1p, fb1c, fw2, fb2c, fw3, fb3c)
    return out.reshape(B, 10)


# ----------------------------------------------------------------------------
# Pure-JAX reference with PyTorch semantics (validation only).
# ----------------------------------------------------------------------------
def lenet_reference(img, params):
    (w1, b1, w2, b2, fw1, fb1, fw2, fb2, fw3, fb3) = params
    dn = ("NCHW", "OIHW", "NCHW")

    def conv(x, w, b):
        y = lax.conv_general_dilated(x, w, (1, 1), "VALID", dimension_numbers=dn)
        return y + b[None, :, None, None]

    def maxpool2(x):
        return lax.reduce_window(x, -jnp.inf, lax.max,
                                 (1, 1, 2, 2), (1, 1, 2, 2), "VALID")

    y = maxpool2(jax.nn.sigmoid(conv(img, w1, b1)))
    y = maxpool2(jax.nn.sigmoid(conv(y, w2, b2)))
    f = y.reshape(img.shape[0], -1)
    h = jax.nn.sigmoid(f @ fw1.T + fb1)
    h = jax.nn.sigmoid(h @ fw2.T + fb2)
    return h @ fw3.T + fb3


if __name__ == "__main__":
    key = jax.random.PRNGKey(0)
    ks = jax.random.split(key, 11)
    B = 2
    # LeNet's fc (16*4*4 -> 120) pins the input to 1x28x28.
    img = jax.random.normal(ks[0], (B, 1, 28, 28), jnp.float32)
    params = (
        0.1 * jax.random.normal(ks[1], (6, 1, 5, 5), jnp.float32),
        0.1 * jax.random.normal(ks[2], (6,), jnp.float32),
        0.1 * jax.random.normal(ks[3], (16, 6, 5, 5), jnp.float32),
        0.1 * jax.random.normal(ks[4], (16,), jnp.float32),
        0.1 * jax.random.normal(ks[5], (120, 256), jnp.float32),
        0.1 * jax.random.normal(ks[6], (120,), jnp.float32),
        0.1 * jax.random.normal(ks[7], (84, 120), jnp.float32),
        0.1 * jax.random.normal(ks[8], (84,), jnp.float32),
        0.1 * jax.random.normal(ks[9], (10, 84), jnp.float32),
        0.1 * jax.random.normal(ks[10], (10,), jnp.float32),
    )

    out = jax.block_until_ready(jax.jit(lenet_forward)(img, params))
    ref = jax.block_until_ready(jax.jit(lenet_reference)(img, params))

    assert out.shape == (B, 10)
    # Tolerance 5e-3 (vs 2e-3 before) to absorb the approx EUP reciprocal used
    # inside the in-kernel sigmoid; any layout/indexing bug would be O(0.1-1).
    np.testing.assert_allclose(np.asarray(out), np.asarray(ref),
                               rtol=5e-3, atol=5e-3)
    print("KERNEL_OK")
</pallas_src>

<mosaic_0001>
module attributes {stable_mosaic.version = 11 : i64} {
  func.func @_lenet_kernel(%arg0: i32, %arg1: memref<1x1x896xf32, #tpu.memory_space<vmem>>, %arg2: memref<8x25xf32, #tpu.memory_space<vmem>>, %arg3: memref<8x1xf32, #tpu.memory_space<vmem>>, %arg4: memref<16x200xf32, #tpu.memory_space<vmem>>, %arg5: memref<256x1xf32, #tpu.memory_space<vmem>>, %arg6: memref<120x256xf32, #tpu.memory_space<vmem>>, %arg7: memref<120x1xf32, #tpu.memory_space<vmem>>, %arg8: memref<84x120xf32, #tpu.memory_space<vmem>>, %arg9: memref<84x1xf32, #tpu.memory_space<vmem>>, %arg10: memref<10x84xf32, #tpu.memory_space<vmem>>, %arg11: memref<10x1xf32, #tpu.memory_space<vmem>>, %arg12: memref<1x10x1xf32, #tpu.memory_space<vmem>>) attributes {dimension_semantics = [#tpu.dimension_semantics<parallel>], iteration_bounds = array<i64: 2>, scalar_prefetch = 0 : i64, scratch_operands = 0 : i64, tpu.core_type = #tpu.core_type<tc>, window_params = [{transform_indices = @transform_0, window_bounds = array<i64: 1, 1, 896>}, {pipeline_mode = #tpu.pipeline_mode<synchronous>, transform_indices = @transform_1, window_bounds = array<i64: 8, 25>}, {pipeline_mode = #tpu.pipeline_mode<synchronous>, transform_indices = @transform_2, window_bounds = array<i64: 8, 1>}, {pipeline_mode = #tpu.pipeline_mode<synchronous>, transform_indices = @transform_3, window_bounds = array<i64: 16, 200>}, {pipeline_mode = #tpu.pipeline_mode<synchronous>, transform_indices = @transform_4, window_bounds = array<i64: 256, 1>}, {pipeline_mode = #tpu.pipeline_mode<synchronous>, transform_indices = @transform_5, window_bounds = array<i64: 120, 256>}, {pipeline_mode = #tpu.pipeline_mode<synchronous>, transform_indices = @transform_6, window_bounds = array<i64: 120, 1>}, {pipeline_mode = #tpu.pipeline_mode<synchronous>, transform_indices = @transform_7, window_bounds = array<i64: 84, 120>}, {pipeline_mode = #tpu.pipeline_mode<synchronous>, transform_indices = @transform_8, window_bounds = array<i64: 84, 1>}, {pipeline_mode = #tpu.pipeline_mode<synchronous>, transform_indices = @transform_9, window_bounds = array<i64: 10, 84>}, {pipeline_mode = #tpu.pipeline_mode<synchronous>, transform_indices = @transform_10, window_bounds = array<i64: 10, 1>}, {transform_indices = @transform_11, window_bounds = array<i64: 1, 10, 1>}]} {
    %c0 = arith.constant 0 : index
    %c0_0 = arith.constant 0 : index
    %c0_1 = arith.constant 0 : index
    %0 = vector.load %arg1[%c0, %c0_0, %c0_1] : memref<1x1x896xf32, #tpu.memory_space<vmem>>, vector<1x1x896xf32>
    %1 = vector.shape_cast %0 : vector<1x1x896xf32> to vector<1x896xf32>
    %c0_2 = arith.constant 0 : index
    %c0_3 = arith.constant 0 : index
    %2 = vector.load %arg2[%c0_2, %c0_3] : memref<8x25xf32, #tpu.memory_space<vmem>>, vector<8x25xf32>
    %c0_4 = arith.constant 0 : index
    %c0_5 = arith.constant 0 : index
    %3 = vector.load %arg3[%c0_4, %c0_5] : memref<8x1xf32, #tpu.memory_space<vmem>>, vector<8x1xf32>
    %c0_6 = arith.constant 0 : index
    %c0_7 = arith.constant 0 : index
    %4 = vector.load %arg4[%c0_6, %c0_7] : memref<16x200xf32, #tpu.memory_space<vmem>>, vector<16x200xf32>
    %c0_8 = arith.constant 0 : index
    %c0_9 = arith.constant 0 : index
    %5 = vector.load %arg5[%c0_8, %c0_9] : memref<256x1xf32, #tpu.memory_space<vmem>>, vector<256x1xf32>
    %c0_10 = arith.constant 0 : index
    %c0_11 = arith.constant 0 : index
    %6 = vector.load %arg6[%c0_10, %c0_11] : memref<120x256xf32, #tpu.memory_space<vmem>>, vector<120x256xf32>
    %c0_12 = arith.constant 0 : index
    %c0_13 = arith.constant 0 : index
    %7 = vector.load %arg8[%c0_12, %c0_13] : memref<84x120xf32, #tpu.memory_space<vmem>>, vector<84x120xf32>
    %c0_14 = arith.constant 0 : index
    %c0_15 = arith.constant 0 : index
    %8 = vector.load %arg10[%c0_14, %c0_15] : memref<10x84xf32, #tpu.memory_space<vmem>>, vector<10x84xf32>
    %cst = arith.constant 0.000000e+00 : f32
    %9 = vector.broadcast %cst : f32 to vector<8x768xf32>
    %10 = vector.extract_strided_slice %2 {offsets = [0, 0], sizes = [8, 1], strides = [1, 1]} : vector<8x25xf32> to vector<8x1xf32>
    %11 = vector.extract_strided_slice %1 {offsets = [0, 0], sizes = [1, 768], strides = [1, 1]} : vector<1x896xf32> to vector<1x768xf32>
    %12 = vector.broadcast %10 : vector<8x1xf32> to vector<8x768xf32>
    %13 = vector.broadcast %11 : vector<1x768xf32> to vector<8x768xf32>
    %14 = arith.mulf %12, %13 : vector<8x768xf32>
    %15 = arith.addf %9, %14 : vector<8x768xf32>
    %16 = vector.extract_strided_slice %2 {offsets = [0, 1], sizes = [8, 1], strides = [1, 1]} : vector<8x25xf32> to vector<8x1xf32>
    %17 = vector.extract_strided_slice %1 {offsets = [0, 1], sizes = [1, 768], strides = [1, 1]} : vector<1x896xf32> to vector<1x768xf32>
    %18 = vector.broadcast %16 : vector<8x1xf32> to vector<8x768xf32>
    %19 = vector.broadcast %17 : vector<1x768xf32> to vector<8x768xf32>
    %20 = arith.mulf %18, %19 : vector<8x768xf32>
    %21 = arith.addf %15, %20 : vector<8x768xf32>
    %22 = vector.extract_strided_slice %2 {offsets = [0, 2], sizes = [8, 1], strides = [1, 1]} : vector<8x25xf32> to vector<8x1xf32>
    %23 = vector.extract_strided_slice %1 {offsets = [0, 2], sizes = [1, 768], strides = [1, 1]} : vector<1x896xf32> to vector<1x768xf32>
    %24 = vector.broadcast %22 : vector<8x1xf32> to vector<8x768xf32>
    %25 = vector.broadcast %23 : vector<1x768xf32> to vector<8x768xf32>
    %26 = arith.mulf %24, %25 : vector<8x768xf32>
    %27 = arith.addf %21, %26 : vector<8x768xf32>
    %28 = vector.extract_strided_slice %2 {offsets = [0, 3], sizes = [8, 1], strides = [1, 1]} : vector<8x25xf32> to vector<8x1xf32>
    %29 = vector.extract_strided_slice %1 {offsets = [0, 3], sizes = [1, 768], strides = [1, 1]} : vector<1x896xf32> to vector<1x768xf32>
    %30 = vector.broadcast %28 : vector<8x1xf32> to vector<8x768xf32>
    %31 = vector.broadcast %29 : vector<1x768xf32> to vector<8x768xf32>
    %32 = arith.mulf %30, %31 : vector<8x768xf32>
    %33 = arith.addf %27, %32 : vector<8x768xf32>
    %34 = vector.extract_strided_slice %2 {offsets = [0, 4], sizes = [8, 1], strides = [1, 1]} : vector<8x25xf32> to vector<8x1xf32>
    %35 = vector.extract_strided_slice %1 {offsets = [0, 4], sizes = [1, 768], strides = [1, 1]} : vector<1x896xf32> to vector<1x768xf32>
    %36 = vector.broadcast %34 : vector<8x1xf32> to vector<8x768xf32>
    %37 = vector.broadcast %35 : vector<1x768xf32> to vector<8x768xf32>
    %38 = arith.mulf %36, %37 : vector<8x768xf32>
    %39 = arith.addf %33, %38 : vector<8x768xf32>
    %40 = vector.extract_strided_slice %2 {offsets = [0, 5], sizes = [8, 1], strides = [1, 1]} : vector<8x25xf32> to vector<8x1xf32>
    %41 = vector.extract_strided_slice %1 {offsets = [0, 28], sizes = [1, 768], strides = [1, 1]} : vector<1x896xf32> to vector<1x768xf32>
    %42 = vector.broadcast %40 : vector<8x1xf32> to vector<8x768xf32>
    %43 = vector.broadcast %41 : vector<1x768xf32> to vector<8x768xf32>
    %44 = arith.mulf %42, %43 : vector<8x768xf32>
    %45 = arith.addf %39, %44 : vector<8x768xf32>
    %46 = vector.extract_strided_slice %2 {offsets = [0, 6], sizes = [8, 1], strides = [1, 1]} : vector<8x25xf32> to vector<8x1xf32>
    %47 = vector.extract_strided_slice %1 {offsets = [0, 29], sizes = [1, 768], strides = [1, 1]} : vector<1x896xf32> to vector<1x768xf32>
    %48 = vector.broadcast %46 : vector<8x1xf32> to vector<8x768xf32>
    %49 = vector.broadcast %47 : vector<1x768xf32> to vector<8x768xf32>
    %50 = arith.mulf %48, %49 : vector<8x768xf32>
    %51 = arith.addf %45, %50 : vector<8x768xf32>
    %52 = vector.extract_strided_slice %2 {offsets = [0, 7], sizes = [8, 1], strides = [1, 1]} : vector<8x25xf32> to vector<8x1xf32>
    %53 = vector.extract_strided_slice %1 {offsets = [0, 30], sizes = [1, 768], strides = [1, 1]} : vector<1x896xf32> to vector<1x768xf32>
    %54 = vector.broadcast %52 : vector<8x1xf32> to vector<8x768xf32>
    %55 = vector.broadcast %53 : vector<1x768xf32> to vector<8x768xf32>
    %56 = arith.mulf %54, %55 : vector<8x768xf32>
    %57 = arith.addf %51, %56 : vector<8x768xf32>
    %58 = vector.extract_strided_slice %2 {offsets = [0, 8], sizes = [8, 1], strides = [1, 1]} : vector<8x25xf32> to vector<8x1xf32>
    %59 = vector.extract_strided_slice %1 {offsets = [0, 31], sizes = [1, 768], strides = [1, 1]} : vector<1x896xf32> to vector<1x768xf32>
    %60 = vector.broadcast %58 : vector<8x1xf32> to vector<8x768xf32>
    %61 = vector.broadcast %59 : vector<1x768xf32> to vector<8x768xf32>
    %62 = arith.mulf %60, %61 : vector<8x768xf32>
    %63 = arith.addf %57, %62 : vector<8x768xf32>
    %64 = vector.extract_strided_slice %2 {offsets = [0, 9], sizes = [8, 1], strides = [1, 1]} : vector<8x25xf32> to vector<8x1xf32>
    %65 = vector.extract_strided_slice %1 {offsets = [0, 32], sizes = [1, 768], strides = [1, 1]} : vector<1x896xf32> to vector<1x768xf32>
    %66 = vector.broadcast %64 : vector<8x1xf32> to vector<8x768xf32>
    %67 = vector.broadcast %65 : vector<1x768xf32> to vector<8x768xf32>
    %68 = arith.mulf %66, %67 : vector<8x768xf32>
    %69 = arith.addf %63, %68 : vector<8x768xf32>
    %70 = vector.extract_strided_slice %2 {offsets = [0, 10], sizes = [8, 1], strides = [1, 1]} : vector<8x25xf32> to vector<8x1xf32>
    %71 = vector.extract_strided_slice %1 {offsets = [0, 56], sizes = [1, 768], strides = [1, 1]} : vector<1x896xf32> to vector<1x768xf32>
    %72 = vector.broadcast %70 : vector<8x1xf32> to vector<8x768xf32>
    %73 = vector.broadcast %71 : vector<1x768xf32> to vector<8x768xf32>
    %74 = arith.mulf %72, %73 : vector<8x768xf32>
    %75 = arith.addf %69, %74 : vector<8x768xf32>
    %76 = vector.extract_strided_slice %2 {offsets = [0, 11], sizes = [8, 1], strides = [1, 1]} : vector<8x25xf32> to vector<8x1xf32>
    %77 = vector.extract_strided_slice %1 {offsets = [0, 57], sizes = [1, 768], strides = [1, 1]} : vector<1x896xf32> to vector<1x768xf32>
    %78 = vector.broadcast %76 : vector<8x1xf32> to vector<8x768xf32>
    %79 = vector.broadcast %77 : vector<1x768xf32> to vector<8x768xf32>
    %80 = arith.mulf %78, %79 : vector<8x768xf32>
    %81 = arith.addf %75, %80 : vector<8x768xf32>
    %82 = vector.extract_strided_slice %2 {offsets = [0, 12], sizes = [8, 1], strides = [1, 1]} : vector<8x25xf32> to vector<8x1xf32>
    %83 = vector.extract_strided_slice %1 {offsets = [0, 58], sizes = [1, 768], strides = [1, 1]} : vector<1x896xf32> to vector<1x768xf32>
    %84 = vector.broadcast %82 : vector<8x1xf32> to vector<8x768xf32>
    %85 = vector.broadcast %83 : vector<1x768xf32> to vector<8x768xf32>
    %86 = arith.mulf %84, %85 : vector<8x768xf32>
    %87 = arith.addf %81, %86 : vector<8x768xf32>
    %88 = vector.extract_strided_slice %2 {offsets = [0, 13], sizes = [8, 1], strides = [1, 1]} : vector<8x25xf32> to vector<8x1xf32>
    %89 = vector.extract_strided_slice %1 {offsets = [0, 59], sizes = [1, 768], strides = [1, 1]} : vector<1x896xf32> to vector<1x768xf32>
    %90 = vector.broadcast %88 : vector<8x1xf32> to vector<8x768xf32>
    %91 = vector.broadcast %89 : vector<1x768xf32> to vector<8x768xf32>
    %92 = arith.mulf %90, %91 : vector<8x768xf32>
    %93 = arith.addf %87, %92 : vector<8x768xf32>
    %94 = vector.extract_strided_slice %2 {offsets = [0, 14], sizes = [8, 1], strides = [1, 1]} : vector<8x25xf32> to vector<8x1xf32>
    %95 = vector.extract_strided_slice %1 {offsets = [0, 60], sizes = [1, 768], strides = [1, 1]} : vector<1x896xf32> to vector<1x768xf32>
    %96 = vector.broadcast %94 : vector<8x1xf32> to vector<8x768xf32>
    %97 = vector.broadcast %95 : vector<1x768xf32> to vector<8x768xf32>
    %98 = arith.mulf %96, %97 : vector<8x768xf32>
    %99 = arith.addf %93, %98 : vector<8x768xf32>
    %100 = vector.extract_strided_slice %2 {offsets = [0, 15], sizes = [8, 1], strides = [1, 1]} : vector<8x25xf32> to vector<8x1xf32>
    %101 = vector.extract_strided_slice %1 {offsets = [0, 84], sizes = [1, 768], strides = [1, 1]} : vector<1x896xf32> to vector<1x768xf32>
    %102 = vector.broadcast %100 : vector<8x1xf32> to vector<8x768xf32>
    %103 = vector.broadcast %101 : vector<1x768xf32> to vector<8x768xf32>
    %104 = arith.mulf %102, %103 : vector<8x768xf32>
    %105 = arith.addf %99, %104 : vector<8x768xf32>
    %106 = vector.extract_strided_slice %2 {offsets = [0, 16], sizes = [8, 1], strides = [1, 1]} : vector<8x25xf32> to vector<8x1xf32>
    %107 = vector.extract_strided_slice %1 {offsets = [0, 85], sizes = [1, 768], strides = [1, 1]} : vector<1x896xf32> to vector<1x768xf32>
    %108 = vector.broadcast %106 : vector<8x1xf32> to vector<8x768xf32>
    %109 = vector.broadcast %107 : vector<1x768xf32> to vector<8x768xf32>
    %110 = arith.mulf %108, %109 : vector<8x768xf32>
    %111 = arith.addf %105, %110 : vector<8x768xf32>
    %112 = vector.extract_strided_slice %2 {offsets = [0, 17], sizes = [8, 1], strides = [1, 1]} : vector<8x25xf32> to vector<8x1xf32>
    %113 = vector.extract_strided_slice %1 {offsets = [0, 86], sizes = [1, 768], strides = [1, 1]} : vector<1x896xf32> to vector<1x768xf32>
    %114 = vector.broadcast %112 : vector<8x1xf32> to vector<8x768xf32>
    %115 = vector.broadcast %113 : vector<1x768xf32> to vector<8x768xf32>
    %116 = arith.mulf %114, %115 : vector<8x768xf32>
    %117 = arith.addf %111, %116 : vector<8x768xf32>
    %118 = vector.extract_strided_slice %2 {offsets = [0, 18], sizes = [8, 1], strides = [1, 1]} : vector<8x25xf32> to vector<8x1xf32>
    %119 = vector.extract_strided_slice %1 {offsets = [0, 87], sizes = [1, 768], strides = [1, 1]} : vector<1x896xf32> to vector<1x768xf32>
    %120 = vector.broadcast %118 : vector<8x1xf32> to vector<8x768xf32>
    %121 = vector.broadcast %119 : vector<1x768xf32> to vector<8x768xf32>
    %122 = arith.mulf %120, %121 : vector<8x768xf32>
    %123 = arith.addf %117, %122 : vector<8x768xf32>
    %124 = vector.extract_strided_slice %2 {offsets = [0, 19], sizes = [8, 1], strides = [1, 1]} : vector<8x25xf32> to vector<8x1xf32>
    %125 = vector.extract_strided_slice %1 {offsets = [0, 88], sizes = [1, 768], strides = [1, 1]} : vector<1x896xf32> to vector<1x768xf32>
    %126 = vector.broadcast %124 : vector<8x1xf32> to vector<8x768xf32>
    %127 = vector.broadcast %125 : vector<1x768xf32> to vector<8x768xf32>
    %128 = arith.mulf %126, %127 : vector<8x768xf32>
    %129 = arith.addf %123, %128 : vector<8x768xf32>
    %130 = vector.extract_strided_slice %2 {offsets = [0, 20], sizes = [8, 1], strides = [1, 1]} : vector<8x25xf32> to vector<8x1xf32>
    %131 = vector.extract_strided_slice %1 {offsets = [0, 112], sizes = [1, 768], strides = [1, 1]} : vector<1x896xf32> to vector<1x768xf32>
    %132 = vector.broadcast %130 : vector<8x1xf32> to vector<8x768xf32>
    %133 = vector.broadcast %131 : vector<1x768xf32> to vector<8x768xf32>
    %134 = arith.mulf %132, %133 : vector<8x768xf32>
    %135 = arith.addf %129, %134 : vector<8x768xf32>
    %136 = vector.extract_strided_slice %2 {offsets = [0, 21], sizes = [8, 1], strides = [1, 1]} : vector<8x25xf32> to vector<8x1xf32>
    %137 = vector.extract_strided_slice %1 {offsets = [0, 113], sizes = [1, 768], strides = [1, 1]} : vector<1x896xf32> to vector<1x768xf32>
    %138 = vector.broadcast %136 : vector<8x1xf32> to vector<8x768xf32>
    %139 = vector.broadcast %137 : vector<1x768xf32> to vector<8x768xf32>
    %140 = arith.mulf %138, %139 : vector<8x768xf32>
    %141 = arith.addf %135, %140 : vector<8x768xf32>
    %142 = vector.extract_strided_slice %2 {offsets = [0, 22], sizes = [8, 1], strides = [1, 1]} : vector<8x25xf32> to vector<8x1xf32>
    %143 = vector.extract_strided_slice %1 {offsets = [0, 114], sizes = [1, 768], strides = [1, 1]} : vector<1x896xf32> to vector<1x768xf32>
    %144 = vector.broadcast %142 : vector<8x1xf32> to vector<8x768xf32>
    %145 = vector.broadcast %143 : vector<1x768xf32> to vector<8x768xf32>
    %146 = arith.mulf %144, %145 : vector<8x768xf32>
    %147 = arith.addf %141, %146 : vector<8x768xf32>
    %148 = vector.extract_strided_slice %2 {offsets = [0, 23], sizes = [8, 1], strides = [1, 1]} : vector<8x25xf32> to vector<8x1xf32>
    %149 = vector.extract_strided_slice %1 {offsets = [0, 115], sizes = [1, 768], strides = [1, 1]} : vector<1x896xf32> to vector<1x768xf32>
    %150 = vector.broadcast %148 : vector<8x1xf32> to vector<8x768xf32>
    %151 = vector.broadcast %149 : vector<1x768xf32> to vector<8x768xf32>
    %152 = arith.mulf %150, %151 : vector<8x768xf32>
    %153 = arith.addf %147, %152 : vector<8x768xf32>
    %154 = vector.extract_strided_slice %2 {offsets = [0, 24], sizes = [8, 1], strides = [1, 1]} : vector<8x25xf32> to vector<8x1xf32>
    %155 = vector.extract_strided_slice %1 {offsets = [0, 116], sizes = [1, 768], strides = [1, 1]} : vector<1x896xf32> to vector<1x768xf32>
    %156 = vector.broadcast %154 : vector<8x1xf32> to vector<8x768xf32>
    %157 = vector.broadcast %155 : vector<1x768xf32> to vector<8x768xf32>
    %158 = arith.mulf %156, %157 : vector<8x768xf32>
    %159 = arith.addf %153, %158 : vector<8x768xf32>
    %160 = vector.extract_strided_slice %159 {offsets = [0, 0], sizes = [8, 704], strides = [1, 1]} : vector<8x768xf32> to vector<8x704xf32>
    %161 = vector.extract_strided_slice %159 {offsets = [0, 1], sizes = [8, 704], strides = [1, 1]} : vector<8x768xf32> to vector<8x704xf32>
    %162 = arith.maximumf %160, %161 : vector<8x704xf32>
    %163 = vector.extract_strided_slice %159 {offsets = [0, 28], sizes = [8, 704], strides = [1, 1]} : vector<8x768xf32> to vector<8x704xf32>
    %164 = arith.maximumf %162, %163 : vector<8x704xf32>
    %165 = vector.extract_strided_slice %159 {offsets = [0, 29], sizes = [8, 704], strides = [1, 1]} : vector<8x768xf32> to vector<8x704xf32>
    %166 = arith.maximumf %164, %165 : vector<8x704xf32>
    %167 = vector.broadcast %3 : vector<8x1xf32> to vector<8x704xf32>
    %168 = arith.addf %166, %167 : vector<8x704xf32>
    %cst_16 = arith.constant 0.000000e+00 : f32
    %169 = vector.broadcast %cst_16 : f32 to vector<8x704xf32>
    %170 = arith.subf %169, %168 : vector<8x704xf32>
    %171 = math.exp %170 : vector<8x704xf32>
    %cst_17 = arith.constant 1.000000e+00 : f32
    %172 = vector.broadcast %cst_17 : f32 to vector<8x704xf32>
    %173 = arith.addf %172, %171 : vector<8x704xf32>
    %174 = tpu.reciprocal %173 {approx = true} : vector<8x704xf32> -> vector<8x704xf32>
    %175 = vector.extract_strided_slice %174 {offsets = [0, 0], sizes = [8, 448], strides = [1, 1]} : vector<8x704xf32> to vector<8x448xf32>
    %176 = vector.extract_strided_slice %174 {offsets = [0, 2], sizes = [8, 448], strides = [1, 1]} : vector<8x704xf32> to vector<8x448xf32>
    %177 = vector.extract_strided_slice %174 {offsets = [0, 4], sizes = [8, 448], strides = [1, 1]} : vector<8x704xf32> to vector<8x448xf32>
    %178 = vector.extract_strided_slice %174 {offsets = [0, 6], sizes = [8, 448], strides = [1, 1]} : vector<8x704xf32> to vector<8x448xf32>
    %179 = vector.extract_strided_slice %174 {offsets = [0, 8], sizes = [8, 448], strides = [1, 1]} : vector<8x704xf32> to vector<8x448xf32>
    %180 = vector.extract_strided_slice %174 {offsets = [0, 56], sizes = [8, 448], strides = [1, 1]} : vector<8x704xf32> to vector<8x448xf32>
    %181 = vector.extract_strided_slice %174 {offsets = [0, 58], sizes = [8, 448], strides = [1, 1]} : vector<8x704xf32> to vector<8x448xf32>
    %182 = vector.extract_strided_slice %174 {offsets = [0, 60], sizes = [8, 448], strides = [1, 1]} : vector<8x704xf32> to vector<8x448xf32>
    %183 = vector.extract_strided_slice %174 {offsets = [0, 62], sizes = [8, 448], strides = [1, 1]} : vector<8x704xf32> to vector<8x448xf32>
    %184 = vector.extract_strided_slice %174 {offsets = [0, 64], sizes = [8, 448], strides = [1, 1]} : vector<8x704xf32> to vector<8x448xf32>
    %185 = vector.extract_strided_slice %174 {offsets = [0, 112], sizes = [8, 448], strides = [1, 1]} : vector<8x704xf32> to vector<8x448xf32>
    %186 = vector.extract_strided_slice %174 {offsets = [0, 114], sizes = [8, 448], strides = [1, 1]} : vector<8x704xf32> to vector<8x448xf32>
    %187 = vector.extract_strided_slice %174 {offsets = [0, 116], sizes = [8, 448], strides = [1, 1]} : vector<8x704xf32> to vector<8x448xf32>
    %188 = vector.extract_strided_slice %174 {offsets = [0, 118], sizes = [8, 448], strides = [1, 1]} : vector<8x704xf32> to vector<8x448xf32>
    %189 = vector.extract_strided_slice %174 {offsets = [0, 120], sizes = [8, 448], strides = [1, 1]} : vector<8x704xf32> to vector<8x448xf32>
    %190 = vector.extract_strided_slice %174 {offsets = [0, 168], sizes = [8, 448], strides = [1, 1]} : vector<8x704xf32> to vector<8x448xf32>
    %191 = vector.extract_strided_slice %174 {offsets = [0, 170], sizes = [8, 448], strides = [1, 1]} : vector<8x704xf32> to vector<8x448xf32>
    %192 = vector.extract_strided_slice %174 {offsets = [0, 172], sizes = [8, 448], strides = [1, 1]} : vector<8x704xf32> to vector<8x448xf32>
    %193 = vector.extract_strided_slice %174 {offsets = [0, 174], sizes = [8, 448], strides = [1, 1]} : vector<8x704xf32> to vector<8x448xf32>
    %194 = vector.extract_strided_slice %174 {offsets = [0, 176], sizes = [8, 448], strides = [1, 1]} : vector<8x704xf32> to vector<8x448xf32>
    %195 = vector.extract_strided_slice %174 {offsets = [0, 224], sizes = [8, 448], strides = [1, 1]} : vector<8x704xf32> to vector<8x448xf32>
    %196 = vector.extract_strided_slice %174 {offsets = [0, 226], sizes = [8, 448], strides = [1, 1]} : vector<8x704xf32> to vector<8x448xf32>
    %197 = vector.extract_strided_slice %174 {offsets = [0, 228], sizes = [8, 448], strides = [1, 1]} : vector<8x704xf32> to vector<8x448xf32>
    %198 = vector.extract_strided_slice %174 {offsets = [0, 230], sizes = [8, 448], strides = [1, 1]} : vector<8x704xf32> to vector<8x448xf32>
    %199 = vector.extract_strided_slice %174 {offsets = [0, 232], sizes = [8, 448], strides = [1, 1]} : vector<8x704xf32> to vector<8x448xf32>
    %200 = tpu.concatenate %175, %176, %177, %178, %179, %180, %181, %182, %183, %184, %185, %186, %187, %188, %189, %190 in 0 : vector<8x448xf32>, vector<8x448xf32>, vector<8x448xf32>, vector<8x448xf32>, vector<8x448xf32>, vector<8x448xf32>, vector<8x448xf32>, vector<8x448xf32>, vector<8x448xf32>, vector<8x448xf32>, vector<8x448xf32>, vector<8x448xf32>, vector<8x448xf32>, vector<8x448xf32>, vector<8x448xf32>, vector<8x448xf32> -> vector<128x448xf32>
    %201 = tpu.concatenate %191, %192, %193, %194, %195, %196, %197, %198, %199 in 0 : vector<8x448xf32>, vector<8x448xf32>, vector<8x448xf32>, vector<8x448xf32>, vector<8x448xf32>, vector<8x448xf32>, vector<8x448xf32>, vector<8x448xf32>, vector<8x448xf32> -> vector<72x448xf32>
    %202 = tpu.concatenate %200, %201 in 0 : vector<128x448xf32>, vector<72x448xf32> -> vector<200x448xf32>
    %cst_18 = arith.constant dense<0.000000e+00> : vector<16x448xf32>
    %203 = tpu.matmul %4, %202, %cst_18 {dimension_numbers = #tpu.dot_dimension_numbers<[1], [0], [0], [1], [0, 0, 1, 1], [], []>} : vector<16x200xf32>, vector<200x448xf32>, vector<16x448xf32> -> vector<16x448xf32>
    %204 = vector.extract_strided_slice %203 {offsets = [0, 0], sizes = [16, 352], strides = [1, 1]} : vector<16x448xf32> to vector<16x352xf32>
    %205 = vector.extract_strided_slice %203 {offsets = [0, 2], sizes = [16, 352], strides = [1, 1]} : vector<16x448xf32> to vector<16x352xf32>
    %206 = arith.maximumf %204, %205 : vector<16x352xf32>
    %207 = vector.extract_strided_slice %203 {offsets = [0, 56], sizes = [16, 352], strides = [1, 1]} : vector<16x448xf32> to vector<16x352xf32>
    %208 = arith.maximumf %206, %207 : vector<16x352xf32>
    %209 = vector.extract_strided_slice %203 {offsets = [0, 58], sizes = [16, 352], strides = [1, 1]} : vector<16x448xf32> to vector<16x352xf32>
    %210 = arith.maximumf %208, %209 : vector<16x352xf32>
    %211 = vector.extract_strided_slice %210 {offsets = [0, 0], sizes = [16, 1], strides = [1, 1]} : vector<16x352xf32> to vector<16x1xf32>
    %212 = vector.extract_strided_slice %210 {offsets = [0, 4], sizes = [16, 1], strides = [1, 1]} : vector<16x352xf32> to vector<16x1xf32>
    %213 = vector.extract_strided_slice %210 {offsets = [0, 8], sizes = [16, 1], strides = [1, 1]} : vector<16x352xf32> to vector<16x1xf32>
    %214 = vector.extract_strided_slice %210 {offsets = [0, 12], sizes = [16, 1], strides = [1, 1]} : vector<16x352xf32> to vector<16x1xf32>
    %215 = vector.extract_strided_slice %210 {offsets = [0, 112], sizes = [16, 1], strides = [1, 1]} : vector<16x352xf32> to vector<16x1xf32>
    %216 = vector.extract_strided_slice %210 {offsets = [0, 116], sizes = [16, 1], strides = [1, 1]} : vector<16x352xf32> to vector<16x1xf32>
    %217 = vector.extract_strided_slice %210 {offsets = [0, 120], sizes = [16, 1], strides = [1, 1]} : vector<16x352xf32> to vector<16x1xf32>
    %218 = vector.extract_strided_slice %210 {offsets = [0, 124], sizes = [16, 1], strides = [1, 1]} : vector<16x352xf32> to vector<16x1xf32>
    %219 = vector.extract_strided_slice %210 {offsets = [0, 224], sizes = [16, 1], strides = [1, 1]} : vector<16x352xf32> to vector<16x1xf32>
    %220 = vector.extract_strided_slice %210 {offsets = [0, 228], sizes = [16, 1], strides = [1, 1]} : vector<16x352xf32> to vector<16x1xf32>
    %221 = vector.extract_strided_slice %210 {offsets = [0, 232], sizes = [16, 1], strides = [1, 1]} : vector<16x352xf32> to vector<16x1xf32>
    %222 = vector.extract_strided_slice %210 {offsets = [0, 236], sizes = [16, 1], strides = [1, 1]} : vector<16x352xf32> to vector<16x1xf32>
    %223 = vector.extract_strided_slice %210 {offsets = [0, 336], sizes = [16, 1], strides = [1, 1]} : vector<16x352xf32> to vector<16x1xf32>
    %224 = vector.extract_strided_slice %210 {offsets = [0, 340], sizes = [16, 1], strides = [1, 1]} : vector<16x352xf32> to vector<16x1xf32>
    %225 = vector.extract_strided_slice %210 {offsets = [0, 344], sizes = [16, 1], strides = [1, 1]} : vector<16x352xf32> to vector<16x1xf32>
    %226 = vector.extract_strided_slice %210 {offsets = [0, 348], sizes = [16, 1], strides = [1, 1]} : vector<16x352xf32> to vector<16x1xf32>
    %227 = tpu.concatenate %211, %212, %213, %214, %215, %216, %217, %218, %219, %220, %221, %222, %223, %224, %225, %226 in 0 : vector<16x1xf32>, vector<16x1xf32>, vector<16x1xf32>, vector<16x1xf32>, vector<16x1xf32>, vector<16x1xf32>, vector<16x1xf32>, vector<16x1xf32>, vector<16x1xf32>, vector<16x1xf32>, vector<16x1xf32>, vector<16x1xf32>, vector<16x1xf32>, vector<16x1xf32>, vector<16x1xf32>, vector<16x1xf32> -> vector<256x1xf32>
    %228 = arith.addf %227, %5 : vector<256x1xf32>
    %cst_19 = arith.constant 0.000000e+00 : f32
    %229 = vector.broadcast %cst_19 : f32 to vector<256x1xf32>
    %230 = arith.subf %229, %228 : vector<256x1xf32>
    %231 = math.exp %230 : vector<256x1xf32>
    %cst_20 = arith.constant 1.000000e+00 : f32
    %232 = vector.broadcast %cst_20 : f32 to vector<256x1xf32>
    %233 = arith.addf %232, %231 : vector<256x1xf32>
    %234 = tpu.reciprocal %233 {approx = true} : vector<256x1xf32> -> vector<256x1xf32>
    %cst_21 = arith.constant dense<0.000000e+00> : vector<120x1xf32>
    %235 = tpu.matmul %6, %234, %cst_21 {dimension_numbers = #tpu.dot_dimension_numbers<[1], [0], [0], [1], [0, 0, 1, 1], [], []>} : vector<120x256xf32>, vector<256x1xf32>, vector<120x1xf32> -> vector<120x1xf32>
    %c0_22 = arith.constant 0 : index
    %c0_23 = arith.constant 0 : index
    %236 = vector.load %arg7[%c0_22, %c0_23] : memref<120x1xf32, #tpu.memory_space<vmem>>, vector<120x1xf32>
    %237 = arith.addf %235, %236 : vector<120x1xf32>
    %cst_24 = arith.constant 0.000000e+00 : f32
    %238 = vector.broadcast %cst_24 : f32 to vector<120x1xf32>
    %239 = arith.subf %238, %237 : vector<120x1xf32>
    %240 = math.exp %239 : vector<120x1xf32>
    %cst_25 = arith.constant 1.000000e+00 : f32
    %241 = vector.broadcast %cst_25 : f32 to vector<120x1xf32>
    %242 = arith.addf %241, %240 : vector<120x1xf32>
    %243 = tpu.reciprocal %242 {approx = true} : vector<120x1xf32> -> vector<120x1xf32>
    %cst_26 = arith.constant dense<0.000000e+00> : vector<84x1xf32>
    %244 = tpu.matmul %7, %243, %cst_26 {dimension_numbers = #tpu.dot_dimension_numbers<[1], [0], [0], [1], [0, 0, 1, 1], [], []>} : vector<84x120xf32>, vector<120x1xf32>, vector<84x1xf32> -> vector<84x1xf32>
    %c0_27 = arith.constant 0 : index
    %c0_28 = arith.constant 0 : index
    %245 = vector.load %arg9[%c0_27, %c0_28] : memref<84x1xf32, #tpu.memory_space<vmem>>, vector<84x1xf32>
    %246 = arith.addf %244, %245 : vector<84x1xf32>
    %cst_29 = arith.constant 0.000000e+00 : f32
    %247 = vector.broadcast %cst_29 : f32 to vector<84x1xf32>
    %248 = arith.subf %247, %246 : vector<84x1xf32>
    %249 = math.exp %248 : vector<84x1xf32>
    %cst_30 = arith.constant 1.000000e+00 : f32
    %250 = vector.broadcast %cst_30 : f32 to vector<84x1xf32>
    %251 = arith.addf %250, %249 : vector<84x1xf32>
    %252 = tpu.reciprocal %251 {approx = true} : vector<84x1xf32> -> vector<84x1xf32>
    %cst_31 = arith.constant dense<0.000000e+00> : vector<10x1xf32>
    %253 = tpu.matmul %8, %252, %cst_31 {dimension_numbers = #tpu.dot_dimension_numbers<[1], [0], [0], [1], [0, 0, 1, 1], [], []>} : vector<10x84xf32>, vector<84x1xf32>, vector<10x1xf32> -> vector<10x1xf32>
    %c0_32 = arith.constant 0 : index
    %c0_33 = arith.constant 0 : index
    %254 = vector.load %arg11[%c0_32, %c0_33] : memref<10x1xf32, #tpu.memory_space<vmem>>, vector<10x1xf32>
    %255 = arith.addf %253, %254 : vector<10x1xf32>
    %c0_34 = arith.constant 0 : index
    %c0_35 = arith.constant 0 : index
    %c0_36 = arith.constant 0 : index
    %256 = vector.load %arg12[%c0_34, %c0_35, %c0_36] : memref<1x10x1xf32, #tpu.memory_space<vmem>>, vector<1x10x1xf32>
    %257 = vector.shape_cast %256 : vector<1x10x1xf32> to vector<10x1xf32>
    %258 = vector.shape_cast %255 : vector<10x1xf32> to vector<1x10x1xf32>
    tpu.vector_store %arg12[%c0_34, %c0_35, %c0_36], %258 {strides = array<i32>} : memref<1x10x1xf32, #tpu.memory_space<vmem>>, vector<1x10x1xf32>,
    return
  }
  func.func @transform_0(%arg0: i32) -> (i32, i32, i32) {
    %c0_i32 = arith.constant 0 : i32
    %c0_i32_0 = arith.constant 0 : i32
    %c0_i32_1 = arith.constant 0 : i32
    return %arg0, %c0_i32, %c0_i32_0 : i32, i32, i32
  }
  func.func @transform_1(%arg0: i32) -> (i32, i32) {
    %c0_i32 = arith.constant 0 : i32
    %c0_i32_0 = arith.constant 0 : i32
    %c0_i32_1 = arith.constant 0 : i32
    return %c0_i32, %c0_i32_0 : i32, i32
  }
  func.func @transform_2(%arg0: i32) -> (i32, i32) {
    %c0_i32 = arith.constant 0 : i32
    %c0_i32_0 = arith.constant 0 : i32
    %c0_i32_1 = arith.constant 0 : i32
    return %c0_i32, %c0_i32_0 : i32, i32
  }
  func.func @transform_3(%arg0: i32) -> (i32, i32) {
    %c0_i32 = arith.constant 0 : i32
    %c0_i32_0 = arith.constant 0 : i32
    %c0_i32_1 = arith.constant 0 : i32
    return %c0_i32, %c0_i32_0 : i32, i32
  }
  func.func @transform_4(%arg0: i32) -> (i32, i32) {
    %c0_i32 = arith.constant 0 : i32
    %c0_i32_0 = arith.constant 0 : i32
    %c0_i32_1 = arith.constant 0 : i32
    return %c0_i32, %c0_i32_0 : i32, i32
  }
  func.func @transform_5(%arg0: i32) -> (i32, i32) {
    %c0_i32 = arith.constant 0 : i32
    %c0_i32_0 = arith.constant 0 : i32
    %c0_i32_1 = arith.constant 0 : i32
    return %c0_i32, %c0_i32_0 : i32, i32
  }
  func.func @transform_6(%arg0: i32) -> (i32, i32) {
    %c0_i32 = arith.constant 0 : i32
    %c0_i32_0 = arith.constant 0 : i32
    %c0_i32_1 = arith.constant 0 : i32
    return %c0_i32, %c0_i32_0 : i32, i32
  }
  func.func @transform_7(%arg0: i32) -> (i32, i32) {
    %c0_i32 = arith.constant 0 : i32
    %c0_i32_0 = arith.constant 0 : i32
    %c0_i32_1 = arith.constant 0 : i32
    return %c0_i32, %c0_i32_0 : i32, i32
  }
  func.func @transform_8(%arg0: i32) -> (i32, i32) {
    %c0_i32 = arith.constant 0 : i32
    %c0_i32_0 = arith.constant 0 : i32
    %c0_i32_1 = arith.constant 0 : i32
    return %c0_i32, %c0_i32_0 : i32, i32
  }
  func.func @transform_9(%arg0: i32) -> (i32, i32) {
    %c0_i32 = arith.constant 0 : i32
    %c0_i32_0 = arith.constant 0 : i32
    %c0_i32_1 = arith.constant 0 : i32
    return %c0_i32, %c0_i32_0 : i32, i32
  }
  func.func @transform_10(%arg0: i32) -> (i32, i32) {
    %c0_i32 = arith.constant 0 : i32
    %c0_i32_0 = arith.constant 0 : i32
    %c0_i32_1 = arith.constant 0 : i32
    return %c0_i32, %c0_i32_0 : i32, i32
  }
  func.func @transform_11(%arg0: i32) -> (i32, i32, i32) {
    %c0_i32 = arith.constant 0 : i32
    %c0_i32_0 = arith.constant 0 : i32
    %c0_i32_1 = arith.constant 0 : i32
    return %arg0, %c0_i32, %c0_i32_0 : i32, i32, i32
  }
}

</mosaic_0001>

<bundles_post_ra>
// kernel: tile.6
= control target key start
LH: loop header
LB: loop body
LE: loop exit
PB: predicated region body
PF: predicated region fallthrough
CT: control target
= control target key end

     0   :  { %s28_s0 = inlined_call_operand.vmem [shape: f32[16], index: 0, kind: input, shape index: {}]   ;;  %s29_s1 = inlined_call_operand.vmem [shape: f32[16,1,1,16], index: 1, kind: output, shape index: {}]  }
   0x1   :  { %v4_v0 = vld [vmem:[%s28_s0] ss:$0 sm:$0xff] }
   0x2   :  { %5 = vst [vmem:[%s29_s1] sm:$0xff] %v4_v0 }
   0x3   :  { %8 = vst [vmem:[%s29_s1 + $0x8] sm:$0xff] %v4_v0 }

// kernel: tile.0
= control target key start
LH: loop header
LB: loop body
LE: loop exit
PB: predicated region body
PF: predicated region fallthrough
CT: control target
= control target key end

     0   :  { %s549_s8 = smov 126   ;;  %s550_s9 = smov 127   ;;  %vm3_vm0 = vcmask 7168   ;;  %s1092_s0 = inlined_call_operand.vmem [shape: f32[16,1,1,16], index: 0, kind: input, shape index: {}]   ;;  %s1093_s1 = inlined_call_operand.vmem [shape: f32[256,1], index: 1, kind: output, shape index: {}]  }
   0x1   :  { %v44_v0 = vld [vmem:[%s1092_s0] sm:$0xff]   ;;  %s551_s10 = smov 125   ;;  %v412_v1 = vld [vmem:[%s1092_s0 + $0x8] sm:$0xff]   ;;  %s552_s0 = smov 124  }
   0x2   :  { %45 = vrot.lane.b32.xlu1 %v44_v0, %s549_s8  ;;  %20 = vrot.lane.b32.xlu0 %v44_v0, %s550_s9  ;;  %s553_s13 = smov 123   ;;  %s554_s14 = smov 122   ;;  %4 = vst.msk [vmem:[%s1093_s1] ss:$16 sm:$0x3] %vm3_vm0, %v44_v0  }
   0x3   :  { %70 = vrot.lane.b32.xlu2 %v44_v0, %s551_s10  ;;  %s555_s15 = smov 121   ;;  %s556_s16 = smov 120   ;;  %5 = vst.msk [vmem:[%s1093_s1] ss:$16 sm:$0xc] %vm3_vm0, %v44_v0  }
   0x4   :  { %s557_s17 = smov 119   ;;  %6 = vst.msk [vmem:[%s1093_s1] ss:$16 sm:$0x30] %vm3_vm0, %v44_v0   ;;  %s558_s30 = smov 118  }
   0x5   :  { %7 = vst.msk [vmem:[%s1093_s1] ss:$16 sm:$0xc0] %vm3_vm0, %v44_v0   ;;  %s559_s4 = smov 117   ;;  %s560_s7 = smov 116  }
   0x6   :  { %395 = vst.msk [vmem:[%s1093_s1 + $0x80] ss:$16 sm:$0x3] %vm3_vm0, %v412_v1  }
   0x7   :  { %396 = vst.msk [vmem:[%s1093_s1 + $0x80] ss:$16 sm:$0xc] %vm3_vm0, %v412_v1  }
   0x8   :  { %397 = vst.msk [vmem:[%s1093_s1 + $0x80] ss:$16 sm:$0x30] %vm3_vm0, %v412_v1  }
   0x9   :  { %398 = vst.msk [vmem:[%s1093_s1 + $0x80] ss:$16 sm:$0xc0] %vm3_vm0, %v412_v1  }
   0xa   :  { %58 = vrot.lane.b32.xlu1 %v412_v1, %s549_s8  ;;  %33 = vrot.lane.b32.xlu0 %v412_v1, %s550_s9  ;;  %s561_s8 = smov 115   ;;  %s562_s9 = smov 114  }
   0xb   :  { %83 = vrot.lane.b32.xlu2 %v412_v1, %s551_s10  ;;  %s563_s10 = smov 113  }
  0x12   :  { %108 = vrot.lane.b32.xlu1 %v412_v1, %s552_s0  ;;  %95 = vrot.lane.b32.xlu0 %v44_v0, %s552_s0 }
  0x13   :  { %120 = vrot.lane.b32.xlu2 %v44_v0, %s553_s13 }
  0x1a   :  { %145 = vrot.lane.b32.xlu1 %v44_v0, %s554_s14  ;;  %133 = vrot.lane.b32.xlu0 %v412_v1, %s553_s13 }
  0x1b   :  { %158 = vrot.lane.b32.xlu2 %v412_v1, %s554_s14 }
  0x22   :  { %183 = vrot.lane.b32.xlu1 %v412_v1, %s555_s15  ;;  %170 = vrot.lane.b32.xlu0 %v44_v0, %s555_s15 }
  0x23   :  { %195 = vrot.lane.b32.xlu2 %v44_v0, %s556_s16 }
  0x2a   :  { %220 = vrot.lane.b32.xlu1 %v44_v0, %s557_s17  ;;  %208 = vrot.lane.b32.xlu0 %v412_v1, %s556_s16 }
  0x2b   :  { %233 = vrot.lane.b32.xlu2 %v412_v1, %s557_s17 }
  0x32   :  { %258 = vrot.lane.b32.xlu1 %v412_v1, %s558_s30  ;;  %245 = vrot.lane.b32.xlu0 %v44_v0, %s558_s30 }
  0x33   :  { %270 = vrot.lane.b32.xlu2 %v44_v0, %s559_s4 }
  0x3a   :  { %295 = vrot.lane.b32.xlu1 %v44_v0, %s560_s7  ;;  %283 = vrot.lane.b32.xlu0 %v412_v1, %s559_s4 }
  0x3b   :  { %308 = vrot.lane.b32.xlu2 %v412_v1, %s560_s7 }
  0x42   :  { %333 = vrot.lane.b32.xlu1 %v412_v1, %s561_s8  ;;  %320 = vrot.lane.b32.xlu0 %v44_v0, %s561_s8 }
  0x43   :  { %345 = vrot.lane.b32.xlu2 %v44_v0, %s562_s9 }
  0x4a   :  { %370 = vrot.lane.b32.xlu1 %v44_v0, %s563_s10  ;;  %358 = vrot.lane.b32.xlu0 %v412_v1, %s562_s9 }
  0x4b   :  { %383 = vrot.lane.b32.xlu2 %v412_v1, %s563_s10 }
  0x5d   :  { %v71_v2 = vpop.permute.xlu2 %70  }
  0x5e   :  { %417 = vst.msk [vmem:[%s1093_s1 + $0x3] ss:$16 sm:$0x3] %vm3_vm0, %v71_v2  }
  0x5f   :  { %418 = vst.msk [vmem:[%s1093_s1 + $0x3] ss:$16 sm:$0xc] %vm3_vm0, %v71_v2  }
  0x60   :  { %419 = vst.msk [vmem:[%s1093_s1 + $0x3] ss:$16 sm:$0x30] %vm3_vm0, %v71_v2  }
  0x61   :  { %420 = vst.msk [vmem:[%s1093_s1 + $0x3] ss:$16 sm:$0xc0] %vm3_vm0, %v71_v2  }
  0x65   :  { %v84_v3 = vpop.permute.xlu2 %83  }
  0x66   :  { %422 = vst.msk [vmem:[%s1093_s1 + $0x83] ss:$16 sm:$0x3] %vm3_vm0, %v84_v3  }
  0x67   :  { %423 = vst.msk [vmem:[%s1093_s1 + $0x83] ss:$16 sm:$0xc] %vm3_vm0, %v84_v3  }
  0x68   :  { %424 = vst.msk [vmem:[%s1093_s1 + $0x83] ss:$16 sm:$0x30] %vm3_vm0, %v84_v3  }
  0x69   :  { %425 = vst.msk [vmem:[%s1093_s1 + $0x83] ss:$16 sm:$0xc0] %vm3_vm0, %v84_v3  }
  0x6d   :  { %v121_v4 = vpop.permute.xlu2 %120  }
  0x6e   :  { %435 = vst.msk [vmem:[%s1093_s1 + $0x5] ss:$16 sm:$0x3] %vm3_vm0, %v121_v4  }
  0x6f   :  { %436 = vst.msk [vmem:[%s1093_s1 + $0x5] ss:$16 sm:$0xc] %vm3_vm0, %v121_v4  }
  0x70   :  { %437 = vst.msk [vmem:[%s1093_s1 + $0x5] ss:$16 sm:$0x30] %vm3_vm0, %v121_v4  }
  0x71   :  { %438 = vst.msk [vmem:[%s1093_s1 + $0x5] ss:$16 sm:$0xc0] %vm3_vm0, %v121_v4  }
  0x74   :  { %v46_v5 = vpop.permute.xlu1 %45   ;;  %v21_v6 = vpop.permute.xlu0 %20  }
  0x75   :  { %408 = vst.msk [vmem:[%s1093_s1 + $0x2] ss:$16 sm:$0x3] %vm3_vm0, %v46_v5   ;;  %v159_v7 = vpop.permute.xlu2 %158  }
  0x76   :  { %409 = vst.msk [vmem:[%s1093_s1 + $0x2] ss:$16 sm:$0xc] %vm3_vm0, %v46_v5  }
  0x77   :  { %410 = vst.msk [vmem:[%s1093_s1 + $0x2] ss:$16 sm:$0x30] %vm3_vm0, %v46_v5  }
  0x78   :  { %411 = vst.msk [vmem:[%s1093_s1 + $0x2] ss:$16 sm:$0xc0] %vm3_vm0, %v46_v5  }
  0x79   :  { %399 = vst.msk [vmem:[%s1093_s1 + $0x1] ss:$16 sm:$0x3] %vm3_vm0, %v21_v6  }
  0x7a   :  { %400 = vst.msk [vmem:[%s1093_s1 + $0x1] ss:$16 sm:$0xc] %vm3_vm0, %v21_v6  }
  0x7b   :  { %401 = vst.msk [vmem:[%s1093_s1 + $0x1] ss:$16 sm:$0x30] %vm3_vm0, %v21_v6  }
  0x7c   :  { %402 = vst.msk [vmem:[%s1093_s1 + $0x1] ss:$16 sm:$0xc0] %vm3_vm0, %v21_v6   ;;  %v59_v8 = vpop.permute.xlu1 %58   ;;  %v34_v9 = vpop.permute.xlu0 %33  }
  0x7d   :  { %413 = vst.msk [vmem:[%s1093_s1 + $0x82] ss:$16 sm:$0x3] %vm3_vm0, %v59_v8   ;;  %v196_v10 = vpop.permute.xlu2 %195  }
  0x7e   :  { %414 = vst.msk [vmem:[%s1093_s1 + $0x82] ss:$16 sm:$0xc] %vm3_vm0, %v59_v8  }
  0x7f   :  { %415 = vst.msk [vmem:[%s1093_s1 + $0x82] ss:$16 sm:$0x30] %vm3_vm0, %v59_v8  }
  0x80   :  { %416 = vst.msk [vmem:[%s1093_s1 + $0x82] ss:$16 sm:$0xc0] %vm3_vm0, %v59_v8  }
  0x81   :  { %404 = vst.msk [vmem:[%s1093_s1 + $0x81] ss:$16 sm:$0x3] %vm3_vm0, %v34_v9  }
  0x82   :  { %405 = vst.msk [vmem:[%s1093_s1 + $0x81] ss:$16 sm:$0xc] %vm3_vm0, %v34_v9  }
  0x83   :  { %406 = vst.msk [vmem:[%s1093_s1 + $0x81] ss:$16 sm:$0x30] %vm3_vm0, %v34_v9  }
  0x84   :  { %407 = vst.msk [vmem:[%s1093_s1 + $0x81] ss:$16 sm:$0xc0] %vm3_vm0, %v34_v9   ;;  %v109_v11 = vpop.permute.xlu1 %108   ;;  %v96_v12 = vpop.permute.xlu0 %95  }
  0x85   :  { %431 = vst.msk [vmem:[%s1093_s1 + $0x84] ss:$16 sm:$0x3] %vm3_vm0, %v109_v11   ;;  %v234_v13 = vpop.permute.xlu2 %233  }
  0x86   :  { %432 = vst.msk [vmem:[%s1093_s1 + $0x84] ss:$16 sm:$0xc] %vm3_vm0, %v109_v11  }
  0x87   :  { %433 = vst.msk [vmem:[%s1093_s1 + $0x84] ss:$16 sm:$0x30] %vm3_vm0, %v109_v11  }
  0x88   :  { %434 = vst.msk [vmem:[%s1093_s1 + $0x84] ss:$16 sm:$0xc0] %vm3_vm0, %v109_v11  }
  0x89   :  { %426 = vst.msk [vmem:[%s1093_s1 + $0x4] ss:$16 sm:$0x3] %vm3_vm0, %v96_v12  }
  0x8a   :  { %427 = vst.msk [vmem:[%s1093_s1 + $0x4] ss:$16 sm:$0xc] %vm3_vm0, %v96_v12  }
  0x8b   :  { %428 = vst.msk [vmem:[%s1093_s1 + $0x4] ss:$16 sm:$0x30] %vm3_vm0, %v96_v12  }
  0x8c   :  { %429 = vst.msk [vmem:[%s1093_s1 + $0x4] ss:$16 sm:$0xc0] %vm3_vm0, %v96_v12   ;;  %v146_v14 = vpop.permute.xlu1 %145   ;;  %v134_v15 = vpop.permute.xlu0 %133  }
  0x8d   :  { %449 = vst.msk [vmem:[%s1093_s1 + $0x86] ss:$16 sm:$0x3] %vm3_vm0, %v159_v7   ;;  %v271_v16 = vpop.permute.xlu2 %270  }
  0x8e   :  { %450 = vst.msk [vmem:[%s1093_s1 + $0x86] ss:$16 sm:$0xc] %vm3_vm0, %v159_v7  }
  0x8f   :  { %451 = vst.msk [vmem:[%s1093_s1 + $0x86] ss:$16 sm:$0x30] %vm3_vm0, %v159_v7  }
  0x90   :  { %452 = vst.msk [vmem:[%s1093_s1 + $0x86] ss:$16 sm:$0xc0] %vm3_vm0, %v159_v7  }
  0x91   :  { %444 = vst.msk [vmem:[%s1093_s1 + $0x6] ss:$16 sm:$0x3] %vm3_vm0, %v146_v14  }
  0x92   :  { %445 = vst.msk [vmem:[%s1093_s1 + $0x6] ss:$16 sm:$0xc] %vm3_vm0, %v146_v14  }
  0x93   :  { %446 = vst.msk [vmem:[%s1093_s1 + $0x6] ss:$16 sm:$0x30] %vm3_vm0, %v146_v14  }
  0x94   :  { %447 = vst.msk [vmem:[%s1093_s1 + $0x6] ss:$16 sm:$0xc0] %vm3_vm0, %v146_v14   ;;  %v184_v17 = vpop.permute.xlu1 %183   ;;  %v171_v18 = vpop.permute.xlu0 %170  }
  0x95   :  { %440 = vst.msk [vmem:[%s1093_s1 + $0x85] ss:$16 sm:$0x3] %vm3_vm0, %v134_v15   ;;  %v309_v21 = vpop.permute.xlu2 %308  }
  0x96   :  { %441 = vst.msk [vmem:[%s1093_s1 + $0x85] ss:$16 sm:$0xc] %vm3_vm0, %v134_v15  }
  0x97   :  { %442 = vst.msk [vmem:[%s1093_s1 + $0x85] ss:$16 sm:$0x30] %vm3_vm0, %v134_v15  }
  0x98   :  { %443 = vst.msk [vmem:[%s1093_s1 + $0x85] ss:$16 sm:$0xc0] %vm3_vm0, %v134_v15  }
  0x99   :  { %462 = vst.msk [vmem:[%s1093_s1 + $0x8] ss:$16 sm:$0x3] %vm3_vm0, %v196_v10  }
  0x9a   :  { %463 = vst.msk [vmem:[%s1093_s1 + $0x8] ss:$16 sm:$0xc] %vm3_vm0, %v196_v10  }
  0x9b   :  { %464 = vst.msk [vmem:[%s1093_s1 + $0x8] ss:$16 sm:$0x30] %vm3_vm0, %v196_v10  }
  0x9c   :  { %465 = vst.msk [vmem:[%s1093_s1 + $0x8] ss:$16 sm:$0xc0] %vm3_vm0, %v196_v10   ;;  %v221_v19 = vpop.permute.xlu1 %220   ;;  %v209_v20 = vpop.permute.xlu0 %208  }
  0x9d   :  { %458 = vst.msk [vmem:[%s1093_s1 + $0x87] ss:$16 sm:$0x3] %vm3_vm0, %v184_v17   ;;  %v346_v24 = vpop.permute.xlu2 %345  }
  0x9e   :  { %459 = vst.msk [vmem:[%s1093_s1 + $0x87] ss:$16 sm:$0xc] %vm3_vm0, %v184_v17  }
  0x9f   :  { %460 = vst.msk [vmem:[%s1093_s1 + $0x87] ss:$16 sm:$0x30] %vm3_vm0, %v184_v17  }
  0xa0   :  { %461 = vst.msk [vmem:[%s1093_s1 + $0x87] ss:$16 sm:$0xc0] %vm3_vm0, %v184_v17  }
  0xa1   :  { %453 = vst.msk [vmem:[%s1093_s1 + $0x7] ss:$16 sm:$0x3] %vm3_vm0, %v171_v18  }
  0xa2   :  { %454 = vst.msk [vmem:[%s1093_s1 + $0x7] ss:$16 sm:$0xc] %vm3_vm0, %v171_v18  }
  0xa3   :  { %455 = vst.msk [vmem:[%s1093_s1 + $0x7] ss:$16 sm:$0x30] %vm3_vm0, %v171_v18  }
  0xa4   :  { %456 = vst.msk [vmem:[%s1093_s1 + $0x7] ss:$16 sm:$0xc0] %vm3_vm0, %v171_v18   ;;  %v259_v22 = vpop.permute.xlu1 %258   ;;  %v246_v23 = vpop.permute.xlu0 %245  }
  0xa5   :  { %476 = vst.msk [vmem:[%s1093_s1 + $0x89] ss:$16 sm:$0x3] %vm3_vm0, %v234_v13   ;;  %v384_v29 = vpop.permute.xlu2 %383  }
  0xa6   :  { %477 = vst.msk [vmem:[%s1093_s1 + $0x89] ss:$16 sm:$0xc] %vm3_vm0, %v234_v13  }
  0xa7   :  { %478 = vst.msk [vmem:[%s1093_s1 + $0x89] ss:$16 sm:$0x30] %vm3_vm0, %v234_v13  }
  0xa8   :  { %479 = vst.msk [vmem:[%s1093_s1 + $0x89] ss:$16 sm:$0xc0] %vm3_vm0, %v234_v13  }
  0xa9   :  { %471 = vst.msk [vmem:[%s1093_s1 + $0x9] ss:$16 sm:$0x3] %vm3_vm0, %v221_v19  }
  0xaa   :  { %472 = vst.msk [vmem:[%s1093_s1 + $0x9] ss:$16 sm:$0xc] %vm3_vm0, %v221_v19  }
  0xab   :  { %473 = vst.msk [vmem:[%s1093_s1 + $0x9] ss:$16 sm:$0x30] %vm3_vm0, %v221_v19  }
  0xac   :  { %474 = vst.msk [vmem:[%s1093_s1 + $0x9] ss:$16 sm:$0xc0] %vm3_vm0, %v221_v19   ;;  %v296_v25 = vpop.permute.xlu1 %295   ;;  %v284_v26 = vpop.permute.xlu0 %283  }
  0xad   :  { %467 = vst.msk [vmem:[%s1093_s1 + $0x88] ss:$16 sm:$0x3] %vm3_vm0, %v209_v20  }
  0xae   :  { %468 = vst.msk [vmem:[%s1093_s1 + $0x88] ss:$16 sm:$0xc] %vm3_vm0, %v209_v20  }
  0xaf   :  { %469 = vst.msk [vmem:[%s1093_s1 + $0x88] ss:$16 sm:$0x30] %vm3_vm0, %v209_v20  }
  0xb0   :  { %470 = vst.msk [vmem:[%s1093_s1 + $0x88] ss:$16 sm:$0xc0] %vm3_vm0, %v209_v20  }
  0xb1   :  { %489 = vst.msk [vmem:[%s1093_s1 + $0xb] ss:$16 sm:$0x3] %vm3_vm0, %v271_v16  }
  0xb2   :  { %490 = vst.msk [vmem:[%s1093_s1 + $0xb] ss:$16 sm:$0xc] %vm3_vm0, %v271_v16  }
  0xb3   :  { %491 = vst.msk [vmem:[%s1093_s1 + $0xb] ss:$16 sm:$0x30] %vm3_vm0, %v271_v16  }
  0xb4   :  { %492 = vst.msk [vmem:[%s1093_s1 + $0xb] ss:$16 sm:$0xc0] %vm3_vm0, %v271_v16   ;;  %v334_v27 = vpop.permute.xlu1 %333   ;;  %v321_v28 = vpop.permute.xlu0 %320  }
  0xb5   :  { %485 = vst.msk [vmem:[%s1093_s1 + $0x8a] ss:$16 sm:$0x3] %vm3_vm0, %v259_v22  }
  0xb6   :  { %486 = vst.msk [vmem:[%s1093_s1 + $0x8a] ss:$16 sm:$0xc] %vm3_vm0, %v259_v22  }
  0xb7   :  { %487 = vst.msk [vmem:[%s1093_s1 + $0x8a] ss:$16 sm:$0x30] %vm3_vm0, %v259_v22  }
  0xb8   :  { %488 = vst.msk [vmem:[%s1093_s1 + $0x8a] ss:$16 sm:$0xc0] %vm3_vm0, %v259_v22  }
  0xb9   :  { %480 = vst.msk [vmem:[%s1093_s1 + $0xa] ss:$16 sm:$0x3] %vm3_vm0, %v246_v23  }
  0xba   :  { %481 = vst.msk [vmem:[%s1093_s1 + $0xa] ss:$16 sm:$0xc] %vm3_vm0, %v246_v23  }
  0xbb   :  { %482 = vst.msk [vmem:[%s1093_s1 + $0xa] ss:$16 sm:$0x30] %vm3_vm0, %v246_v23  }
  0xbc   :  { %483 = vst.msk [vmem:[%s1093_s1 + $0xa] ss:$16 sm:$0xc0] %vm3_vm0, %v246_v23   ;;  %v371_v30 = vpop.permute.xlu1 %370   ;;  %v359_v31 = vpop.permute.xlu0 %358  }
  0xbd   :  { %503 = vst.msk [vmem:[%s1093_s1 + $0x8c] ss:$16 sm:$0x3] %vm3_vm0, %v309_v21  }
  0xbe   :  { %504 = vst.msk [vmem:[%s1093_s1 + $0x8c] ss:$16 sm:$0xc] %vm3_vm0, %v309_v21  }
  0xbf   :  { %505 = vst.msk [vmem:[%s1093_s1 + $0x8c] ss:$16 sm:$0x30] %vm3_vm0, %v309_v21  }
  0xc0   :  { %506 = vst.msk [vmem:[%s1093_s1 + $0x8c] ss:$16 sm:$0xc0] %vm3_vm0, %v309_v21  }
  0xc1   :  { %498 = vst.msk [vmem:[%s1093_s1 + $0xc] ss:$16 sm:$0x3] %vm3_vm0, %v296_v25  }
  0xc2   :  { %499 = vst.msk [vmem:[%s1093_s1 + $0xc] ss:$16 sm:$0xc] %vm3_vm0, %v296_v25  }
  0xc3   :  { %500 = vst.msk [vmem:[%s1093_s1 + $0xc] ss:$16 sm:$0x30] %vm3_vm0, %v296_v25  }
  0xc4   :  { %501 = vst.msk [vmem:[%s1093_s1 + $0xc] ss:$16 sm:$0xc0] %vm3_vm0, %v296_v25  }
  0xc5   :  { %494 = vst.msk [vmem:[%s1093_s1 + $0x8b] ss:$16 sm:$0x3] %vm3_vm0, %v284_v26  }
  0xc6   :  { %495 = vst.msk [vmem:[%s1093_s1 + $0x8b] ss:$16 sm:$0xc] %vm3_vm0, %v284_v26  }
  0xc7   :  { %496 = vst.msk [vmem:[%s1093_s1 + $0x8b] ss:$16 sm:$0x30] %vm3_vm0, %v284_v26  }
  0xc8   :  { %497 = vst.msk [vmem:[%s1093_s1 + $0x8b] ss:$16 sm:$0xc0] %vm3_vm0, %v284_v26  }
  0xc9   :  { %516 = vst.msk [vmem:[%s1093_s1 + $0xe] ss:$16 sm:$0x3] %vm3_vm0, %v346_v24  }
  0xca   :  { %517 = vst.msk [vmem:[%s1093_s1 + $0xe] ss:$16 sm:$0xc] %vm3_vm0, %v346_v24  }
  0xcb   :  { %518 = vst.msk [vmem:[%s1093_s1 + $0xe] ss:$16 sm:$0x30] %vm3_vm0, %v346_v24  }
  0xcc   :  { %519 = vst.msk [vmem:[%s1093_s1 + $0xe] ss:$16 sm:$0xc0] %vm3_vm0, %v346_v24  }
  0xcd   :  { %512 = vst.msk [vmem:[%s1093_s1 + $0x8d] ss:$16 sm:$0x3] %vm3_vm0, %v334_v27  }
  0xce   :  { %513 = vst.msk [vmem:[%s1093_s1 + $0x8d] ss:$16 sm:$0xc] %vm3_vm0, %v334_v27  }
  0xcf   :  { %514 = vst.msk [vmem:[%s1093_s1 + $0x8d] ss:$16 sm:$0x30] %vm3_vm0, %v334_v27  }
  0xd0   :  { %515 = vst.msk [vmem:[%s1093_s1 + $0x8d] ss:$16 sm:$0xc0] %vm3_vm0, %v334_v27  }
  0xd1   :  { %507 = vst.msk [vmem:[%s1093_s1 + $0xd] ss:$16 sm:$0x3] %vm3_vm0, %v321_v28  }
  0xd2   :  { %508 = vst.msk [vmem:[%s1093_s1 + $0xd] ss:$16 sm:$0xc] %vm3_vm0, %v321_v28  }
  0xd3   :  { %509 = vst.msk [vmem:[%s1093_s1 + $0xd] ss:$16 sm:$0x30] %vm3_vm0, %v321_v28  }
  0xd4   :  { %510 = vst.msk [vmem:[%s1093_s1 + $0xd] ss:$16 sm:$0xc0] %vm3_vm0, %v321_v28  }
  0xd5   :  { %530 = vst.msk [vmem:[%s1093_s1 + $0x8f] ss:$16 sm:$0x3] %vm3_vm0, %v384_v29  }
  0xd6   :  { %531 = vst.msk [vmem:[%s1093_s1 + $0x8f] ss:$16 sm:$0xc] %vm3_vm0, %v384_v29  }
  0xd7   :  { %532 = vst.msk [vmem:[%s1093_s1 + $0x8f] ss:$16 sm:$0x30] %vm3_vm0, %v384_v29  }
  0xd8   :  { %533 = vst.msk [vmem:[%s1093_s1 + $0x8f] ss:$16 sm:$0xc0] %vm3_vm0, %v384_v29  }
  0xd9   :  { %525 = vst.msk [vmem:[%s1093_s1 + $0xf] ss:$16 sm:$0x3] %vm3_vm0, %v371_v30  }
  0xda   :  { %526 = vst.msk [vmem:[%s1093_s1 + $0xf] ss:$16 sm:$0xc] %vm3_vm0, %v371_v30  }
  0xdb   :  { %527 = vst.msk [vmem:[%s1093_s1 + $0xf] ss:$16 sm:$0x30] %vm3_vm0, %v371_v30  }
  0xdc   :  { %528 = vst.msk [vmem:[%s1093_s1 + $0xf] ss:$16 sm:$0xc0] %vm3_vm0, %v371_v30  }
  0xdd   :  { %521 = vst.msk [vmem:[%s1093_s1 + $0x8e] ss:$16 sm:$0x3] %vm3_vm0, %v359_v31  }
  0xde   :  { %522 = vst.msk [vmem:[%s1093_s1 + $0x8e] ss:$16 sm:$0xc] %vm3_vm0, %v359_v31  }
  0xdf   :  { %523 = vst.msk [vmem:[%s1093_s1 + $0x8e] ss:$16 sm:$0x30] %vm3_vm0, %v359_v31  }
  0xe0   :  { %524 = vst.msk [vmem:[%s1093_s1 + $0x8e] ss:$16 sm:$0xc0] %vm3_vm0, %v359_v31  }

// kernel: lenet_forward.1
= control target key start
LH: loop header
LB: loop body
LE: loop exit
PB: predicated region body
PF: predicated region fallthrough
CT: control target
= control target key end

     0   :  { %s4126_s17 = smov 0   ;;  %s6754_s0 = inlined_call_operand.vmem [shape: f32[2,1,896], index: 0, kind: input, shape index: {}]   ;;  %s6755_s1 = inlined_call_operand.vmem [shape: f32[8,25], index: 1, kind: input, shape index: {}]   ;;  %s6756_s2 = inlined_call_operand.vmem [shape: f32[8,1], index: 2, kind: input, shape index: {}]   ;;  %s6757_s3 = inlined_call_operand.vmem [shape: f32[16,200], index: 3, kind: input, shape index: {}]   ;;  %s6758_s4 = inlined_call_operand.vmem [shape: f32[256,1], index: 4, kind: input, shape index: {}]   ;;  %s6759_s5 = inlined_call_operand.vmem [shape: f32[120,256], index: 5, kind: input, shape index: {}]   ;;  %s6760_s6 = inlined_call_operand.vmem [shape: f32[120,1], index: 6, kind: input, shape index: {}]   ;;  %s6761_s7 = inlined_call_operand.vmem [shape: f32[84,120], index: 7, kind: input, shape index: {}]   ;;  %s6762_s8 = inlined_call_operand.vmem [shape: f32[84,1], index: 8, kind: input, shape index: {}]   ;;  %s6763_s9 = inlined_call_operand.vmem [shape: f32[10,84], index: 9, kind: input, shape index: {}]   ;;  %s6764_s10 = inlined_call_operand.vmem [shape: f32[10,1], index: 10, kind: input, shape index: {}]   ;;  %s6765_s11 = inlined_call_operand.vmem [shape: f32[2,10,1], index: 11, kind: output, shape index: {}]  }
   0x1 LB: > { %s3333_s18 = sadd.s32 4294967295, %s3998_s17   ;;  %p3337_p0 = scmp.ge.s32.totalorder %s3998_s17, 1  ;;  %s3998_s17 = sphi %s4126_s17, %s21_s17  }
   0x2   : > { %p336_p1 = scmp.lt.s32.totalorder %s3998_s17, 3 }
   0x4   : > { %p337_p2 = pnand %p3337_p0, %p336_p1 }
   0x6   : > { %340 = sbr.rel (%p337_p2) target bundleno = 2323 (0x913), region = 64 }
   0xb   : > { %v4137_v0 = vld [vmem:[%s6755_s1] sm:$0xff]  ;;  %v4000_v1 = vmov 1   ;;  %v4001_v2 = vmov 3   ;;  %v4002_v3 = vmov 5   ;;  %v4003_v4 = vmov 2   ;;  %p375_p3 = scmp.lt.s32.totalorder %s3333_s18, 1 }
   0xc   : > { %3440 = vset.pattern.permute.xlu0 %v4000_v1  ;;  %3442 = vset.pattern.permute.xlu1 %v4001_v2  ;;  %v4004_v5 = vmov 4   ;;  %v4005_v6 = vmov 6   ;;  %v4006_v7 = vmov 7   ;;  %v4007_v8 = vmov 8   ;;  %s4025_s25 = smov 127   ;;  %s4026_s26 = smov 126  }
   0xd   : > { %497 = vperm.xlu0 %3440, %v4137_v0   ;;  %601 = vperm.xlu1 %3442, %v4137_v0   ;;  %v4008_v9 = vmov 10   ;;  %v4009_v10 = vmov 11   ;;  %v4010_v11 = vmov 12   ;;  %v4011_v12 = vmov 13   ;;  %s7137_s18 = smov (!%p375_p3, %s3333_s18), 1  ;;  %s4027_s27 = smov 125  }
   0xe   : > { %3444 = vset.pattern.permute.xlu2 %v4002_v3  ;;  %v4012_v13 = vmov 15   ;;  %v4013_v14 = vmov 16   ;;  %v4014_v15 = vmov 9   ;;  %v4015_v16 = vmov 17   ;;  %s3365_s21 = smul.u32 7, %s7137_s18  ;;  %s4028_s28 = smov 124  }
   0xf   : > { %703 = vperm.xlu2 %3444, %v4137_v0   ;;  %v4016_v17 = vmov 18   ;;  %v4017_v18 = vmov 14   ;;  %v4018_v19 = vmov 20   ;;  %v4019_v20 = vmov 0   ;;  %s4029_s29 = smov 100   ;;  %s4030_s30 = smov 99  }
  0x10   : > { %v4020_v21 = vmov 19   ;;  %v4021_v22 = vmov 21   ;;  %v4022_v23 = vmov 22   ;;  %v4023_v24 = vmov 23   ;;  %s378_s24 = scalar_lea.vmem %s6754_s0, %s3365_s21  ;;  %s4031_s12 = smov 98  }
  0x11   : > { %v4024_v25 = vmov 24   ;;  %v4174_v26 = vld [vmem:[%s378_s24] sm:$0xff]  ;;  %s4032_s13 = smov 97   ;;  %s4033_s14 = smov 96   ;;  %vm6826_vm0 = vcmask 1039360   ;;  %vm6830_vm1 = vcmask 1031168  }
  0x12   : > { %v4177_v27 = vperm.slane %v4174_v26, 4  ;;  %v4180_v28 = vperm.slane %v4174_v26, 3  ;;  %v4183_v29 = vperm.slane %v4174_v26, 2  ;;  %v4199_v35 = vperm.slane %v4174_v26, 6  ;;  %s4034_s15 = smov 72   ;;  %s4035_s16 = smov 71  }
  0x13   : > { %v4202_v36 = vperm.slane %v4174_v26, 5  ;;  %s4036_s19 = smov 70   ;;  %s4037_s20 = smov 69   ;;  %vm632_vm2 = vcmask 1022976   ;;  %vm6838_vm3 = vcmask 1014784   ;;  %vm734_vm4 = vcmask 818176  }
  0x14   : > { %s4038_s21 = smov 68   ;;  %s4039_s22 = smov 44   ;;  %vm6839_vm5 = vcmask 809984   ;;  %vm836_vm6 = vcmask 801792   ;;  %vm887_vm7 = vcmask 793600   ;;  %vm6829_vm8 = vcmask 785408  }
  0x15   : > { %3441 = vset.pattern.permute.xlu0 %v4003_v4  ;;  %3443 = vset.pattern.permute.xlu1 %v4004_v5  ;;  %s4040_s23 = smov 43   ;;  %s4041_s24 = smov 42   ;;  %vm989_vm9 = vcmask 588800   ;;  %vm6836_vm10 = vcmask 580608   ;;  %vm6833_vm11 = vcmask 572416   ;;  %vm1142_vm12 = vcmask 564224  }
  0x16   : > { %550 = vperm.xlu0 %3441, %v4137_v0   ;;  %652 = vperm.xlu1 %3443, %v4137_v0   ;;  %vm6837_vm13 = vcmask 556032   ;;  %vm1244_vm14 = vcmask 359424   ;;  %vm1295_vm15 = vcmask 351232  }
  0x17   : > { %3445 = vset.pattern.permute.xlu2 %v4005_v6  ;;  %v4292_v6 = vperm.slane %v4174_v26, 1 }
  0x18   : > { %754 = vperm.xlu2 %3445, %v4137_v0  }
  0x1e   : > { %3446 = vset.pattern.permute.xlu1 %v4006_v7  ;;  %3448 = vset.pattern.permute.xlu0 %v4014_v15 }
  0x1f   : > { %805 = vperm.xlu1 %3446, %v4137_v0   ;;  %907 = vperm.xlu0 %3448, %v4137_v0  }
  0x20   : > { %3447 = vset.pattern.permute.xlu2 %v4007_v8 }
  0x21   : > { %856 = vperm.xlu2 %3447, %v4137_v0  }
  0x27   : > { %3449 = vset.pattern.permute.xlu1 %v4008_v9  ;;  %3453 = vset.pattern.permute.xlu0 %v4017_v18 }
  0x28   : > { %958 = vperm.xlu1 %3449, %v4137_v0   ;;  %1162 = vperm.xlu0 %3453, %v4137_v0  }
  0x29   : > { %3450 = vset.pattern.permute.xlu2 %v4009_v10 }
  0x2a   : > { %1009 = vperm.xlu2 %3450, %v4137_v0  }
  0x30   : > { %3451 = vset.pattern.permute.xlu1 %v4010_v11  ;;  %3458 = vset.pattern.permute.xlu0 %v4020_v21 }
  0x31   : > { %1060 = vperm.xlu1 %3451, %v4137_v0   ;;  %1417 = vperm.xlu0 %3458, %v4137_v0  }
  0x32   : > { %3452 = vset.pattern.permute.xlu2 %v4011_v12 }
  0x33   : > { %1111 = vperm.xlu2 %3452, %v4137_v0  }
  0x39   : > { %3454 = vset.pattern.permute.xlu1 %v4012_v13  ;;  %3735 = vset.pattern.permute.xlu0 %v4019_v20 }
  0x3a   : > { %1213 = vperm.xlu1 %3454, %v4137_v0  }
  0x3b   : > { %3455 = vset.pattern.permute.xlu2 %v4013_v14 }
  0x3c   : > { %1264 = vperm.xlu2 %3455, %v4137_v0  }
  0x42   : > { %3456 = vset.pattern.permute.xlu1 %v4015_v16 }
  0x43   : > { %1315 = vperm.xlu1 %3456, %v4137_v0  }
  0x44   : > { %3457 = vset.pattern.permute.xlu2 %v4016_v17  ;;  %v4321_v17 = vperm.slane %v4174_v26, 0 }
  0x45   : > { %1366 = vperm.xlu2 %3457, %v4137_v0  }
  0x4b   : > { %3459 = vset.pattern.permute.xlu1 %v4018_v19 }
  0x4c   : > { %1468 = vperm.xlu1 %3459, %v4137_v0  }
  0x4d   : > { %3460 = vset.pattern.permute.xlu2 %v4019_v20 }
  0x4e   : > { %468 = vperm.xlu2 %3460, %v4137_v0  }
  0x54   : > { %3461 = vset.pattern.permute.xlu1 %v4021_v22 }
  0x55   : > { %1519 = vperm.xlu1 %3461, %v4137_v0  }
  0x5d   : > { %3462 = vset.pattern.permute.xlu1 %v4022_v23 }
  0x5e   : > { %1570 = vperm.xlu1 %3462, %v4137_v0  }
  0x66   : > { %3463 = vset.pattern.permute.xlu1 %v4023_v24 }
  0x67   : > { %1621 = vperm.xlu1 %3463, %v4137_v0  }
  0x69   : > { %v4217_v42 = vpop.permute.xlu2 %703 }
  0x6a   : > { %v708_v54 = vmul.f32 %v4217_v42, %v4183_v29  ;;  %v711_v57 = vmul.f32 %v4217_v42, %v4202_v36  ;;  %v710_v8 = vmul.f32 %v4217_v42, %v4177_v27  ;;  %v709_v9 = vmul.f32 %v4217_v42, %v4180_v28 }
  0x6b   : > { %v712_v13 = vmul.f32 %v4217_v42, %v4199_v35 }
  0x6f   : > { %3464 = vset.pattern.permute.xlu1 %v4024_v25 }
  0x70   : > { %1672 = vperm.xlu1 %3464, %v4137_v0  }
  0x72   : > { %v4232_v48 = vpop.permute.xlu2 %754 }
  0x73   : > { %v759_v62 = vmul.f32 %v4232_v48, %v4183_v29  ;;  %v762_v5 = vmul.f32 %v4232_v48, %v4202_v36  ;;  %v761_v18 = vmul.f32 %v4232_v48, %v4177_v27  ;;  %v760_v19 = vmul.f32 %v4232_v48, %v4180_v28 }
  0x74   : > { %v763_v25 = vmul.f32 %v4232_v48, %v4199_v35 }
  0x7b   : > { %v4249_v55 = vpop.permute.xlu2 %856 }
  0x7c   : > { %v862_v26 = vmul.f32 %v4249_v55, %v4180_v28 }
  0x7f   : > { %v4185_v30 = vpop.permute.xlu0 %497  ;;  %v4187_v31 = vpop.permute.xlu1 %601 }
  0x80   : > { %v506_v32 = vmul.f32 %v4185_v30, %v4177_v27  ;;  %v505_v33 = vmul.f32 %v4185_v30, %v4180_v28  ;;  %v504_v34 = vmul.f32 %v4185_v30, %v4183_v29  ;;  %v508_v38 = vmul.f32 %v4199_v35, %v4185_v30 }
  0x81   : > { %v507_v39 = vmul.f32 %v4185_v30, %v4202_v36  ;;  %v608_v45 = vmul.f32 %v4187_v31, %v4177_v27  ;;  %v607_v52 = vmul.f32 %v4187_v31, %v4180_v28  ;;  %v606_v53 = vmul.f32 %v4187_v31, %v4183_v29 }
  0x82   : > { %524 = vrot.lane.b32.xlu1 %v506_v32, %s4025_s25  ;;  %522 = vrot.lane.b32.xlu0 %v505_v33, %s4025_s25  ;;  %v610_v58 = vmul.f32 %v4187_v31, %v4199_v35  ;;  %v609_v59 = vmul.f32 %v4187_v31, %v4202_v36  ;;  %v503_v12 = vmul.f32 %v4185_v30, %v4292_v6 }
  0x83   : > { %520 = vrot.lane.b32.xlu2 %v504_v34, %s4025_s25  ;;  %v502_v24 = vmul.f32 %v4185_v30, %v4321_v17 }
  0x84   : > { %v4265_v60 = vpop.permute.xlu2 %1009 }
  0x88   : > { %v4204_v37 = vpop.permute.xlu0 %550  ;;  %v4212_v41 = vpop.permute.xlu1 %652 }
  0x89   : > { %v557_v40 = vmul.f32 %v4204_v37, %v4177_v27  ;;  %v556_v43 = vmul.f32 %v4204_v37, %v4180_v28  ;;  %v555_v44 = vmul.f32 %v4204_v37, %v4183_v29  ;;  %v659_v47 = vmul.f32 %v4212_v41, %v4177_v27 }
  0x8a   : > { %528 = vrot.lane.b32.xlu0 %v508_v38, %s4025_s25  ;;  %v559_v49 = vmul.f32 %v4204_v37, %v4199_v35  ;;  %v558_v50 = vmul.f32 %v4204_v37, %v4202_v36  ;;  %v658_v63 = vmul.f32 %v4212_v41, %v4180_v28  ;;  %v657_v0 = vmul.f32 %v4212_v41, %v4183_v29 }
  0x8b   : > { %526 = vrot.lane.b32.xlu2 %v507_v39, %s4025_s25  ;;  %575 = vrot.lane.b32.xlu1 %v557_v40, %s4026_s26  ;;  %v661_v2 = vmul.f32 %v4212_v41, %v4199_v35  ;;  %v660_v4 = vmul.f32 %v4212_v41, %v4202_v36  ;;  %v554_v10 = vmul.f32 %v4204_v37, %v4292_v6 }
  0x8c   : > { %v553_v20 = vmul.f32 %v4204_v37, %v4321_v17  ;;  %v865_v38 = vmul.f32 %v4249_v55, %v4199_v35 }
  0x8d   : > { %v4278_v1 = vpop.permute.xlu2 %1111 }
  0x91   : > { %v4225_v46 = vpop.permute.xlu1 %805  ;;  %v4334_v22 = vpop.permute.xlu0 %907 }
  0x92   : > { %573 = vrot.lane.b32.xlu0 %v556_v43, %s4026_s26  ;;  %v812_v14 = vmul.f32 %v4225_v46, %v4177_v27  ;;  %v811_v33 = vmul.f32 %v4225_v46, %v4180_v28  ;;  %v810_v37 = vmul.f32 %v4225_v46, %v4183_v29  ;;  %v814_v40 = vmul.f32 %v4225_v46, %v4199_v35 }
  0x93   : > { %571 = vrot.lane.b32.xlu2 %v555_v44, %s4026_s26  ;;  %626 = vrot.lane.b32.xlu1 %v608_v45, %s4027_s27  ;;  %v813_v43 = vmul.f32 %v4225_v46, %v4202_v36  ;;  %v912_v44 = vmul.f32 %v4334_v22, %v4183_v29 }
  0x96   : > { %v4294_v7 = vpop.permute.xlu2 %1264 }
  0x9a   : > { %579 = vrot.lane.b32.xlu0 %v559_v49, %s4026_s26  ;;  %v4239_v51 = vpop.permute.xlu1 %958  ;;  %v4351_v34 = vpop.permute.xlu0 %1162 }
  0x9b   : > { %577 = vrot.lane.b32.xlu2 %v558_v50, %s4026_s26  ;;  %677 = vrot.lane.b32.xlu1 %v659_v47, %s4028_s28  ;;  %v861_v50 = vmul.f32 %v4249_v55, %v4183_v29 }
  0x9f   : > { %v4313_v15 = vpop.permute.xlu2 %1366 }
  0xa2   : > { %624 = vrot.lane.b32.xlu0 %v607_v52, %s4027_s27  ;;  %v605_v52 = vmul.f32 %v4187_v31, %v4292_v6 }
  0xa3   : > { %622 = vrot.lane.b32.xlu2 %v606_v53, %s4027_s27  ;;  %724 = vrot.lane.b32.xlu1 %v708_v54, %s4029_s29  ;;  %v4254_v56 = vpop.permute.xlu1 %1060  ;;  %v4373_v47 = vpop.permute.xlu0 %1417  ;;  %v915_v53 = vmul.f32 %v4334_v22, %v4202_v36 }
  0xa8   : > { %v4332_v21 = vpop.permute.xlu2 %468 }
  0xaa   : > { %630 = vrot.lane.b32.xlu0 %v610_v58, %s4027_s27 }
  0xab   : > { %628 = vrot.lane.b32.xlu2 %v609_v59, %s4027_s27  ;;  %730 = vrot.lane.b32.xlu1 %v711_v57, %s4029_s29  ;;  %v864_v59 = vmul.f32 %v4249_v55, %v4202_v36 }
  0xac   : > { %v4267_v61 = vpop.permute.xlu1 %1213 }
  0xb2   : > { %675 = vrot.lane.b32.xlu0 %v658_v63, %s4028_s28  ;;  %v707_v63 = vmul.f32 %v4217_v42, %v4292_v6 }
  0xb3   : > { %673 = vrot.lane.b32.xlu2 %v657_v0, %s4028_s28  ;;  %775 = vrot.lane.b32.xlu1 %v759_v62, %s4030_s30  ;;  %v863_v62 = vmul.f32 %v4249_v55, %v4177_v27 }
  0xb5   : > { %v4282_v3 = vpop.permute.xlu1 %1315 }
  0xba   : > { %681 = vrot.lane.b32.xlu0 %v661_v2, %s4028_s28 }
  0xbb   : > { %679 = vrot.lane.b32.xlu2 %v660_v4, %s4028_s28  ;;  %781 = vrot.lane.b32.xlu1 %v762_v5, %s4030_s30  ;;  %v656_v5 = vmul.f32 %v4212_v41, %v4292_v6 }
  0xbe   : > { %v4303_v11 = vpop.permute.xlu1 %1468 }
  0xc2   : > { %728 = vrot.lane.b32.xlu0 %v710_v8, %s4029_s29  ;;  %v604_v8 = vmul.f32 %v4187_v31, %v4321_v17  ;;  %v913_v31 = vmul.f32 %v4334_v22, %v4180_v28 }
  0xc3   : > { %726 = vrot.lane.b32.xlu2 %v709_v9, %s4029_s29  ;;  %569 = vrot.lane.b32.xlu1 %v554_v10, %s4026_s26  ;;  %v965_v9 = vmul.f32 %v4239_v51, %v4177_v27 }
  0xc7   : > { %v4318_v16 = vpop.permute.xlu1 %1519 }
  0xca   : > { %518 = vrot.lane.b32.xlu0 %v503_v12, %s4025_s25 }
  0xcb   : > { %732 = vrot.lane.b32.xlu2 %v712_v13, %s4029_s29  ;;  %830 = vrot.lane.b32.xlu1 %v812_v14, %s4031_s12  ;;  %v914_v14 = vmul.f32 %v4334_v22, %v4177_v27 }
  0xd0   : > { %v4336_v23 = vpop.permute.xlu1 %1570 }
  0xd2   : > { %779 = vrot.lane.b32.xlu0 %v761_v18, %s4030_s30  ;;  %v706_v18 = vmul.f32 %v4217_v42, %v4321_v17  ;;  %v1015_v42 = vmul.f32 %v4265_v60, %v4180_v28 }
  0xd3   : > { %777 = vrot.lane.b32.xlu2 %v760_v19, %s4030_s30  ;;  %567 = vrot.lane.b32.xlu1 %v553_v20, %s4026_s26 }
  0xd9   : > { %v4353_v30 = vpop.permute.xlu1 %1621 }
  0xda   : > { %516 = vrot.lane.b32.xlu0 %v502_v24, %s4025_s25 }
  0xdb   : > { %783 = vrot.lane.b32.xlu2 %v763_v25, %s4030_s30  ;;  %879 = vrot.lane.b32.xlu1 %v862_v26, %s4032_s13  ;;  %v655_v25 = vmul.f32 %v4212_v41, %v4321_v17  ;;  %v916_v26 = vmul.f32 %v4334_v22, %v4199_v35  ;;  %v964_v41 = vmul.f32 %v4239_v51, %v4180_v28 }
  0xdd   : > { %v4347_v32 = vpop.permute.xlu2 %520 }
  0xe2   : > { %828 = vrot.lane.b32.xlu0 %v811_v33, %s4031_s12  ;;  %v4371_v45 = vpop.permute.xlu1 %1672 }
  0xe3   : > { %826 = vrot.lane.b32.xlu2 %v810_v37, %s4031_s12  ;;  %885 = vrot.lane.b32.xlu1 %v865_v38, %s4032_s13 }
  0xe5   : > { %v4362_v39 = vpop.permute.xlu2 %526 }
  0xea   : > { %834 = vrot.lane.b32.xlu0 %v814_v40, %s4031_s12  ;;  %v963_v40 = vmul.f32 %v4239_v51, %v4183_v29 }
  0xeb   : > { %832 = vrot.lane.b32.xlu2 %v813_v43, %s4031_s12  ;;  %928 = vrot.lane.b32.xlu1 %v912_v44, %s4033_s14  ;;  %v1018_v43 = vmul.f32 %v4265_v60, %v4199_v35 }
  0xed   : > { %v4377_v49 = vpop.permute.xlu2 %571 }
  0xf2   : > { %877 = vrot.lane.b32.xlu0 %v861_v50, %s4032_s13 }
  0xf3   : > { %620 = vrot.lane.b32.xlu2 %v605_v52, %s4027_s27  ;;  %934 = vrot.lane.b32.xlu1 %v915_v53, %s4033_s14  ;;  %v967_v53 = vmul.f32 %v4239_v51, %v4199_v35 }
  0xf4   : > { %v4388_v54 = vpop.permute.xlu1 %524  ;;  %v4390_v57 = vpop.permute.xlu0 %522 }
  0xf5   : > { %v4392_v58 = vpop.permute.xlu2 %577 }
  0xfa   : > { %883 = vrot.lane.b32.xlu0 %v864_v59, %s4032_s13  ;;  %v966_v59 = vmul.f32 %v4239_v51, %v4202_v36 }
  0xfb   : > { %881 = vrot.lane.b32.xlu2 %v863_v62, %s4032_s13  ;;  %722 = vrot.lane.b32.xlu1 %v707_v63, %s4029_s29  ;;  %v1065_v62 = vmul.f32 %v4254_v56, %v4183_v29 }
  0xfc   : > { %v4403_v0 = vpop.permute.xlu0 %528 }
  0xfd   : > { %v4405_v2 = vpop.permute.xlu2 %622  ;;  %v4407_v4 = vpop.permute.xlu1 %575 }
 0x102   : > { %671 = vrot.lane.b32.xlu0 %v656_v5, %s4028_s28 }
 0x103   : > { %618 = vrot.lane.b32.xlu2 %v604_v8, %s4027_s27  ;;  %983 = vrot.lane.b32.xlu1 %v965_v9, %s4034_s15  ;;  %v1014_v9 = vmul.f32 %v4265_v60, %v4183_v29  ;;  %s4042_s27 = smov 41  }
 0x104   : > { %v4418_v10 = vpop.permute.xlu0 %573 }
 0x105   : > { %v4420_v12 = vpop.permute.xlu2 %628  ;;  %v4422_v13 = vpop.permute.xlu1 %626 }
 0x10a   : > { %932 = vrot.lane.b32.xlu0 %v914_v14, %s4033_s14  ;;  %v758_v14 = vmul.f32 %v4232_v48, %v4292_v6 }
 0x10b   : > { %930 = vrot.lane.b32.xlu2 %v913_v31, %s4033_s14  ;;  %720 = vrot.lane.b32.xlu1 %v706_v18, %s4029_s29  ;;  %v1068_v31 = vmul.f32 %v4254_v56, %v4202_v36 }
 0x10c   : > { %v4433_v19 = vpop.permute.xlu0 %579 }
 0x10d   : > { %v4435_v20 = vpop.permute.xlu2 %673  ;;  %v4437_v24 = vpop.permute.xlu1 %677 }
 0x10e   : > { %6868 = vst [vmem:[#allocation2_spill] sm:$0xff] %v4437_v24  ;;  %v1271_v24 = vmul.f32 %v4294_v7, %v4177_v27 }
 0x112   : > { %669 = vrot.lane.b32.xlu0 %v655_v25, %s4028_s28 }
 0x113   : > { %936 = vrot.lane.b32.xlu2 %v916_v26, %s4033_s14  ;;  %1032 = vrot.lane.b32.xlu1 %v1015_v42, %s4035_s16  ;;  %v1017_v42 = vmul.f32 %v4265_v60, %v4202_v36 }
 0x114   : > { %v4448_v33 = vpop.permute.xlu0 %624 }
 0x115   : > { %v4450_v37 = vpop.permute.xlu2 %679  ;;  %v4452_v38 = vpop.permute.xlu1 %724 }
 0x11a   : > { %981 = vrot.lane.b32.xlu0 %v964_v41, %s4034_s15  ;;  %v1016_v41 = vmul.f32 %v4265_v60, %v4177_v27 }
 0x11b   : > { %979 = vrot.lane.b32.xlu2 %v963_v40, %s4034_s15  ;;  %1038 = vrot.lane.b32.xlu1 %v1018_v43, %s4035_s16  ;;  %v860_v40 = vmul.f32 %v4249_v55, %v4292_v6 }
 0x11c   : > { %v4463_v44 = vpop.permute.xlu0 %630 }
 0x11d   : > { %v4465_v50 = vpop.permute.xlu2 %726  ;;  %v4467_v52 = vpop.permute.xlu1 %730 }
 0x122   : > { %987 = vrot.lane.b32.xlu0 %v967_v53, %s4034_s15 }
 0x123   : > { %985 = vrot.lane.b32.xlu2 %v966_v59, %s4034_s15  ;;  %1081 = vrot.lane.b32.xlu1 %v1065_v62, %s4036_s19  ;;  %v809_v62 = vmul.f32 %v4225_v46, %v4292_v6 }
 0x124   : > { %v4478_v63 = vpop.permute.xlu0 %675 }
 0x125   : > { %v4480_v5 = vpop.permute.xlu2 %732  ;;  %v4482_v8 = vpop.permute.xlu1 %775 }
 0x12a   : > { %1030 = vrot.lane.b32.xlu0 %v1014_v9, %s4035_s16  ;;  %v757_v9 = vmul.f32 %v4232_v48, %v4321_v17  ;;  %v1066_v48 = vmul.f32 %v4254_v56, %v4180_v28 }
 0x12b   : > { %773 = vrot.lane.b32.xlu2 %v758_v14, %s4030_s30  ;;  %1087 = vrot.lane.b32.xlu1 %v1068_v31, %s4036_s19  ;;  %v1118_v14 = vmul.f32 %v4278_v1, %v4177_v27 }
 0x12c   : > { %v4493_v18 = vpop.permute.xlu0 %681 }
 0x12d   : > { %v4495_v25 = vpop.permute.xlu2 %777  ;;  %v4497_v26 = vpop.permute.xlu1 %781 }
 0x132   : > { %1036 = vrot.lane.b32.xlu0 %v1017_v42, %s4035_s16 }
 0x133   : > { %1034 = vrot.lane.b32.xlu2 %v1016_v41, %s4035_s16  ;;  %875 = vrot.lane.b32.xlu1 %v860_v40, %s4032_s13  ;;  %v1067_v40 = vmul.f32 %v4254_v56, %v4177_v27 }
 0x134   : > { %v4508_v43 = vpop.permute.xlu0 %728 }
 0x135   : > { %6869 = vst [vmem:[#allocation3_spill] sm:$0xff] %v4508_v43  ;;  %v4510_v53 = vpop.permute.xlu2 %783  ;;  %v4512_v59 = vpop.permute.xlu1 %569  ;;  %v1218_v43 = vmul.f32 %v4267_v61, %v4183_v29 }
 0x136   : > { %6870 = vst [vmem:[#allocation4_spill] sm:$0xff] %v4512_v59 }
 0x13a   : > { %824 = vrot.lane.b32.xlu0 %v809_v62, %s4031_s12  ;;  %v859_v62 = vmul.f32 %v4249_v55, %v4321_v17  ;;  %v1168_v55 = vmul.f32 %v4351_v34, %v4180_v28 }
 0x13b   : > { %771 = vrot.lane.b32.xlu2 %v757_v9, %s4030_s30  ;;  %1136 = vrot.lane.b32.xlu1 %v1118_v14, %s4037_s20 }
 0x13c   : > { %v4523_v31 = vpop.permute.xlu0 %518 }
 0x13d   : > { %6871 = vst [vmem:[#allocation5_spill] sm:$0xff] %v4523_v31  ;;  %v4525_v42 = vpop.permute.xlu2 %826  ;;  %v4527_v41 = vpop.permute.xlu1 %830  ;;  %v808_v31 = vmul.f32 %v4225_v46, %v4321_v17  ;;  %v1117_v46 = vmul.f32 %v4278_v1, %v4180_v28 }
 0x13e   : > { %6872 = vst [vmem:[#allocation6_spill] sm:$0xff] %v4525_v42 }
 0x13f   : > { %6873 = vst [vmem:[#allocation7_spill] sm:$0xff] %v4527_v41  ;;  %v1069_v41 = vmul.f32 %v4254_v56, %v4199_v35 }
 0x142   : > { %1085 = vrot.lane.b32.xlu0 %v1067_v40, %s4036_s19 }
 0x143   : > { %1083 = vrot.lane.b32.xlu2 %v1066_v48, %s4036_s19  ;;  %873 = vrot.lane.b32.xlu1 %v859_v62, %s4032_s13  ;;  %s4044_s13 = smov 16  }
 0x144   : > { %v4538_v9 = vpop.permute.xlu0 %779 }
 0x145   : > { %6874 = vst [vmem:[#allocation8_spill] sm:$0xff] %v4538_v9  ;;  %v4540_v14 = vpop.permute.xlu2 %832  ;;  %v4542_v59 = vpop.permute.xlu1 %567  ;;  %v1119_v9 = vmul.f32 %v4278_v1, %v4202_v36 }
 0x146   : > { %6875 = vst [vmem:[#allocation9_spill] sm:$0xff] %v4540_v14  ;;  %v1169_v14 = vmul.f32 %v4351_v34, %v4177_v27 }
 0x147   : > { %6876 = vst [vmem:[#allocation10_spill] sm:$0xff] %v4542_v59  ;;  %v1116_v59 = vmul.f32 %v4278_v1, %v4183_v29 }
 0x14a   : > { %822 = vrot.lane.b32.xlu0 %v808_v31, %s4031_s12  ;;  %v1171_v31 = vmul.f32 %v4351_v34, %v4199_v35  ;;  %s6840_s12 = smov 40  }
 0x14b   : > { %1089 = vrot.lane.b32.xlu2 %v1069_v41, %s4036_s19  ;;  %1185 = vrot.lane.b32.xlu1 %v1168_v55, %s4038_s21 }
 0x14c   : > { %v4553_v40 = vpop.permute.xlu0 %516 }
 0x14d   : > { %6877 = vst [vmem:[#allocation11_spill] sm:$0xff] %v4553_v40  ;;  %v4555_v48 = vpop.permute.xlu2 %620  ;;  %v4557_v62 = vpop.permute.xlu1 %879  ;;  %v1120_v40 = vmul.f32 %v4278_v1, %v4199_v35 }
 0x14e   : > { %6878 = vst [vmem:[#allocation12_spill] sm:$0xff] %v4555_v48 }
 0x152   : > { %1134 = vrot.lane.b32.xlu0 %v1117_v46, %s4037_s20 }
 0x153   : > { %1132 = vrot.lane.b32.xlu2 %v1116_v59, %s4037_s20  ;;  %1191 = vrot.lane.b32.xlu1 %v1171_v31, %s4038_s21 }
 0x154   : > { %v4568_v41 = vpop.permute.xlu0 %828 }
 0x155   : > { %v4570_v55 = vpop.permute.xlu2 %881  ;;  %v4572_v48 = vpop.permute.xlu1 %885 }
 0x156   : > { %6879 = vst [vmem:[#allocation13_spill] sm:$0xff] %v4570_v55  ;;  %v1167_v55 = vmul.f32 %v4351_v34, %v4183_v29 }
 0x157   : > { %6880 = vst [vmem:[#allocation14_spill] sm:$0xff] %v4572_v48  ;;  %v911_v48 = vmul.f32 %v4334_v22, %v4292_v6 }
 0x15a   : > { %1140 = vrot.lane.b32.xlu0 %v1120_v40, %s4037_s20  ;;  %v1221_v40 = vmul.f32 %v4267_v61, %v4202_v36 }
 0x15b   : > { %1138 = vrot.lane.b32.xlu2 %v1119_v9, %s4037_s20  ;;  %1234 = vrot.lane.b32.xlu1 %v1218_v43, %s4039_s22 }
 0x15c   : > { %v4583_v59 = vpop.permute.xlu0 %834 }
 0x15d   : > { %6881 = vst [vmem:[#allocation15_spill] sm:$0xff] %v4583_v59  ;;  %v4585_v46 = vpop.permute.xlu2 %618  ;;  %v4587_v31 = vpop.permute.xlu1 %928  ;;  %v1013_v59 = vmul.f32 %v4265_v60, %v4292_v6 }
 0x15e   : > { %6882 = vst [vmem:[#allocation16_spill] sm:$0xff] %v4585_v46 }
 0x15f   : > { %6883 = vst [vmem:[#allocation17_spill] sm:$0xff] %v4587_v31  ;;  %v1170_v31 = vmul.f32 %v4351_v34, %v4202_v36 }
 0x162   : > { %1183 = vrot.lane.b32.xlu0 %v1167_v55, %s4038_s21 }
 0x163   : > { %926 = vrot.lane.b32.xlu2 %v911_v48, %s4033_s14  ;;  %1240 = vrot.lane.b32.xlu1 %v1221_v40, %s4039_s22 }
 0x164   : > { %v4598_v43 = vpop.permute.xlu0 %877 }
 0x165   : > { %v4600_v9 = vpop.permute.xlu2 %930  ;;  %v4602_v46 = vpop.permute.xlu1 %934 }
 0x166   : > { %6884 = vst [vmem:[#allocation18_spill] sm:$0xff] %v4600_v9  ;;  %v910_v9 = vmul.f32 %v4334_v22, %v4321_v17  ;;  %v1219_v22 = vmul.f32 %v4267_v61, %v4180_v28 }
 0x167   : > { %6885 = vst [vmem:[#allocation19_spill] sm:$0xff] %v4602_v46  ;;  %v962_v46 = vmul.f32 %v4239_v51, %v4292_v6 }
 0x16a   : > { %1189 = vrot.lane.b32.xlu0 %v1170_v31, %s4038_s21 }
 0x16b   : > { %1187 = vrot.lane.b32.xlu2 %v1169_v14, %s4038_s21  ;;  %1028 = vrot.lane.b32.xlu1 %v1013_v59, %s4035_s16 }
 0x16c   : > { %v4613_v48 = vpop.permute.xlu0 %883 }
 0x16d   : > { %v4615_v55 = vpop.permute.xlu2 %936  ;;  %v4617_v40 = vpop.permute.xlu1 %722 }
 0x16e   : > { %6886 = vst [vmem:[#allocation20_spill] sm:$0xff] %v4615_v55  ;;  %v1222_v55 = vmul.f32 %v4267_v61, %v4199_v35 }
 0x16f   : > { %6887 = vst [vmem:[#allocation21_spill] sm:$0xff] %v4617_v40  ;;  %v1220_v40 = vmul.f32 %v4267_v61, %v4177_v27 }
 0x172   : > { %977 = vrot.lane.b32.xlu0 %v962_v46, %s4034_s15  ;;  %v1012_v46 = vmul.f32 %v4265_v60, %v4321_v17  ;;  %v1321_v60 = vmul.f32 %v4282_v3, %v4180_v28 }
 0x173   : > { %924 = vrot.lane.b32.xlu2 %v910_v9, %s4033_s14  ;;  %1289 = vrot.lane.b32.xlu1 %v1271_v24, %s4040_s23  ;;  %s4045_s14 = smov 15  }
 0x174   : > { %v4628_v14 = vpop.permute.xlu0 %671 }
 0x175   : > { %6888 = vst [vmem:[#allocation22_spill] sm:$0xff] %v4628_v14  ;;  %v4630_v59 = vpop.permute.xlu2 %979  ;;  %v4632_v31 = vpop.permute.xlu1 %983 }
 0x176   : > { %6889 = vst [vmem:[#allocation23_spill] sm:$0xff] %v4632_v31  ;;  %v961_v31 = vmul.f32 %v4239_v51, %v4321_v17  ;;  %v1270_v51 = vmul.f32 %v4294_v7, %v4180_v28 }
 0x17a   : > { %1238 = vrot.lane.b32.xlu0 %v1220_v40, %s4039_s22 }
 0x17b   : > { %1236 = vrot.lane.b32.xlu2 %v1219_v22, %s4039_s22  ;;  %1026 = vrot.lane.b32.xlu1 %v1012_v46, %s4035_s16  ;;  %s4046_s16 = smov 14  }
 0x17c   : > { %v4643_v24 = vpop.permute.xlu0 %932 }
 0x17d   : > { %6890 = vst [vmem:[#allocation24_spill] sm:$0xff] %v4643_v24  ;;  %v4645_v9 = vpop.permute.xlu2 %985  ;;  %v4647_v14 = vpop.permute.xlu1 %720  ;;  %v1272_v24 = vmul.f32 %v4294_v7, %v4202_v36 }
 0x17e   : > { %6891 = vst [vmem:[#allocation25_spill] sm:$0xff] %v4645_v9  ;;  %v1371_v9 = vmul.f32 %v4313_v15, %v4183_v29 }
 0x17f   : > { %6892 = vst [vmem:[#allocation26_spill] sm:$0xff] %v4647_v14  ;;  %v1269_v14 = vmul.f32 %v4294_v7, %v4183_v29 }
 0x182   : > { %975 = vrot.lane.b32.xlu0 %v961_v31, %s4034_s15  ;;  %v1324_v31 = vmul.f32 %v4282_v3, %v4199_v35 }
 0x183   : > { %1242 = vrot.lane.b32.xlu2 %v1222_v55, %s4039_s22  ;;  %1338 = vrot.lane.b32.xlu1 %v1321_v60, %s4041_s24 }
 0x184   : > { %v4658_v40 = vpop.permute.xlu0 %669 }
 0x185   : > { %6893 = vst [vmem:[#allocation27_spill] sm:$0xff] %v4658_v40  ;;  %v4660_v22 = vpop.permute.xlu2 %773  ;;  %v4662_v46 = vpop.permute.xlu1 %1032  ;;  %v1273_v40 = vmul.f32 %v4294_v7, %v4199_v35 }
 0x186   : > { %6894 = vst [vmem:[#allocation28_spill] sm:$0xff] %v4660_v22 }
 0x187   : > { %6895 = vst [vmem:[#allocation29_spill] sm:$0xff] %v4662_v46  ;;  %v1166_v46 = vmul.f32 %v4351_v34, %v4292_v6 }
 0x18a   : > { %1287 = vrot.lane.b32.xlu0 %v1270_v51, %s4040_s23 }
 0x18b   : > { %1285 = vrot.lane.b32.xlu2 %v1269_v14, %s4040_s23  ;;  %1344 = vrot.lane.b32.xlu1 %v1324_v31, %s4041_s24 }
 0x18c   : > { %v4673_v55 = vpop.permute.xlu0 %981 }
 0x18d   : > { %v4675_v60 = vpop.permute.xlu2 %1034  ;;  %v4677_v22 = vpop.permute.xlu1 %1038 }
 0x18e   : > { %6896 = vst [vmem:[#allocation30_spill] sm:$0xff] %v4675_v60  ;;  %v1320_v60 = vmul.f32 %v4282_v3, %v4183_v29 }
 0x18f   : > { %6897 = vst [vmem:[#allocation31_spill] sm:$0xff] %v4677_v22  ;;  %v1064_v22 = vmul.f32 %v4254_v56, %v4292_v6 }
 0x192   : > { %1293 = vrot.lane.b32.xlu0 %v1273_v40, %s4040_s23  ;;  %v1374_v40 = vmul.f32 %v4313_v15, %v4202_v36 }
 0x193   : > { %1291 = vrot.lane.b32.xlu2 %v1272_v24, %s4040_s23  ;;  %1387 = vrot.lane.b32.xlu1 %v1371_v9, %s4042_s27 }
 0x194   : > { %v4688_v14 = vpop.permute.xlu0 %987 }
 0x195   : > { %6898 = vst [vmem:[#allocation32_spill] sm:$0xff] %v4688_v14  ;;  %v4690_v51 = vpop.permute.xlu2 %771  ;;  %v4692_v31 = vpop.permute.xlu1 %1081  ;;  %v1322_v14 = vmul.f32 %v4282_v3, %v4177_v27 }
 0x196   : > { %6899 = vst [vmem:[#allocation33_spill] sm:$0xff] %v4690_v51 }
 0x197   : > { %6900 = vst [vmem:[#allocation34_spill] sm:$0xff] %v4692_v31  ;;  %v1323_v31 = vmul.f32 %v4282_v3, %v4202_v36 }
 0x19a   : > { %1336 = vrot.lane.b32.xlu0 %v1320_v60, %s4041_s24 }
 0x19b   : > { %1079 = vrot.lane.b32.xlu2 %v1064_v22, %s4036_s19  ;;  %1393 = vrot.lane.b32.xlu1 %v1374_v40, %s4042_s27 }
 0x19c   : > { %v4703_v24 = vpop.permute.xlu0 %1030 }
 0x19d   : > { %6901 = vst [vmem:[#allocation35_spill] sm:$0xff] %v4703_v24  ;;  %v4705_v9 = vpop.permute.xlu2 %1083  ;;  %v4707_v51 = vpop.permute.xlu1 %1087  ;;  %v1424_v24 = vmul.f32 %v4373_v47, %v4177_v27 }
 0x19e   : > { %6902 = vst [vmem:[#allocation36_spill] sm:$0xff] %v4705_v9  ;;  %v1063_v9 = vmul.f32 %v4254_v56, %v4321_v17  ;;  %v1372_v56 = vmul.f32 %v4313_v15, %v4180_v28 }
 0x19f   : > { %6903 = vst [vmem:[#allocation37_spill] sm:$0xff] %v4707_v51  ;;  %v1115_v51 = vmul.f32 %v4278_v1, %v4292_v6 }
 0x1a2   : > { %1342 = vrot.lane.b32.xlu0 %v1323_v31, %s4041_s24 }
 0x1a3   : > { %1340 = vrot.lane.b32.xlu2 %v1322_v14, %s4041_s24  ;;  %1181 = vrot.lane.b32.xlu1 %v1166_v46, %s4038_s21 }
 0x1a4   : > { %v4718_v22 = vpop.permute.xlu0 %1036 }
 0x1a5   : > { %v4720_v60 = vpop.permute.xlu2 %1089  ;;  %v4722_v40 = vpop.permute.xlu1 %875 }
 0x1a6   : > { %6904 = vst [vmem:[#allocation38_spill] sm:$0xff] %v4720_v60  ;;  %v1375_v60 = vmul.f32 %v4313_v15, %v4199_v35 }
 0x1a7   : > { %6905 = vst [vmem:[#allocation39_spill] sm:$0xff] %v4722_v40  ;;  %v1373_v40 = vmul.f32 %v4313_v15, %v4177_v27 }
 0x1aa   : > { %1130 = vrot.lane.b32.xlu0 %v1115_v51, %s4037_s20  ;;  %v1165_v51 = vmul.f32 %v4351_v34, %v4321_v17  ;;  %v1474_v34 = vmul.f32 %v4303_v11, %v4180_v28 }
 0x1ab   : > { %1077 = vrot.lane.b32.xlu2 %v1063_v9, %s4036_s19  ;;  %1442 = vrot.lane.b32.xlu1 %v1424_v24, %s6840_s12 }
 0x1ac   : > { %v4733_v46 = vpop.permute.xlu0 %824 }
 0x1ad   : > { %6906 = vst [vmem:[#allocation40_spill] sm:$0xff] %v4733_v46  ;;  %v4735_v14 = vpop.permute.xlu2 %1132  ;;  %v4737_v31 = vpop.permute.xlu1 %1136 }
 0x1ae   : > { %6907 = vst [vmem:[#allocation41_spill] sm:$0xff] %v4735_v14 }
 0x1af   : > { %6908 = vst [vmem:[#allocation42_spill] sm:$0xff] %v4737_v31  ;;  %v1114_v31 = vmul.f32 %v4278_v1, %v4321_v17  ;;  %v1423_v1 = vmul.f32 %v4373_v47, %v4180_v28 }
 0x1b2   : > { %1391 = vrot.lane.b32.xlu0 %v1373_v40, %s4042_s27 }
 0x1b3   : > { %1389 = vrot.lane.b32.xlu2 %v1372_v56, %s4042_s27  ;;  %1179 = vrot.lane.b32.xlu1 %v1165_v51, %s4038_s21 }
 0x1b4   : > { %v4748_v24 = vpop.permute.xlu0 %1085 }
 0x1b5   : > { %6909 = vst [vmem:[#allocation43_spill] sm:$0xff] %v4748_v24  ;;  %v4750_v9 = vpop.permute.xlu2 %1138  ;;  %v4752_v46 = vpop.permute.xlu1 %873  ;;  %v1425_v24 = vmul.f32 %v4373_v47, %v4202_v36 }
 0x1b6   : > { %6910 = vst [vmem:[#allocation44_spill] sm:$0xff] %v4750_v9  ;;  %v1524_v9 = vmul.f32 %v4318_v16, %v4183_v29 }
 0x1b7   : > { %6911 = vst [vmem:[#allocation45_spill] sm:$0xff] %v4752_v46  ;;  %v1422_v46 = vmul.f32 %v4373_v47, %v4183_v29 }
 0x1ba   : > { %1128 = vrot.lane.b32.xlu0 %v1114_v31, %s4037_s20  ;;  %v1477_v31 = vmul.f32 %v4303_v11, %v4199_v35  ;;  %s4047_s20 = smov 13  }
 0x1bb   : > { %1395 = vrot.lane.b32.xlu2 %v1375_v60, %s4042_s27  ;;  %1491 = vrot.lane.b32.xlu1 %v1474_v34, %s4044_s13 }
 0x1bc   : > { %v4763_v40 = vpop.permute.xlu0 %822 }
 0x1bd   : > { %6912 = vst [vmem:[#allocation46_spill] sm:$0xff] %v4763_v40  ;;  %v4765_v56 = vpop.permute.xlu2 %926  ;;  %v4767_v51 = vpop.permute.xlu1 %1185  ;;  %v1426_v40 = vmul.f32 %v4373_v47, %v4199_v35 }
 0x1be   : > { %6913 = vst [vmem:[#allocation47_spill] sm:$0xff] %v4765_v56 }
 0x1bf   : > { %6914 = vst [vmem:[#allocation48_spill] sm:$0xff] %v4767_v51  ;;  %v1319_v51 = vmul.f32 %v4282_v3, %v4292_v6 }
 0x1c2   : > { %1440 = vrot.lane.b32.xlu0 %v1423_v1, %s6840_s12 }
 0x1c3   : > { %1438 = vrot.lane.b32.xlu2 %v1422_v46, %s6840_s12  ;;  %1497 = vrot.lane.b32.xlu1 %v1477_v31, %s4044_s13 }
 0x1c4   : > { %v4778_v60 = vpop.permute.xlu0 %1134 }
 0x1c5   : > { %v4780_v34 = vpop.permute.xlu2 %1187  ;;  %v4782_v56 = vpop.permute.xlu1 %1191 }
 0x1c6   : > { %6915 = vst [vmem:[#allocation49_spill] sm:$0xff] %v4780_v34  ;;  %v1473_v34 = vmul.f32 %v4303_v11, %v4183_v29 }
 0x1c7   : > { %6916 = vst [vmem:[#allocation50_spill] sm:$0xff] %v4782_v56  ;;  %v1217_v56 = vmul.f32 %v4267_v61, %v4292_v6 }
 0x1ca   : > { %1446 = vrot.lane.b32.xlu0 %v1426_v40, %s6840_s12  ;;  %v1527_v40 = vmul.f32 %v4318_v16, %v4202_v36 }
 0x1cb   : > { %1444 = vrot.lane.b32.xlu2 %v1425_v24, %s6840_s12  ;;  %1540 = vrot.lane.b32.xlu1 %v1524_v9, %s4045_s14 }
 0x1cc   : > { %v4793_v46 = vpop.permute.xlu0 %1140 }
 0x1cd   : > { %6917 = vst [vmem:[#allocation51_spill] sm:$0xff] %v4793_v46  ;;  %v4795_v1 = vpop.permute.xlu2 %924  ;;  %v4797_v31 = vpop.permute.xlu1 %1234  ;;  %v1475_v46 = vmul.f32 %v4303_v11, %v4177_v27 }
 0x1ce   : > { %6918 = vst [vmem:[#allocation52_spill] sm:$0xff] %v4795_v1 }
 0x1cf   : > { %6919 = vst [vmem:[#allocation53_spill] sm:$0xff] %v4797_v31  ;;  %v1476_v31 = vmul.f32 %v4303_v11, %v4202_v36 }
 0x1d2   : > { %1489 = vrot.lane.b32.xlu0 %v1473_v34, %s4044_s13 }
 0x1d3   : > { %1232 = vrot.lane.b32.xlu2 %v1217_v56, %s4039_s22  ;;  %1546 = vrot.lane.b32.xlu1 %v1527_v40, %s4045_s14 }
 0x1d4   : > { %v4808_v24 = vpop.permute.xlu0 %1183 }
 0x1d5   : > { %6920 = vst [vmem:[#allocation54_spill] sm:$0xff] %v4808_v24  ;;  %v4810_v9 = vpop.permute.xlu2 %1236  ;;  %v4812_v1 = vpop.permute.xlu1 %1240  ;;  %v1577_v24 = vmul.f32 %v4336_v23, %v4177_v27 }
 0x1d6   : > { %6921 = vst [vmem:[#allocation55_spill] sm:$0xff] %v4810_v9  ;;  %v1216_v9 = vmul.f32 %v4267_v61, %v4321_v17  ;;  %v1525_v61 = vmul.f32 %v4318_v16, %v4180_v28 }
 0x1d7   : > { %6922 = vst [vmem:[#allocation56_spill] sm:$0xff] %v4812_v1  ;;  %v1268_v1 = vmul.f32 %v4294_v7, %v4292_v6 }
 0x1da   : > { %1495 = vrot.lane.b32.xlu0 %v1476_v31, %s4044_s13 }
 0x1db   : > { %1493 = vrot.lane.b32.xlu2 %v1475_v46, %s4044_s13  ;;  %1334 = vrot.lane.b32.xlu1 %v1319_v51, %s4041_s24 }
 0x1dc   : > { %v4823_v56 = vpop.permute.xlu0 %1189 }
 0x1dd   : > { %v4825_v34 = vpop.permute.xlu2 %1242  ;;  %v4827_v40 = vpop.permute.xlu1 %1028 }
 0x1de   : > { %6923 = vst [vmem:[#allocation57_spill] sm:$0xff] %v4825_v34  ;;  %v1528_v34 = vmul.f32 %v4318_v16, %v4199_v35 }
 0x1df   : > { %6924 = vst [vmem:[#allocation58_spill] sm:$0xff] %v4827_v40  ;;  %v1526_v40 = vmul.f32 %v4318_v16, %v4177_v27 }
 0x1e2   : > { %1283 = vrot.lane.b32.xlu0 %v1268_v1, %s4040_s23  ;;  %v1318_v1 = vmul.f32 %v4282_v3, %v4321_v17  ;;  %v1627_v3 = vmul.f32 %v4353_v30, %v4180_v28 }
 0x1e3   : > { %1230 = vrot.lane.b32.xlu2 %v1216_v9, %s4039_s22  ;;  %1595 = vrot.lane.b32.xlu1 %v1577_v24, %s4046_s16 }
 0x1e4   : > { %v4838_v51 = vpop.permute.xlu0 %977 }
 0x1e5   : > { %6925 = vst [vmem:[#allocation59_spill] sm:$0xff] %v4838_v51  ;;  %v4840_v46 = vpop.permute.xlu2 %1285  ;;  %v4842_v31 = vpop.permute.xlu1 %1289 }
 0x1e6   : > { %6926 = vst [vmem:[#allocation60_spill] sm:$0xff] %v4840_v46 }
 0x1e7   : > { %6927 = vst [vmem:[#allocation61_spill] sm:$0xff] %v4842_v31  ;;  %v1267_v31 = vmul.f32 %v4294_v7, %v4321_v17  ;;  %v1576_v7 = vmul.f32 %v4336_v23, %v4180_v28 }
 0x1ea   : > { %1544 = vrot.lane.b32.xlu0 %v1526_v40, %s4045_s14 }
 0x1eb   : > { %1542 = vrot.lane.b32.xlu2 %v1525_v61, %s4045_s14  ;;  %1332 = vrot.lane.b32.xlu1 %v1318_v1, %s4041_s24  ;;  %s4054_s24 = smov 10  }
 0x1ec   : > { %v4853_v24 = vpop.permute.xlu0 %1238 }
 0x1ed   : > { %6928 = vst [vmem:[#allocation62_spill] sm:$0xff] %v4853_v24  ;;  %v4855_v9 = vpop.permute.xlu2 %1291  ;;  %v4857_v51 = vpop.permute.xlu1 %1026  ;;  %v1578_v24 = vmul.f32 %v4336_v23, %v4202_v36 }
 0x1ee   : > { %6929 = vst [vmem:[#allocation63_spill] sm:$0xff] %v4855_v9  ;;  %v1677_v9 = vmul.f32 %v4371_v45, %v4183_v29 }
 0x1ef   : > { %6930 = vst [vmem:[#allocation64_spill] sm:$0xff] %v4857_v51  ;;  %v1575_v51 = vmul.f32 %v4336_v23, %v4183_v29 }
 0x1f2   : > { %1281 = vrot.lane.b32.xlu0 %v1267_v31, %s4040_s23  ;;  %v1630_v31 = vmul.f32 %v4353_v30, %v4199_v35  ;;  %s4048_s23 = smov 12  }
 0x1f3   : > { %1548 = vrot.lane.b32.xlu2 %v1528_v34, %s4045_s14  ;;  %1644 = vrot.lane.b32.xlu1 %v1627_v3, %s4047_s20 }
 0x1f4   : > { %v4868_v40 = vpop.permute.xlu0 %975 }
 0x1f5   : > { %6931 = vst [vmem:[#allocation65_spill] sm:$0xff] %v4868_v40  ;;  %v4870_v61 = vpop.permute.xlu2 %1079  ;;  %v4872_v1 = vpop.permute.xlu1 %1338  ;;  %v1579_v40 = vmul.f32 %v4336_v23, %v4199_v35 }
 0x1f6   : > { %6932 = vst [vmem:[#allocation66_spill] sm:$0xff] %v4870_v61 }
 0x1f7   : > { %6933 = vst [vmem:[#allocation67_spill] sm:$0xff] %v4872_v1  ;;  %v1472_v1 = vmul.f32 %v4303_v11, %v4292_v6 }
 0x1fa   : > { %1593 = vrot.lane.b32.xlu0 %v1576_v7, %s4046_s16 }
 0x1fb   : > { %1591 = vrot.lane.b32.xlu2 %v1575_v51, %s4046_s16  ;;  %1650 = vrot.lane.b32.xlu1 %v1630_v31, %s4047_s20 }
 0x1fc   : > { %v4883_v34 = vpop.permute.xlu0 %1287 }
 0x1fd   : > { %v4885_v3 = vpop.permute.xlu2 %1340  ;;  %v4887_v61 = vpop.permute.xlu1 %1344 }
 0x1fe   : > { %6934 = vst [vmem:[#allocation68_spill] sm:$0xff] %v4885_v3  ;;  %v1626_v3 = vmul.f32 %v4353_v30, %v4183_v29 }
 0x1ff   : > { %6935 = vst [vmem:[#allocation69_spill] sm:$0xff] %v4887_v61  ;;  %v1370_v61 = vmul.f32 %v4313_v15, %v4292_v6 }
 0x202   : > { %1599 = vrot.lane.b32.xlu0 %v1579_v40, %s4046_s16  ;;  %v1680_v40 = vmul.f32 %v4371_v45, %v4202_v36 }
 0x203   : > { %1597 = vrot.lane.b32.xlu2 %v1578_v24, %s4046_s16  ;;  %1693 = vrot.lane.b32.xlu1 %v1677_v9, %s4048_s23 }
 0x204   : > { %v4898_v51 = vpop.permute.xlu0 %1293 }
 0x205   : > { %6936 = vst [vmem:[#allocation70_spill] sm:$0xff] %v4898_v51  ;;  %v4900_v7 = vpop.permute.xlu2 %1077  ;;  %v4902_v31 = vpop.permute.xlu1 %1387  ;;  %v1628_v51 = vmul.f32 %v4353_v30, %v4177_v27 }
 0x206   : > { %6937 = vst [vmem:[#allocation71_spill] sm:$0xff] %v4900_v7 }
 0x207   : > { %6938 = vst [vmem:[#allocation72_spill] sm:$0xff] %v4902_v31  ;;  %v1629_v31 = vmul.f32 %v4353_v30, %v4202_v36 }
 0x20a   : > { %1642 = vrot.lane.b32.xlu0 %v1626_v3, %s4047_s20 }
 0x20b   : > { %1385 = vrot.lane.b32.xlu2 %v1370_v61, %s4042_s27  ;;  %1699 = vrot.lane.b32.xlu1 %v1680_v40, %s4048_s23 }
 0x20c   : > { %v4913_v24 = vpop.permute.xlu0 %1336 }
 0x20d   : > { %6939 = vst [vmem:[#allocation73_spill] sm:$0xff] %v4913_v24  ;;  %v4915_v9 = vpop.permute.xlu2 %1389  ;;  %v4917_v7 = vpop.permute.xlu1 %1393  ;;  %v1522_v24 = vmul.f32 %v4318_v16, %v4321_v17 }
 0x20e   : > { %6940 = vst [vmem:[#allocation74_spill] sm:$0xff] %v4915_v9  ;;  %v1369_v9 = vmul.f32 %v4313_v15, %v4321_v17  ;;  %v1678_v15 = vmul.f32 %v4371_v45, %v4180_v28 }
 0x20f   : > { %6941 = vst [vmem:[#allocation75_spill] sm:$0xff] %v4917_v7  ;;  %v1421_v7 = vmul.f32 %v4373_v47, %v4292_v6 }
 0x212   : > { %1648 = vrot.lane.b32.xlu0 %v1629_v31, %s4047_s20 }
 0x213   : > { %1646 = vrot.lane.b32.xlu2 %v1628_v51, %s4047_s20  ;;  %1487 = vrot.lane.b32.xlu1 %v1472_v1, %s4044_s13 }
 0x214   : > { %v4928_v61 = vpop.permute.xlu0 %1342 }
 0x215   : > { %6942 = vst [vmem:[#allocation76_spill] sm:$0xff] %v4928_v61  ;;  %v4930_v3 = vpop.permute.xlu2 %1395  ;;  %v4932_v40 = vpop.permute.xlu1 %1181  ;;  %v1675_v61 = vmul.f32 %v4371_v45, %v4321_v17 }
 0x216   : > { %6943 = vst [vmem:[#allocation77_spill] sm:$0xff] %v4930_v3  ;;  %v1625_v3 = vmul.f32 %v4353_v30, %v4292_v6 }
 0x217   : > { %6944 = vst [vmem:[#allocation78_spill] sm:$0xff] %v4932_v40  ;;  %v1679_v40 = vmul.f32 %v4371_v45, %v4177_v27 }
 0x21a   : > { %1436 = vrot.lane.b32.xlu0 %v1421_v7, %s6840_s12 }
 0x21b   : > { %1383 = vrot.lane.b32.xlu2 %v1369_v9, %s4042_s27  ;;  %1536 = vrot.lane.b32.xlu1 %v1522_v24, %s4045_s14  ;;  %s4055_s27 = smov 64  }
 0x21c   : > { %v4943_v1 = vpop.permute.xlu0 %1130 }
 0x21d   : > { %6945 = vst [vmem:[#allocation79_spill] sm:$0xff] %v4943_v1  ;;  %v4945_v51 = vpop.permute.xlu2 %1438  ;;  %v4947_v31 = vpop.permute.xlu1 %1442  ;;  %v1420_v1 = vmul.f32 %v4373_v47, %v4321_v17  ;;  %v1523_v47 = vmul.f32 %v4318_v16, %v4292_v6 }
 0x21e   : > { %6946 = vst [vmem:[#allocation80_spill] sm:$0xff] %v4945_v51 }
 0x21f   : > { %6947 = vst [vmem:[#allocation81_spill] sm:$0xff] %v4947_v31  ;;  %v1681_v31 = vmul.f32 %v4371_v45, %v4199_v35  ;;  %v1471_v35 = vmul.f32 %v4303_v11, %v4321_v17 }
 0x222   : > { %1697 = vrot.lane.b32.xlu0 %v1679_v40, %s4048_s23 }
 0x223   : > { %1695 = vrot.lane.b32.xlu2 %v1678_v15, %s4048_s23  ;;  %1640 = vrot.lane.b32.xlu1 %v1625_v3, %s4047_s20 }
 0x224   : > { %v4958_v7 = vpop.permute.xlu0 %1391 }
 0x225   : > { %6948 = vst [vmem:[#allocation82_spill] sm:$0xff] %v4958_v7  ;;  %v4960_v24 = vpop.permute.xlu2 %1444  ;;  %v4962_v9 = vpop.permute.xlu1 %1179 }
 0x226   : > { %6949 = vst [vmem:[#allocation83_spill] sm:$0xff] %v4962_v9  ;;  %v1573_v9 = vmul.f32 %v4336_v23, %v4321_v17 }
 0x22a   : > { %1434 = vrot.lane.b32.xlu0 %v1420_v1, %s6840_s12  ;;  %s4056_s12 = smov 120  }
 0x22b   : > { %1701 = vrot.lane.b32.xlu2 %v1681_v31, %s4048_s23  ;;  %1689 = vrot.lane.b32.xlu1 %v1675_v61, %s4048_s23 }
 0x22c   : > { %v4973_v3 = vpop.permute.xlu0 %1128 }
 0x22d   : > { %6950 = vst [vmem:[#allocation84_spill] sm:$0xff] %v4973_v3  ;;  %v4975_v40 = vpop.permute.xlu2 %1232  ;;  %v4977_v15 = vpop.permute.xlu1 %1491  ;;  %v1624_v3 = vmul.f32 %v4353_v30, %v4321_v17 }
 0x22e   : > { %6951 = vst [vmem:[#allocation85_spill] sm:$0xff] %v4975_v40  ;;  %v1574_v40 = vmul.f32 %v4336_v23, %v4292_v6  ;;  %v533_v23 = vsel %vm6826_vm0, %v4347_v32, %v4390_v57 }
 0x232   : > { %1538 = vrot.lane.b32.xlu0 %v1523_v47, %s4045_s14  ;;  %s4052_s14 = smov 122  }
 0x233   : > { %1485 = vrot.lane.b32.xlu2 %v1471_v35, %s4044_s13  ;;  %v1676_v35 = vmul.f32 %v4371_v45, %v4292_v6  ;;  %v584_v45 = vsel %vm6830_vm1, %v4377_v49, %v4418_v10 }
 0x234   : > { %v4985_v1 = vpop.permute.xlu0 %1440 }
 0x235   : > { %v4987_v31 = vpop.permute.xlu2 %1493  ;;  %v4989_v61 = vpop.permute.xlu1 %1497 }
 0x236   : > { %6952 = vst [vmem:[#allocation86_spill] sm:$0xff] %v4987_v31 }
 0x237   : > { %6953 = vst [vmem:[#allocation87_spill] sm:$0xff] %v4989_v61  ;;  %v536_v61 = vsel %vm6826_vm0, %v4362_v39, %v4403_v0  ;;  %v488_v0 = vmul.f32 %v4177_v27, %v4332_v21  ;;  %v487_v27 = vmul.f32 %v4180_v28, %v4332_v21 }
 0x23a   : > { %1587 = vrot.lane.b32.xlu0 %v1573_v9, %s4046_s16  ;;  %v486_v9 = vmul.f32 %v4183_v29, %v4332_v21  ;;  %v686_v29 = vsel %vm6838_vm3, %v4435_v20, %v4478_v63 }
 0x23b   : > { %1589 = vrot.lane.b32.xlu2 %v1574_v40, %s4046_s16 }
 0x23c   : > { %v4997_v11 = vpop.permute.xlu0 %1446 }
 0x23d   : > { %v4999_v16 = vpop.permute.xlu2 %1230  ;;  %v5001_v47 = vpop.permute.xlu1 %1540 }
 0x23e   : > { %6954 = vst [vmem:[#allocation88_spill] sm:$0xff] %v4999_v16 }
 0x23f   : > { %6955 = vst [vmem:[#allocation89_spill] sm:$0xff] %v5001_v47 }
 0x242   : > { %1691 = vrot.lane.b32.xlu0 %v1676_v35, %s4048_s23  ;;  %v545_v35 = vadd.f32 %v533_v23, %v486_v9 }
 0x243   : > { %1638 = vrot.lane.b32.xlu2 %v1624_v3, %s4047_s20  ;;  %v635_v3 = vsel %vm632_vm2, %v4405_v2, %v4448_v33  ;;  %s4053_s20 = smov 8  }
 0x244   : > { %v5014_v40 = vpop.permute.xlu0 %1489  ;;  %v596_v31 = vadd.f32 %v584_v45, %v545_v35  ;;  %v587_v45 = vsel %vm6830_vm1, %v4392_v58, %v4433_v19  ;;  %v788_v19 = vsel %vm6839_vm5, %v4482_v8, %v4495_v25 }
 0x245   : > { %6956 = vst [vmem:[#allocation90_spill] sm:$0xff] %v5014_v40  ;;  %v5019_v16 = vpop.permute.xlu2 %1542  ;;  %v5021_v30 = vpop.permute.xlu1 %1546 }
 0x246   : > { %6957 = vst [vmem:[#allocation91_spill] sm:$0xff] %v5021_v30  ;;  %v647_v7 = vadd.f32 %v635_v3, %v596_v31  ;;  %v489_v30 = vmul.f32 %v4202_v36, %v4332_v21  ;;  %v638_v36 = vsel %vm632_vm2, %v4420_v12, %v4463_v44  ;;  %v535_v3 = vsel %vm6826_vm0, %v4388_v54, %v4362_v39 }
 0x247   : > { %v534_v44 = vsel %vm6826_vm0, %v4390_v57, %v4388_v54  ;;  %v586_v39 = vsel %vm6830_vm1, %v4407_v4, %v4392_v58  ;;  %v547_v28 = vadd.f32 %v535_v3, %v488_v0  ;;  %v585_v54 = vsel %vm6830_vm1, %v4418_v10, %v4407_v4 }
 0x248   : > { %v698_v23 = vadd.f32 %v686_v29, %v647_v7  ;;  %v548_v31 = vadd.f32 %v536_v61, %v489_v30  ;;  %v737_v7 = vsel %vm734_vm4, %v4452_v38, %v4465_v50  ;;  %v689_v29 = vsel %vm6838_vm3, %v4450_v37, %v4493_v18 }
 0x249   : > { %v890_v57 = vsel %vm887_vm7, %v4598_v43, %v4557_v62  ;;  %v546_v18 = vadd.f32 %v534_v44, %v487_v27  ;;  %v636_v0 = vsel %vm632_vm2, %v4448_v33, %v4422_v13  ;;  %v6960_v27 = vld [vmem:[#allocation2_spill] sm:$0xff]  ;;  %v6961_v44 = vld [vmem:[#allocation15_spill] sm:$0xff] }
 0x24a   : > { %v599_v61 = vadd.f32 %v587_v45, %v548_v31  ;;  %v749_v30 = vadd.f32 %v737_v7, %v698_v23  ;;  %v637_v31 = vsel %vm632_vm2, %v4422_v13, %v4420_v12  ;;  %v740_v12 = vsel %vm734_vm4, %v4467_v52, %v4480_v5  ;;  %v6963_v5 = vld [vmem:[#allocation18_spill] sm:$0xff] }
 0x24b   : > { %v597_v10 = vadd.f32 %v585_v54, %v546_v18  ;;  %v687_v13 = vsel %vm6838_vm3, %v4478_v63, %v6960_v27 }
 0x24c   : > { %v5034_v9 = vpop.permute.xlu0 %1495  ;;  %v650_v23 = vadd.f32 %v638_v36, %v599_v61  ;;  %v800_v45 = vadd.f32 %v788_v19, %v749_v30  ;;  %v598_v36 = vadd.f32 %v586_v39, %v547_v28  ;;  %v6965_v28 = vld [vmem:[#allocation3_spill] sm:$0xff] }
 0x24d   : > { %v5039_v35 = vpop.permute.xlu2 %1548  ;;  %v5041_v47 = vpop.permute.xlu1 %1334  ;;  %v648_v30 = vadd.f32 %v636_v0, %v597_v10  ;;  %v738_v63 = vsel %vm734_vm4, %v4465_v50, %v6965_v28  ;;  %v739_v18 = vsel %vm734_vm4, %v6965_v28, %v4467_v52  ;;  %v6968_v0 = vld [vmem:[#allocation35_spill] sm:$0xff] }
 0x24e   : > { %6958 = vst [vmem:[#allocation92_spill] sm:$0xff] %v5041_v47  ;;  %v839_v47 = vsel %vm836_vm6, %v4525_v42, %v4568_v41  ;;  %v701_v7 = vadd.f32 %v689_v29, %v650_v23  ;;  %v649_v61 = vadd.f32 %v637_v31, %v598_v36  ;;  %v6962_v29 = vld [vmem:[#allocation9_spill] sm:$0xff]  ;;  %v6966_v31 = vld [vmem:[#allocation14_spill] sm:$0xff] }
 0x24f   : > { %v851_v42 = vadd.f32 %v839_v47, %v800_v45  ;;  %v791_v47 = vsel %vm6839_vm5, %v4497_v26, %v4510_v53  ;;  %v842_v39 = vsel %vm836_vm6, %v6962_v29, %v6961_v44  ;;  %v6964_v23 = vld [vmem:[#allocation17_spill] sm:$0xff]  ;;  %v992_v53 = vsel %vm989_vm9, %v4630_v59, %v4673_v55 }
 0x250   : > { %v752_v33 = vadd.f32 %v740_v12, %v701_v7  ;;  %v941_v45 = vsel %vm6829_vm8, %v6964_v23, %v6963_v5  ;;  %v893_v7 = vsel %vm887_vm7, %v4613_v48, %v6966_v31  ;;  %v6967_v36 = vld [vmem:[#allocation29_spill] sm:$0xff]  ;;  %v6976_v31 = vld [vmem:[#allocation36_spill] sm:$0xff] }
 0x251   : > { %v902_v3 = vadd.f32 %v890_v57, %v851_v42  ;;  %v688_v42 = vsel %vm6838_vm3, %v6960_v27, %v4450_v37  ;;  %v699_v37 = vadd.f32 %v687_v13, %v648_v30  ;;  %v1043_v10 = vsel %vm6836_vm10, %v6968_v0, %v6967_v36 }
 0x252   : > { %v803_v54 = vadd.f32 %v791_v47, %v752_v33  ;;  %v700_v12 = vadd.f32 %v688_v42, %v649_v61 }
 0x253   : > { %v953_v57 = vadd.f32 %v941_v45, %v902_v3  ;;  %v750_v47 = vadd.f32 %v738_v63, %v699_v37  ;;  %v6969_v3 = vld [vmem:[#allocation8_spill] sm:$0xff]  ;;  %v6975_v37 = vld [vmem:[#allocation25_spill] sm:$0xff] }
 0x254   : > { %v5080_v58 = vpop.permute.xlu0 %1283  ;;  %v854_v27 = vadd.f32 %v842_v39, %v803_v54  ;;  %v789_v30 = vsel %vm6839_vm5, %v4495_v25, %v6969_v3  ;;  %v790_v52 = vsel %vm6839_vm5, %v6969_v3, %v4497_v26  ;;  %v751_v33 = vadd.f32 %v739_v18, %v700_v12  ;;  %v6972_v25 = vld [vmem:[#allocation20_spill] sm:$0xff]  ;;  %v6973_v54 = vld [vmem:[#allocation19_spill] sm:$0xff] }
 0x255   : > { %6959 = vst [vmem:[#allocation93_spill] sm:$0xff] %v5080_v58  ;;  %v5085_v19 = vpop.permute.xlu2 %1591  ;;  %v5087_v4 = vpop.permute.xlu1 %1595  ;;  %v1004_v44 = vadd.f32 %v992_v53, %v953_v57  ;;  %v801_v42 = vadd.f32 %v789_v30, %v750_v47  ;;  %v6971_v53 = vld [vmem:[#allocation7_spill] sm:$0xff]  ;;  %v944_v57 = vsel %vm6829_vm8, %v6973_v54, %v6972_v25  ;;  %v6974_v26 = vld [vmem:[#allocation32_spill] sm:$0xff]  ;;  %v1145_v12 = vsel %vm1142_vm12, %v4735_v14, %v4778_v60  ;;  %v6981_v25 = vld [vmem:[#allocation5_spill] sm:$0xff] }
 0x256   : > { %v905_v45 = vadd.f32 %v893_v7, %v854_v27  ;;  %v802_v39 = vadd.f32 %v790_v52, %v751_v33  ;;  %v840_v63 = vsel %vm836_vm6, %v4568_v41, %v6971_v53  ;;  %v995_v18 = vsel %vm989_vm9, %v6975_v37, %v6974_v26  ;;  %v6977_v7 = vld [vmem:[#allocation34_spill] sm:$0xff]  ;;  %v6978_v47 = vld [vmem:[#allocation31_spill] sm:$0xff]  ;;  %v6979_v30 = vld [vmem:[#allocation48_spill] sm:$0xff] }
 0x257   : > { %v1055_v28 = vadd.f32 %v1043_v10, %v1004_v44  ;;  %v1094_v10 = vsel %vm6833_vm11, %v6977_v7, %v6976_v31  ;;  %v852_v44 = vadd.f32 %v840_v63, %v801_v42  ;;  %v1046_v3 = vsel %vm6836_vm10, %v4718_v22, %v6978_v47  ;;  %v6980_v52 = vld [vmem:[#allocation54_spill] sm:$0xff] }
 0x258   : > { %v956_v27 = vadd.f32 %v944_v57, %v905_v45  ;;  %v1196_v33 = vsel %vm6837_vm13, %v6980_v52, %v6979_v30  ;;  %v532_v26 = vsel %vm6826_vm0, %v6981_v25, %v4347_v32  ;;  %v485_v42 = vmul.f32 %v4292_v6, %v4332_v21 }
 0x259   : > { %v1106_v41 = vadd.f32 %v1094_v10, %v1055_v28  ;;  %v6983_v10 = vld [vmem:[#allocation13_spill] sm:$0xff] }
 0x25a   : > { %v1007_v45 = vadd.f32 %v995_v18, %v956_v27  ;;  %v892_v47 = vsel %vm887_vm7, %v6983_v10, %v4613_v48  ;;  %v891_v32 = vsel %vm887_vm7, %v4557_v62, %v6983_v10  ;;  %v6985_v18 = vld [vmem:[#allocation11_spill] sm:$0xff] }
 0x25b   : > { %v1157_v57 = vadd.f32 %v1145_v12, %v1106_v41  ;;  %v531_v12 = vsel %vm6826_vm0, %v6985_v18, %v6981_v25  ;;  %v903_v6 = vadd.f32 %v891_v32, %v852_v44  ;;  %v6987_v41 = vld [vmem:[#allocation23_spill] sm:$0xff]  ;;  %vm1346_vm0 = vcmask 343040  }
 0x25c   : > { %v5122_v50 = vpop.permute.xlu0 %1544  ;;  %v1058_v52 = vadd.f32 %v1046_v3, %v1007_v45  ;;  %v993_v62 = vsel %vm989_vm9, %v4673_v55, %v6987_v41  ;;  %v6990_v25 = vld [vmem:[#allocation51_spill] sm:$0xff]  ;;  %v6991_v45 = vld [vmem:[#allocation44_spill] sm:$0xff]  ;;  %v484_v32 = vmul.f32 %v4321_v17, %v4332_v21  ;;  %v6998_v17 = vld [vmem:[#allocation10_spill] sm:$0xff] }
 0x25d   : > { %v5130_v13 = vpop.permute.xlu2 %1597  ;;  %v5132_v61 = vpop.permute.xlu1 %1332 }
 0x25e   : > { %6970 = vst [vmem:[#allocation2_spill] sm:$0xff] %v5132_v61  ;;  %v841_v61 = vsel %vm836_vm6, %v6971_v53, %v6962_v29  ;;  %v1208_v29 = vadd.f32 %v1196_v33, %v1157_v57  ;;  %v544_v53 = vadd.f32 %v532_v26, %v485_v42  ;;  %v6988_v33 = vld [vmem:[#allocation38_spill] sm:$0xff]  ;;  %v6989_v26 = vld [vmem:[#allocation37_spill] sm:$0xff]  ;;  %v6992_v57 = vld [vmem:[#allocation55_spill] sm:$0xff] }
 0x25f   : > { %v853_v63 = vadd.f32 %v841_v61, %v802_v39  ;;  %v6986_v61 = vld [vmem:[#allocation24_spill] sm:$0xff]  ;;  %v1097_v44 = vsel %vm6833_vm11, %v6989_v26, %v6988_v33  ;;  %v6993_v42 = vld [vmem:[#allocation53_spill] sm:$0xff] }
 0x260   : > { %v942_v39 = vsel %vm6829_vm8, %v6963_v5, %v6986_v61  ;;  %v943_v27 = vsel %vm6829_vm8, %v6986_v61, %v6973_v54  ;;  %v1148_v5 = vsel %vm1142_vm12, %v6991_v45, %v6990_v25  ;;  %v1298_v54 = vsel %vm1295_vm15, %v4840_v46, %v4883_v34  ;;  %v6994_v61 = vld [vmem:[#allocation50_spill] sm:$0xff]  ;;  %v6995_v25 = vld [vmem:[#allocation67_spill] sm:$0xff] }
 0x261   : > { %v904_v48 = vadd.f32 %v892_v47, %v853_v63  ;;  %v1247_v63 = vsel %vm1244_vm14, %v6993_v42, %v6992_v57  ;;  %v954_v55 = vadd.f32 %v942_v39, %v903_v6  ;;  %v1109_v10 = vadd.f32 %v1097_v44, %v1058_v52  ;;  %v6997_v42 = vld [vmem:[#allocation4_spill] sm:$0xff] }
 0x262   : > { %v1259_v47 = vadd.f32 %v1247_v63, %v1208_v29  ;;  %v1199_v33 = vsel %vm6837_vm13, %v4823_v56, %v6994_v61  ;;  %v583_v46 = vsel %vm6830_vm1, %v6997_v42, %v4377_v49  ;;  %v582_v21 = vsel %vm6830_vm1, %v6998_v17, %v6997_v42  ;;  %v7002_v42 = vld [vmem:[#allocation30_spill] sm:$0xff] }
 0x263   : > { %v955_v18 = vadd.f32 %v943_v27, %v904_v48  ;;  %v1005_v6 = vadd.f32 %v993_v62, %v954_v55  ;;  %v1160_v52 = vadd.f32 %v1148_v5, %v1109_v10  ;;  %v595_v48 = vadd.f32 %v583_v46, %v544_v53  ;;  %v6999_v27 = vld [vmem:[#allocation12_spill] sm:$0xff]  ;;  %v7003_v10 = vld [vmem:[#allocation43_spill] sm:$0xff] }
 0x264   : > { %v5161_v28 = vpop.permute.xlu0 %1281  ;;  %v1310_v39 = vadd.f32 %v1298_v54, %v1259_v47  ;;  %v634_v44 = vsel %vm632_vm2, %v6999_v27, %v4405_v2  ;;  %v543_v63 = vadd.f32 %v531_v12, %v484_v32  ;;  %v994_v49 = vsel %vm989_vm9, %v6987_v41, %v6975_v37  ;;  %v7001_v54 = vld [vmem:[#allocation16_spill] sm:$0xff]  ;;  %v7004_v41 = vld [vmem:[#allocation57_spill] sm:$0xff] }
 0x265   : > { %6982 = vst [vmem:[#allocation15_spill] sm:$0xff] %v5161_v28  ;;  %v5168_v58 = vpop.permute.xlu2 %1385  ;;  %v5185_v3 = vpop.permute.xlu1 %1644  ;;  %v1211_v62 = vadd.f32 %v1199_v33, %v1160_v52  ;;  %vm1397_vm8 = vcmask 334848   ;;  %v633_v55 = vsel %vm632_vm2, %v7001_v54, %v6999_v27  ;;  %v1044_v46 = vsel %vm6836_vm10, %v6967_v36, %v7002_v42  ;;  %v7005_v47 = vld [vmem:[#allocation56_spill] sm:$0xff]  ;;  %v7006_v36 = vld [vmem:[#allocation70_spill] sm:$0xff] }
 0x266   : > { %6984 = vst [vmem:[#allocation9_spill] sm:$0xff] %v5168_v58  ;;  %v6996_v58 = vld [vmem:[#allocation73_spill] sm:$0xff]  ;;  %v1006_v53 = vadd.f32 %v994_v49, %v955_v18  ;;  %v1045_v2 = vsel %vm6836_vm10, %v7002_v42, %v4718_v22  ;;  %v1056_v12 = vadd.f32 %v1044_v46, %v1005_v6  ;;  %v1095_v37 = vsel %vm6833_vm11, %v6976_v31, %v7003_v10  ;;  %v7007_v18 = vld [vmem:[#allocation63_spill] sm:$0xff]  ;;  %v7008_v52 = vld [vmem:[#allocation74_spill] sm:$0xff] }
 0x267   : > { %v1349_v28 = vsel %vm1346_vm0, %v6996_v58, %v6995_v25  ;;  %vm1448_vm1 = vcmask 326656   ;;  %v1250_v32 = vsel %vm1244_vm14, %v7005_v47, %v7004_v41  ;;  %v1301_v33 = vsel %vm1295_vm15, %v7007_v18, %v7006_v36  ;;  %v7009_v22 = vld [vmem:[#allocation72_spill] sm:$0xff]  ;;  %v7010_v49 = vld [vmem:[#allocation22_spill] sm:$0xff] }
 0x268   : > { %v1361_v5 = vadd.f32 %v1349_v28, %v1310_v39  ;;  %v1096_v28 = vsel %vm6833_vm11, %v7003_v10, %v6989_v26  ;;  %v1400_v6 = vsel %vm1397_vm8, %v7009_v22, %v7008_v52  ;;  %v1451_v31 = vsel %vm1448_vm1, %v4945_v51, %v4985_v1  ;;  %v7011_v42 = vld [vmem:[#allocation42_spill] sm:$0xff]  ;;  %v7012_v10 = vld [vmem:[#allocation69_spill] sm:$0xff]  ;;  %v7013_v41 = vld [vmem:[#allocation76_spill] sm:$0xff] }
 0x269   : > { %v1057_v39 = vadd.f32 %v1045_v2, %v1006_v53  ;;  %v1262_v17 = vadd.f32 %v1250_v32, %v1211_v62  ;;  %vm1499_vm2 = vcmask 130048   ;;  %v685_v54 = vsel %vm6838_vm3, %v7010_v49, %v4435_v20 }
 0x26a   : > { %v1412_v26 = vadd.f32 %v1400_v6, %v1361_v5  ;;  %v1146_v46 = vsel %vm1142_vm12, %v4778_v60, %v7011_v42  ;;  %v1352_v36 = vsel %vm1346_vm0, %v7013_v41, %v7012_v10  ;;  %v1502_v62 = vsel %vm1499_vm2, %v5014_v40, %v4977_v15  ;;  %v7014_v40 = vld [vmem:[#allocation49_spill] sm:$0xff] }
 0x26b   : > { %v1107_v53 = vadd.f32 %v1095_v37, %v1056_v12  ;;  %v1108_v5 = vadd.f32 %v1096_v28, %v1057_v39  ;;  %v1313_v2 = vadd.f32 %v1301_v33, %v1262_v17  ;;  %v646_v51 = vadd.f32 %v634_v44, %v595_v48  ;;  %v7015_v48 = vld [vmem:[#allocation77_spill] sm:$0xff]  ;;  %v7016_v44 = vld [vmem:[#allocation75_spill] sm:$0xff]  ;;  %v7019_v39 = vld [vmem:[#allocation62_spill] sm:$0xff] }
 0x26c   : > { %v5210_v29 = vpop.permute.xlu0 %1593  ;;  %v1463_v32 = vadd.f32 %v1451_v31, %v1412_v26  ;;  %v594_v22 = vadd.f32 %v582_v21, %v543_v63  ;;  %vm1550_vm11 = vcmask 121856   ;;  %v1147_v10 = vsel %vm1142_vm12, %v7011_v42, %v6991_v45  ;;  %v7017_v45 = vld [vmem:[#allocation89_spill] sm:$0xff]  ;;  %v7018_v28 = vld [vmem:[#allocation27_spill] sm:$0xff] }
 0x26d   : > { %v5218_v61 = vpop.permute.xlu2 %1646  ;;  %v5250_v27 = vpop.permute.xlu1 %1650  ;;  %v1158_v58 = vadd.f32 %v1146_v46, %v1107_v53  ;;  %v1364_v14 = vadd.f32 %v1352_v36, %v1313_v2  ;;  %v697_v7 = vadd.f32 %v685_v54, %v646_v51  ;;  %v1197_v12 = vsel %vm6837_vm13, %v6979_v30, %v7014_v40  ;;  %v7020_v26 = vld [vmem:[#allocation87_spill] sm:$0xff] }
 0x26e   : > { %7000 = vst [vmem:[#allocation18_spill] sm:$0xff] %v5218_v61  ;;  %v1514_v60 = vadd.f32 %v1502_v62, %v1463_v32  ;;  %v645_v61 = vadd.f32 %v633_v55, %v594_v22  ;;  %v1159_v37 = vadd.f32 %v1147_v10, %v1108_v5  ;;  %v1198_v21 = vsel %vm6837_vm13, %v7014_v40, %v4823_v56  ;;  %v7022_v62 = vld [vmem:[#allocation61_spill] sm:$0xff] }
 0x26f   : > { %vm1601_vm10 = vcmask 113664   ;;  %v1403_v63 = vsel %vm1397_vm8, %v7016_v44, %v7015_v48  ;;  %v1454_v51 = vsel %vm1448_vm1, %v4960_v24, %v4997_v11  ;;  %v1553_v55 = vsel %vm1550_vm11, %v7017_v45, %v5019_v16 }
 0x270   : > { %v1604_v30 = vsel %vm1601_vm10, %v5085_v19, %v5210_v29  ;;  %v684_v56 = vsel %vm6838_vm3, %v7018_v28, %v7010_v49  ;;  %v1209_v40 = vadd.f32 %v1197_v12, %v1158_v58  ;;  %v1415_v33 = vadd.f32 %v1403_v63, %v1364_v14  ;;  %v7021_v58 = vld [vmem:[#allocation21_spill] sm:$0xff] }
 0x271   : > { %v1565_v22 = vadd.f32 %v1553_v55, %v1514_v60  ;;  %v1210_v31 = vadd.f32 %v1198_v21, %v1159_v37  ;;  %v1248_v11 = vsel %vm1244_vm14, %v6992_v57, %v7019_v39  ;;  %v1249_v17 = vsel %vm1244_vm14, %v7019_v39, %v7005_v47  ;;  %v7029_v39 = vld [vmem:[#allocation40_spill] sm:$0xff] }
 0x272   : > { %v1505_v54 = vsel %vm1499_vm2, %v5034_v9, %v7020_v26  ;;  %v1466_v42 = vadd.f32 %v1454_v51, %v1415_v33  ;;  %vm1652_vm13 = vcmask 105472   ;;  %vm1703_vm3 = vcmask 97280  }
 0x273   : > { %v1616_v46 = vadd.f32 %v1604_v30, %v1565_v22  ;;  %v736_v57 = vsel %vm734_vm4, %v7021_v58, %v4452_v38  ;;  %v696_v36 = vadd.f32 %v684_v56, %v645_v61  ;;  %v1299_v47 = vsel %vm1295_vm15, %v4883_v34, %v7022_v62  ;;  %v7023_v61 = vld [vmem:[#allocation26_spill] sm:$0xff]  ;;  %v7024_v34 = vld [vmem:[#allocation28_spill] sm:$0xff]  ;;  %v7026_v30 = vld [vmem:[#allocation91_spill] sm:$0xff] }
 0x274   : > { %v1600_v6 = vpop.permute.xlu0 %1599  ;;  %v1260_v2 = vadd.f32 %v1248_v11, %v1209_v40  ;;  %v1261_v32 = vadd.f32 %v1249_v17, %v1210_v31  ;;  %v1517_v60 = vadd.f32 %v1505_v54, %v1466_v42  ;;  %v748_v12 = vadd.f32 %v736_v57, %v697_v7  ;;  %v7025_v7 = vld [vmem:[#allocation68_spill] sm:$0xff]  ;;  %v7030_v11 = vld [vmem:[#allocation82_spill] sm:$0xff] }
 0x275   : > { %v5264_v20 = vpop.permute.xlu2 %1383  ;;  %v5299_v49 = vpop.permute.xlu1 %1693  ;;  %v735_v37 = vsel %vm734_vm4, %v7023_v61, %v7021_v58  ;;  %v787_v21 = vsel %vm6839_vm5, %v7024_v34, %v4482_v8  ;;  %v1300_v51 = vsel %vm1295_vm15, %v7022_v62, %v7007_v18  ;;  %v1351_v55 = vsel %vm1346_vm0, %v7025_v7, %v7013_v41  ;;  %v7027_v8 = vld [vmem:[#allocation33_spill] sm:$0xff]  ;;  %v7028_v18 = vld [vmem:[#allocation6_spill] sm:$0xff] }
 0x276   : > { %v1311_v48 = vadd.f32 %v1299_v47, %v1260_v2  ;;  %v1556_v28 = vsel %vm1550_vm11, %v7026_v30, %v5039_v35  ;;  %v1607_v56 = vsel %vm1601_vm10, %v5130_v13, %v1600_v6  ;;  %v747_v40 = vadd.f32 %v735_v37, %v696_v36  ;;  %v7031_v36 = vld [vmem:[#allocation46_spill] sm:$0xff]  ;;  %v7032_v47 = vld [vmem:[#allocation81_spill] sm:$0xff] }
 0x277   : > { %v786_v33 = vsel %vm6839_vm5, %v7027_v8, %v7024_v34  ;;  %v1312_v22 = vadd.f32 %v1300_v51, %v1261_v32  ;;  %v1568_v31 = vadd.f32 %v1556_v28, %v1517_v60  ;;  %v838_v41 = vsel %vm836_vm6, %v7029_v39, %v7028_v18  ;;  %v7033_v34 = vld [vmem:[#allocation39_spill] sm:$0xff]  ;;  %v7036_v51 = vld [vmem:[#allocation86_spill] sm:$0xff] }
 0x278   : > { %v1350_v35 = vsel %vm1346_vm0, %v6995_v25, %v7025_v7  ;;  %v1401_v6 = vsel %vm1397_vm8, %v7008_v52, %v7030_v11  ;;  %v1402_v17 = vsel %vm1397_vm8, %v7030_v11, %v7016_v44  ;;  %v799_v26 = vadd.f32 %v787_v21, %v748_v12 }
 0x279   : > { %v1363_v54 = vadd.f32 %v1351_v55, %v1312_v22  ;;  %v1362_v42 = vadd.f32 %v1350_v35, %v1311_v48  ;;  %v798_v57 = vadd.f32 %v786_v33, %v747_v40  ;;  %v837_v62 = vsel %vm836_vm6, %v7031_v36, %v7029_v39  ;;  %v7037_v55 = vld [vmem:[#allocation45_spill] sm:$0xff]  ;;  %v7038_v40 = vld [vmem:[#allocation52_spill] sm:$0xff] }
 0x27a   : > { %v1452_v25 = vsel %vm1448_vm1, %v4985_v1, %v7032_v47  ;;  %v850_v2 = vadd.f32 %v838_v41, %v799_v26  ;;  %v889_v21 = vsel %vm887_vm7, %v7033_v34, %v4598_v43  ;;  %v7034_v1 = vld [vmem:[#allocation47_spill] sm:$0xff]  ;;  %vm7035_vm6 = vcmask 785408  }
 0x27b   : > { %v1413_v44 = vadd.f32 %v1401_v6, %v1362_v42  ;;  %v1414_v32 = vadd.f32 %v1402_v17, %v1363_v54  ;;  %v940_v48 = vsel %vm7035_vm6, %v7034_v1, %v6964_v23  ;;  %v1504_v7 = vsel %vm1499_vm2, %v7036_v51, %v5034_v9  ;;  %vm7039_vm5 = vmmov %vm7035_vm6  ;;  %v7040_v23 = vld [vmem:[#allocation59_spill] sm:$0xff] }
 0x27c   : > { %v5301_v14 = vpop.permute.xlu0 %1642  ;;  %v888_v28 = vsel %vm887_vm7, %v7037_v55, %v7033_v34  ;;  %v939_v43 = vsel %vm7039_vm5, %v7038_v40, %v7034_v1  ;;  %v1503_v9 = vsel %vm1499_vm2, %v4977_v15, %v7036_v51  ;;  %v1554_v33 = vsel %vm1550_vm11, %v5019_v16, %v5122_v50  ;;  %v7055_v40 = vld [vmem:[#allocation54_spill] sm:$0xff] }
 0x27d   : > { %v5309_v53 = vpop.permute.xlu2 %1695  ;;  %v1655_v5 = vsel %vm1652_vm13, %v5301_v14, %v5185_v3  ;;  %v1700_v60 = vpop.permute.xlu1 %1699  ;;  %v1464_v61 = vadd.f32 %v1452_v25, %v1413_v44  ;;  %v1555_v22 = vsel %vm1550_vm11, %v5122_v50, %v7026_v30  ;;  %v1605_v15 = vsel %vm1601_vm10, %v5210_v29, %v5087_v4  ;;  %v7042_v30 = vld [vmem:[#allocation58_spill] sm:$0xff]  ;;  %v7050_v44 = vld [vmem:[#allocation71_spill] sm:$0xff] }
 0x27e   : > { %v1667_v10 = vadd.f32 %v1655_v5, %v1616_v46  ;;  %v1706_v38 = vsel %vm1703_vm3, %v5299_v49, %v5309_v53  ;;  %v1619_v46 = vadd.f32 %v1607_v56, %v1568_v31  ;;  %v901_v56 = vadd.f32 %v889_v21, %v850_v2  ;;  %v7054_v21 = vld [vmem:[#allocation84_spill] sm:$0xff] }
 0x27f   : > { %v1515_v41 = vadd.f32 %v1503_v9, %v1464_v61  ;;  %vm7043_vm5 = vcmask 580608   ;;  %vm7046_vm7 = vcmask 572416   ;;  %v7060_v9 = vld [vmem:[#allocation83_spill] sm:$0xff] }
 0x280   : > { %v5323_v63 = vadd.f32 %v1706_v38, %v1667_v10  ;;  %v849_v38 = vadd.f32 %v837_v62, %v798_v57  ;;  %v952_v31 = vadd.f32 %v940_v48, %v901_v56  ;;  %v1042_v42 = vsel %vm7043_vm5, %v7042_v30, %v6968_v0  ;;  %v7045_v57 = vld [vmem:[#allocation66_spill] sm:$0xff]  ;;  %vm7049_vm6 = vmmov %vm7043_vm5 }
 0x281   : > { %v1566_v17 = vadd.f32 %v1554_v33, %v1515_v41  ;;  %v1606_v62 = vsel %vm1601_vm10, %v5087_v4, %v5130_v13  ;;  %vm7051_vm5 = vmmov %vm7046_vm7 }
 0x282   : > { %1732 = vrot.lane.b32.xlu2 %v5323_v63, %s4025_s25  ;;  %v900_v18 = vadd.f32 %v888_v28, %v849_v38  ;;  %v1092_v0 = vsel %vm7051_vm5, %v7050_v44, %v7045_v57 }
 0x283   : > { %v1617_v50 = vadd.f32 %v1605_v15, %v1566_v17 }
 0x284   : > { %v1649_v58 = vpop.permute.xlu0 %1648  ;;  %v951_v6 = vadd.f32 %v939_v43, %v900_v18  ;;  %v7056_v43 = vld [vmem:[#allocation78_spill] sm:$0xff]  ;;  %v7063_v18 = vld [vmem:[#allocation60_spill] sm:$0xff] }
 0x285   : > { %v1702_v5 = vpop.permute.xlu2 %1701  ;;  %v1658_v52 = vsel %vm1652_vm13, %v1649_v58, %v5250_v27  ;;  %v1453_v27 = vsel %vm1448_vm1, %v7032_v47, %v4960_v24  ;;  %v991_v24 = vsel %vm989_vm9, %v7040_v23, %v4630_v59  ;;  %v7041_v59 = vld [vmem:[#allocation65_spill] sm:$0xff]  ;;  %v7047_v47 = vld [vmem:[#allocation18_spill] sm:$0xff]  ;;  %v1488_v55 = vpop.permute.xlu1 %1487 }
 0x286   : > { %v1670_v10 = vadd.f32 %v1658_v52, %v1619_v46  ;;  %v1709_v12 = vsel %vm1703_vm3, %v1700_v60, %v1702_v5  ;;  %v1465_v8 = vadd.f32 %v1453_v27, %v1414_v32  ;;  %v990_v11 = vsel %vm989_vm9, %v7041_v59, %v7040_v23  ;;  %v7044_v46 = vld [vmem:[#allocation34_spill] sm:$0xff]  ;;  %v7048_v52 = vld [vmem:[#allocation64_spill] sm:$0xff]  ;;  %v7052_v32 = vld [vmem:[#allocation41_spill] sm:$0xff] }
 0x287   : > { %v1003_v16 = vadd.f32 %v991_v24, %v952_v31  ;;  %v1002_v54 = vadd.f32 %v990_v11, %v951_v6  ;;  %v1093_v36 = vsel %vm7046_vm7, %v7045_v57, %v7044_v46  ;;  %v1657_v29 = vsel %vm1652_vm13, %v7047_v47, %v1649_v58  ;;  %v7067_v46 = vld [vmem:[#allocation92_spill] sm:$0xff] }
 0x288   : > { %v5362_v37 = vadd.f32 %v1709_v12, %v1670_v10  ;;  %v1516_v39 = vadd.f32 %v1504_v7, %v1465_v8  ;;  %v1041_v2 = vsel %vm7049_vm6, %v7048_v52, %v7042_v30  ;;  %v7053_v10 = vld [vmem:[#allocation79_spill] sm:$0xff]  ;;  %v1656_v4 = vsel %vm1652_vm13, %v5185_v3, %v7047_v47  ;;  %v7058_v8 = vld [vmem:[#allocation53_spill] sm:$0xff] }
 0x289   : > { %v1054_v25 = vadd.f32 %v1042_v42, %v1003_v16  ;;  %v1144_v12 = vsel %vm1142_vm12, %v7053_v10, %v7052_v32  ;;  %v1053_v58 = vadd.f32 %v1041_v2, %v1002_v54  ;;  %v1668_v61 = vadd.f32 %v1656_v4, %v1617_v50  ;;  %v7065_v16 = vld [vmem:[#allocation15_spill] sm:$0xff]  ;;  %v7066_v42 = vld [vmem:[#allocation73_spill] sm:$0xff]  ;;  %v7071_v2 = vld [vmem:[#allocation80_spill] sm:$0xff] }
 0x28a   : > { %1738 = vrot.lane.b32.xlu2 %v5362_v37, %s4025_s25  ;;  %v1567_v26 = vadd.f32 %v1555_v22, %v1516_v39  ;;  %v1143_v1 = vsel %vm1142_vm12, %v7054_v21, %v7053_v10  ;;  %vm7057_vm12 = vcmask 556032   ;;  %v7062_v22 = vld [vmem:[#allocation88_spill] sm:$0xff]  ;;  %v7064_v39 = vld [vmem:[#allocation93_spill] sm:$0xff]  ;;  %v1348_v57 = vsel %vm1346_vm0, %v7067_v46, %v7066_v42  ;;  %v386_v4 = vld [vmem:[%s6756_s2] sm:$0xff] }
 0x28b   : > { %v1105_v13 = vadd.f32 %v1093_v36, %v1054_v25  ;;  %v1104_v51 = vadd.f32 %v1092_v0, %v1053_v58  ;;  %vm7061_vm7 = vmmov %vm7057_vm12  ;;  %v1297_v41 = vsel %vm1295_vm15, %v7064_v39, %v7063_v18  ;;  %v1296_v17 = vsel %vm1295_vm15, %v7065_v16, %v7064_v39  ;;  %v7068_v36 = vld [vmem:[#allocation72_spill] sm:$0xff]  ;;  %v7070_v25 = vld [vmem:[#allocation2_spill] sm:$0xff] }
 0x28c   : > { %v5396_v35 = vpop.permute.xlu0 %1436  ;;  %v1618_v5 = vadd.f32 %v1606_v62, %v1567_v26  ;;  %v1194_v33 = vsel %vm7061_vm7, %v7060_v9, %v7056_v43  ;;  %v7069_v62 = vld [vmem:[#allocation9_spill] sm:$0xff]  ;;  %vm2083_vm7 = vcmask 64512  }
 0x28d   : > { %v1156_v7 = vadd.f32 %v1144_v12, %v1105_v13  ;;  %v1155_v56 = vadd.f32 %v1143_v1, %v1104_v51  ;;  %v1486_v15 = vpop.permute.xlu2 %1485  ;;  %v1537_v30 = vpop.permute.xlu1 %1536  ;;  %v1399_v47 = vsel %vm1397_vm8, %v7069_v62, %v7068_v36  ;;  %v1398_v52 = vsel %vm1397_vm8, %v5264_v20, %v7069_v62  ;;  %v7072_v20 = vld [vmem:[#allocation90_spill] sm:$0xff] }
 0x28e   : > { %v1669_v38 = vadd.f32 %v1657_v29, %v1618_v5  ;;  %v1347_v5 = vsel %vm1346_vm0, %v7070_v25, %v7067_v46  ;;  %v1450_v44 = vsel %vm1448_vm1, %v5396_v35, %v7071_v2  ;;  %vm7073_vm0 = vcmask 1039360  }
 0x28f   : > { %v1206_v11 = vadd.f32 %v1194_v33, %v1155_v56  ;;  %vm7075_vm8 = vmmov %vm7073_vm0 }
 0x290   : > { %vm7079_vm15 = vmmov %vm7073_vm0 }
 0x291   : > { %vm7081_vm5 = vmmov %vm7073_vm0 }
 0x294   : > { %v1698_v34 = vpop.permute.xlu0 %1697 }
 0x295   : > { %v1707_v48 = vsel %vm1703_vm3, %v5309_v53, %v1698_v34  ;;  %v1708_v27 = vsel %vm1703_vm3, %v1698_v34, %v1700_v60  ;;  %v1195_v53 = vsel %vm7057_vm12, %v7056_v43, %v7055_v40  ;;  %v7059_v60 = vld [vmem:[#allocation85_spill] sm:$0xff]  ;;  %v1501_v34 = vsel %vm1499_vm2, %v1488_v55, %v7072_v20 }
 0x296   : > { %v5433_v28 = vadd.f32 %v1707_v48, %v1668_v61  ;;  %v5435_v3 = vadd.f32 %v1708_v27, %v1669_v38  ;;  %v1246_v23 = vsel %vm1244_vm14, %v7059_v60, %v7058_v8  ;;  %v1207_v24 = vadd.f32 %v1195_v53, %v1156_v7  ;;  %v1590_v38 = vpop.permute.xlu2 %1589 }
 0x297   : > { %v1245_v31 = vsel %vm1244_vm14, %v7062_v22, %v7059_v60  ;;  %v1500_v48 = vsel %vm1499_vm2, %v1486_v15, %v1488_v55  ;;  %v1603_v53 = vsel %vm1601_vm10, %v1590_v38, %v5085_v19 }
 0x298   : > { %1765 = vrot.lane.b32.xlu2 %v5435_v3, %s4029_s29  ;;  %1736 = vrot.lane.b32.xlu1 %v5435_v3, %s4025_s25  ;;  %v1258_v59 = vadd.f32 %v1246_v23, %v1207_v24  ;;  %v1257_v26 = vadd.f32 %v1245_v31, %v1206_v11 }
 0x299   : > { %1734 = vrot.lane.b32.xlu0 %v5433_v28, %s4025_s25 }
 0x29a   : > { %v1309_v54 = vadd.f32 %v1297_v41, %v1258_v59  ;;  %v1308_v50 = vadd.f32 %v1296_v17, %v1257_v26 }
 0x29c   : > { %v1435_v6 = vpop.permute.xlu0 %1434  ;;  %v1360_v29 = vadd.f32 %v1348_v57, %v1309_v54  ;;  %v1359_v32 = vadd.f32 %v1347_v5, %v1308_v50 }
 0x29d   : > { %v1449_v12 = vsel %vm1448_vm1, %v1435_v6, %v5396_v35  ;;  %v1641_v35 = vpop.permute.xlu1 %1640  ;;  %vm7074_vm1 = vcmask 809984  }
 0x29e   : > { %v1411_v0 = vadd.f32 %v1399_v47, %v1360_v29  ;;  %v1410_v13 = vadd.f32 %v1398_v52, %v1359_v32  ;;  %v1639_v8 = vpop.permute.xlu2 %1638  ;;  %v1654_v55 = vsel %vm1652_vm13, %v1641_v35, %v5301_v14  ;;  %vm7078_vm14 = vmmov %vm7074_vm1 }
 0x29f   : > { %v1653_v23 = vsel %vm1652_vm13, %v1639_v8, %v1641_v35  ;;  %vm7077_vm13 = vmmov %vm7074_vm1 }
 0x2a0   : > { %1792 = vrot.lane.b32.xlu2 %v5433_v28, %s4030_s30  ;;  %1763 = vrot.lane.b32.xlu1 %v5433_v28, %s4029_s29  ;;  %v1462_v58 = vadd.f32 %v1450_v44, %v1411_v0  ;;  %v1461_v61 = vadd.f32 %v1449_v12, %v1410_v13  ;;  %vm7080_vm6 = vmmov %vm7074_vm1 }
 0x2a1   : > { %1761 = vrot.lane.b32.xlu0 %v5323_v63, %s4029_s29  ;;  %vm7082_vm12 = vmmov %vm7074_vm1 }
 0x2a2   : > { %v1513_v1 = vadd.f32 %v1501_v34, %v1462_v58  ;;  %v1512_v51 = vadd.f32 %v1500_v48, %v1461_v61 }
 0x2a4   : > { %v1539_v10 = vpop.permute.xlu0 %1538 }
 0x2a5   : > { %v1552_v21 = vsel %vm1550_vm11, %v1539_v10, %v7017_v45  ;;  %v1551_v27 = vsel %vm1550_vm11, %v1537_v30, %v1539_v10  ;;  %v1690_v24 = vpop.permute.xlu1 %1689  ;;  %vm7076_vm11 = vmmov %vm7073_vm0 }
 0x2a6   : > { %v1564_v7 = vadd.f32 %v1552_v21, %v1513_v1  ;;  %v1563_v43 = vadd.f32 %v1551_v27, %v1512_v51 }
 0x2a8   : > { %1817 = vperm.xlu2 %3460, %v386_v4   ;;  %1790 = vrot.lane.b32.xlu1 %v5323_v63, %s4030_s30  ;;  %v1615_v45 = vadd.f32 %v1603_v53, %v1564_v7 }
 0x2a9   : > { %1767 = vrot.lane.b32.xlu0 %v5362_v37, %s4029_s29 }
 0x2aa   : > { %v1666_v9 = vadd.f32 %v1654_v55, %v1615_v45 }
 0x2ac   : > { %v1588_v56 = vpop.permute.xlu0 %1587 }
 0x2ad   : > { %v1602_v40 = vsel %vm1601_vm10, %v1588_v56, %v1590_v38 }
 0x2ae   : > { %v1614_v60 = vadd.f32 %v1602_v40, %v1563_v43 }
 0x2b0   : > { %1796 = vrot.lane.b32.xlu1 %v5362_v37, %s4030_s30  ;;  %v1665_v22 = vadd.f32 %v1653_v23, %v1614_v60 }
 0x2b1   : > { %1794 = vrot.lane.b32.xlu0 %v5435_v3, %s4030_s30 }
 0x2b4   : > { %v1692_v33 = vpop.permute.xlu0 %1691 }
 0x2b5   : > { %v1704_v19 = vsel %vm1703_vm3, %v1690_v24, %v1692_v33  ;;  %v1705_v31 = vsel %vm1703_vm3, %v1692_v33, %v5299_v49 }
 0x2b6   : > { %v5510_v18 = vadd.f32 %v1704_v19, %v1665_v22  ;;  %v1717_v39 = vadd.f32 %v1705_v31, %v1666_v9 }
 0x2b8   : > { %1759 = vrot.lane.b32.xlu2 %v1717_v39, %s4029_s29  ;;  %1728 = vrot.lane.b32.xlu1 %v5510_v18, %s4025_s25 }
 0x2b9   : > { %1730 = vrot.lane.b32.xlu0 %v1717_v39, %s4025_s25  ;;  %s4049_s25 = smov 66  }
 0x2c0   : > { %1786 = vrot.lane.b32.xlu2 %v5510_v18, %s4030_s30  ;;  %1788 = vrot.lane.b32.xlu1 %v1717_v39, %s4030_s30  ;;  %s4051_s30 = smov 88  }
 0x2c1   : > { %1757 = vrot.lane.b32.xlu0 %v5510_v18, %s4029_s29  ;;  %s4050_s29 = smov 74  }
 0x2dc   : > { %v1733_v14 = vpop.permute.xlu2 %1732 }
 0x2e4   : > { %v1739_v49 = vpop.permute.xlu2 %1738 }
 0x2e5   : > { %v1756_v50 = vmax.f32 %v5362_v37, %v1739_v49 }
 0x2f2   : > { %v1766_v41 = vpop.permute.xlu2 %1765 }
 0x2fa   : > { %v1793_v6 = vpop.permute.xlu2 %1792 }
 0x302   : > { %v5528_v47 = vpop.permute.xlu2 %1817 }
 0x30a   : > { %v1737_v59 = vpop.permute.xlu1 %1736 }
 0x30b   : > { %v1735_v11 = vpop.permute.xlu0 %1734  ;;  %v1744_v5 = vsel %vm7076_vm11, %v1737_v59, %v1739_v49  ;;  %vm2064_vm11 = vcmask 80896  }
 0x30c   : > { %v1742_v17 = vsel %vm7073_vm0, %v1733_v14, %v1735_v11  ;;  %v1743_v29 = vsel %vm7075_vm8, %v1735_v11, %v1737_v59  ;;  %v1755_v44 = vmax.f32 %v5435_v3, %v1744_v5  ;;  %vm1975_vm0 = vcmask 539648  }
 0x30d   : > { %v1753_v54 = vmax.f32 %v5323_v63, %v1742_v17  ;;  %v1754_v37 = vmax.f32 %v5433_v28, %v1743_v29 }
 0x312   : > { %v1764_v15 = vpop.permute.xlu1 %1763  ;;  %v1760_v51 = vpop.permute.xlu2 %1759 }
 0x313   : > { %v1762_v16 = vpop.permute.xlu0 %1761  ;;  %v1772_v63 = vsel %vm734_vm4, %v1764_v15, %v1766_v41 }
 0x314   : > { %v1771_v26 = vsel %vm734_vm4, %v1762_v16, %v1764_v15  ;;  %v1783_v32 = vmax.f32 %v1754_v37, %v1772_v63  ;;  %v1770_v40 = vsel %vm734_vm4, %v1760_v51, %v1762_v16 }
 0x315   : > { %v1782_v30 = vmax.f32 %v1753_v54, %v1771_v26 }
 0x31a   : > { %v1791_v42 = vpop.permute.xlu1 %1790  ;;  %v1787_v11 = vpop.permute.xlu2 %1786 }
 0x31b   : > { %v1800_v46 = vsel %vm7074_vm1, %v1791_v42, %v1793_v6  ;;  %v1768_v57 = vpop.permute.xlu0 %1767  ;;  %vm7083_vm1 = vcmask 556032  }
 0x31c   : > { %v1811_v36 = vmax.f32 %v1782_v30, %v1800_v46  ;;  %v5526_v62 = vmax.f32 %v1756_v50, %v1768_v57  ;;  %v1773_v2 = vsel %vm734_vm4, %v1766_v41, %v1768_v57  ;;  %vm7084_vm8 = vmmov %vm7083_vm1 }
 0x31d   : > { %v1784_v13 = vmax.f32 %v1755_v44, %v1773_v2 }
 0x31e   : > { %v1822_v25 = vadd.f32 %v5528_v47, %v1811_v36 }
 0x320   : > { %v1828_v52 = vsub.f32 0.0, %v1822_v25 }
 0x322   : > { %v5537_v0 = vpop.permute.xlu1 %1796  ;;  %v1836_v4 = vmul.f32 1.442695, %v1828_v52 }
 0x323   : > { %v1814_v10 = vmax.f32 %v5526_v62, %v5537_v0  ;;  %v1795_v12 = vpop.permute.xlu0 %1794 }
 0x324   : > { %v1801_v58 = vsel %vm7077_vm13, %v1793_v6, %v1795_v12  ;;  %v1802_v38 = vsel %vm7078_vm14, %v1795_v12, %v5537_v0  ;;  %3736 = vpow2.f32 %v1836_v4  ;;  %vm7085_vm13 = vcmask 572416  }
 0x325   : > { %v1812_v61 = vmax.f32 %v1783_v32, %v1801_v58  ;;  %v1813_v28 = vmax.f32 %v1784_v13, %v1802_v38  ;;  %v1825_v5 = vadd.f32 %v5528_v47, %v1814_v10  ;;  %vm7086_vm14 = vmmov %vm7085_vm13 }
 0x327   : > { %v1823_v20 = vadd.f32 %v5528_v47, %v1812_v61  ;;  %v1824_v34 = vadd.f32 %v5528_v47, %v1813_v28  ;;  %v1831_v52 = vsub.f32 0.0, %v1825_v5 }
 0x329   : > { %v1829_v3 = vsub.f32 0.0, %v1823_v20  ;;  %v1830_v7 = vsub.f32 0.0, %v1824_v34  ;;  %v1842_v2 = vmul.f32 1.442695, %v1831_v52 }
 0x32a   : > { %v1729_v21 = vpop.permute.xlu1 %1728  ;;  %v3737_v27 = vpop.eup %3736 }
 0x32b   : > { %v1838_v35 = vmul.f32 1.442695, %v1829_v3  ;;  %v1731_v1 = vpop.permute.xlu0 %1730  ;;  %v1846_v43 = vadd.f32 1.0, %v3737_v27  ;;  %v1840_v53 = vmul.f32 1.442695, %v1830_v7 }
 0x32c   : > { %v1741_v48 = vsel %vm7079_vm15, %v1731_v1, %v1733_v14  ;;  %v1740_v33 = vsel %vm7081_vm5, %v1729_v21, %v1731_v1  ;;  %vm2128_vm15 = vcmask 605184   ;;  %vm7087_vm5 = vcmask 1014784  }
 0x32d   : > { %3738 = vpow2.f32 %v1838_v35  ;;  %v1752_v56 = vmax.f32 %v1717_v39, %v1741_v48  ;;  %v1751_v31 = vmax.f32 %v5510_v18, %v1740_v33 }
 0x32e   : > { %3740 = vrcp.f32 %v1846_v43 }
 0x32f   : > { %v1781_v8 = vmax.f32 %v1752_v56, %v1770_v40  ;;  %3742 = vpow2.f32 %v1840_v53 }
 0x332   : > { %v1789_v45 = vpop.permute.xlu1 %1788 }
 0x333   : > { %v1799_v60 = vsel %vm7080_vm6, %v1789_v45, %v1791_v42  ;;  %v3739_v55 = vpop.eup %3738  ;;  %v1758_v23 = vpop.permute.xlu0 %1757  ;;  %v1798_v6 = vsel %vm7082_vm12, %v1787_v11, %v1789_v45  ;;  %vm1898_vm6 = vcmask 998400   ;;  %vm7088_vm12 = vmmov %vm7087_vm5 }
 0x334   : > { %v1810_v24 = vmax.f32 %v1781_v8, %v1799_v60  ;;  %v1847_v9 = vadd.f32 1.0, %v3739_v55  ;;  %v1769_v19 = vsel %vm734_vm4, %v1758_v23, %v1760_v51  ;;  %v5553_v41 = vpop.eup %3740  ;;  %vm2100_vm4 = vcmask 719872  }
 0x335   : > { %v1780_v14 = vmax.f32 %v1751_v31, %v1769_v19  ;;  %v3743_v59 = vpop.eup %3742 }
 0x336   : > { %v1821_v22 = vadd.f32 %v5528_v47, %v1810_v24  ;;  %3744 = vrcp.f32 %v1847_v9  ;;  %v1848_v26 = vadd.f32 1.0, %v3743_v59 }
 0x337   : > { %v1809_v16 = vmax.f32 %v1780_v14, %v1798_v6 }
 0x338   : > { %v1827_v39 = vsub.f32 0.0, %v1821_v22 }
 0x339   : > { %v1820_v54 = vadd.f32 %v5528_v47, %v1809_v16 }
 0x33a   : > { %v1834_v49 = vmul.f32 1.442695, %v1827_v39 }
 0x33b   : > { %v1826_v30 = vsub.f32 0.0, %v1820_v54 }
 0x33c   : > { %3746 = vpow2.f32 %v1834_v49  ;;  %v5555_v15 = vpop.eup %3744 }
 0x33d   : > { %v5560_v17 = vpack.i.bf16 %v5555_v15, %v5553_v41  ;;  %3748 = vrcp.f32 %v1848_v26  ;;  %v1832_v46 = vmul.f32 1.442695, %v1826_v30 }
 0x33f   : > { %3476 = vrot.lane.b32.xlu2 %v5560_v17, %s4038_s21  ;;  %3466 = vrot.lane.b32.xlu0 %v5560_v17, %s4049_s25 }
 0x342   : > { %v3747_v18 = vpop.eup %3746 }
 0x343   : > { %v1845_v50 = vadd.f32 1.0, %v3747_v18  ;;  %v5567_v42 = vpop.eup %3748 }
 0x344   : > { %v3605_v10 = vpack.i.bf16 %v5567_v42, %v5555_v15 }
 0x345   : > { %3750 = vrcp.f32 %v1845_v50 }
 0x346   : > { %3752 = vpow2.f32 %v1832_v46 }
 0x34b   : > { %v5569_v57 = vpop.eup %3750 }
 0x34c   : > { %v3490_v36 = vpack.i.bf16 %v5569_v57, %v5567_v42  ;;  %v3753_v29 = vpop.eup %3752  ;;  %v3520_v63 = vpack.i.bf16 %v5553_v41, %v5569_v57 }
 0x34d   : > { %v1844_v25 = vadd.f32 1.0, %v3753_v29 }
 0x34e   : > { %3491 = vrot.lane.b32.xlu2 %v3490_v36, %s4036_s19  ;;  %3481 = vrot.lane.b32.xlu0 %v3490_v36, %s4038_s21 }
 0x34f   : > { %3471 = vrot.lane.b32.xlu1 %v3490_v36, %s4049_s25  ;;  %3754 = vrcp.f32 %v1844_v25 }
 0x350   : > { %3756 = vpow2.f32 %v1842_v2 }
 0x355   : > { %v5591_v37 = vpop.eup %3754 }
 0x356   : > { %3506 = vrot.lane.b32.xlu2 %v5560_v17, %s4050_s29  ;;  %3496 = vrot.lane.b32.xlu0 %v5560_v17, %s4034_s15  ;;  %v3535_v44 = vpack.i.bf16 %v5569_v57, %v5591_v37  ;;  %v3757_v62 = vpop.eup %3756 }
 0x357   : > { %3486 = vrot.lane.b32.xlu1 %v5560_v17, %s4036_s19  ;;  %v1849_v47 = vadd.f32 1.0, %v3757_v62 }
 0x359   : > { %3758 = vrcp.f32 %v1849_v47 }
 0x35e   : > { %3521 = vrot.lane.b32.xlu2 %v3520_v63, %s4051_s30  ;;  %3511 = vrot.lane.b32.xlu0 %v3490_v36, %s4050_s29 }
 0x35f   : > { %3501 = vrot.lane.b32.xlu1 %v3490_v36, %s4034_s15  ;;  %v3759_v0 = vpop.eup %3758 }
 0x360   : > { %v3580_v32 = vpack.i.bf16 %v3759_v0, %v5591_v37 }
 0x366   : > { %3526 = vrot.lane.b32.xlu0 %v3490_v36, %s4052_s14  ;;  %3536 = vrot.lane.b32.xlu2 %v3535_v44, %s4053_s20 }
 0x367   : > { %3516 = vrot.lane.b32.xlu1 %v5560_v17, %s4052_s14 }
 0x36e   : > { %3541 = vrot.lane.b32.xlu0 %v3490_v36, %s4028_s28  ;;  %3551 = vrot.lane.b32.xlu2 %v3535_v44, %s4054_s24 }
 0x36f   : > { %3531 = vrot.lane.b32.xlu1 %v5560_v17, %s4028_s28 }
 0x376   : > { %3556 = vrot.lane.b32.xlu0 %v3490_v36, %s4026_s26  ;;  %3566 = vrot.lane.b32.xlu2 %v3535_v44, %s4046_s16 }
 0x377   : > { %3546 = vrot.lane.b32.xlu1 %v5560_v17, %s4026_s26 }
 0x37e   : > { %3571 = vrot.lane.b32.xlu0 %v3535_v44, %s4044_s13  ;;  %3581 = vrot.lane.b32.xlu2 %v3580_v32, %s4049_s25  ;;  %s4065_s25 = smov 32  }
 0x37f   : > { %3561 = vrot.lane.b32.xlu1 %v3535_v44, %s4048_s23 }
 0x386   : > { %3586 = vrot.lane.b32.xlu0 %v3580_v32, %s4038_s21  ;;  %3596 = vrot.lane.b32.xlu2 %v3580_v32, %s4034_s15  ;;  %s4057_s21 = smov 86  }
 0x387   : > { %3576 = vrot.lane.b32.xlu1 %v3535_v44, %s4055_s27 }
 0x38e   : > { %3601 = vrot.lane.b32.xlu0 %v3535_v44, %s4056_s12  ;;  %1890 = vrot.lane.b32.xlu2 %v5591_v37, %s4052_s14 }
 0x38f   : > { %3591 = vrot.lane.b32.xlu1 %v3580_v32, %s4036_s19 }
 0x396   : > { %1875 = vrot.lane.b32.xlu0 %v5591_v37, %s4028_s28  ;;  %1860 = vrot.lane.b32.xlu2 %v5591_v37, %s4026_s26 }
 0x397   : > { %2126 = vrot.lane.b32.xlu1 %v3759_v0, %s4050_s29 }
 0x399   : > { %v5625_v12 = vpop.permute.xlu2 %3476 }
 0x39a   : > { %v5645_v3 = vunpack.i.h.bf16 %v5625_v12  ;;  %v3478_v34 = vunpack.i.l.bf16 %v5625_v12 }
 0x39c   : > { %v5666_v43 = vsel %vm7083_vm1, %v3478_v34, %v5645_v3  ;;  %vm7089_vm1 = vcmask 1031168  }
 0x39e   : > { %3611 = vrot.lane.b32.xlu0 %v5560_v17, %s4053_s20 }
 0x39f   : > { %3606 = vrot.lane.b32.xlu1 %v3605_v10, %s4051_s30 }
 0x3a6   : > { %3626 = vrot.lane.b32.xlu0 %v5560_v17, %s4048_s23 }
 0x3a7   : > { %3616 = vrot.lane.b32.xlu1 %v5560_v17, %s4054_s24 }
 0x3a8   : > { %v5631_v4 = vpop.permute.xlu2 %3491 }
 0x3a9   : > { %v3493_v31 = vunpack.i.l.bf16 %v5631_v4 }
 0x3b0   : > { %v5633_v13 = vpop.permute.xlu2 %3506 }
 0x3b1   : > { %v5635_v58 = vpop.permute.xlu0 %3466  ;;  %v3509_v16 = vunpack.i.h.bf16 %v5633_v13  ;;  %v3508_v26 = vunpack.i.l.bf16 %v5633_v13 }
 0x3b2   : > { %v5649_v21 = vunpack.i.h.bf16 %v5635_v58  ;;  %v3468_v35 = vunpack.i.l.bf16 %v5635_v58 }
 0x3b3   : > { %v2130_v29 = vsel %vm2128_vm15, %v3508_v26, %v3509_v16 }
 0x3b4   : > { %v5679_v45 = vsel %vm1975_vm0, %v3468_v35, %v5649_v21 }
 0x3b8   : > { %v5637_v38 = vpop.permute.xlu2 %3521 }
 0x3b9   : > { %v6845_v61 = vunpack.i.h.bf16 %v5637_v38  ;;  %v3523_v28 = vunpack.i.l.bf16 %v5637_v38 }
 0x3bb   : > { %v2101_v20 = vsel %vm2100_vm4, %v3523_v28, %v6845_v61 }
 0x3bc   : > { %2299 = vmatpush.msra.mxu0 %v2101_v20 }
 0x3c0   : > { %v5652_v1 = vpop.permute.xlu0 %3481  ;;  %v5654_v48 = vpop.permute.xlu2 %3536 }
 0x3c1   : > { %v3483_v27 = vunpack.i.l.bf16 %v5652_v1  ;;  %v5657_v51 = vpop.permute.xlu1 %3471  ;;  %v6843_v7 = vunpack.i.h.bf16 %v5654_v48  ;;  %v3538_v56 = vunpack.i.l.bf16 %v5654_v48 }
 0x3c2   : > { %v3473_v40 = vunpack.i.l.bf16 %v5657_v51 }
 0x3c3   : > { %v2149_v53 = vsel %vm7084_vm8, %v5645_v3, %v3483_v27  ;;  %v2084_v8 = vsel %vm2083_vm7, %v3538_v56, %v6843_v7  ;;  %vm7090_vm8 = vmmov %vm7089_vm1 }
 0x3c4   : > { %v3630_v60 = vpack.i.bf16 %v2149_v53, %v5666_v43  ;;  %v2155_v55 = vsel %vm1975_vm0, %v5649_v21, %v3473_v40  ;;  %2300 = vmatpush.msra.mxu0 %v2084_v8 }
 0x3c5   : > { %v3620_v23 = vpack.i.bf16 %v2155_v55, %v5679_v45 }
 0x3c6   : > { %3631 = vrot.lane.b32.xlu1 %v3630_v60, %s4057_s21 }
 0x3c7   : > { %3621 = vrot.lane.b32.xlu2 %v3620_v23, %s4057_s21 }
 0x3c8   : > { %v5689_v24 = vpop.permute.xlu0 %3496  ;;  %v5691_v9 = vpop.permute.xlu2 %3551 }
 0x3c9   : > { %v5693_v33 = vpop.permute.xlu1 %3486  ;;  %v6842_v22 = vunpack.i.h.bf16 %v5691_v9  ;;  %v3553_v19 = vunpack.i.l.bf16 %v5691_v9  ;;  %v5724_v18 = vunpack.i.h.bf16 %v5689_v24  ;;  %v3498_v54 = vunpack.i.l.bf16 %v5689_v24 }
 0x3ca   : > { %v5699_v39 = vunpack.i.h.bf16 %v5693_v33  ;;  %v3488_v14 = vunpack.i.l.bf16 %v5693_v33 }
 0x3cb   : > { %v2065_v49 = vsel %vm2064_vm11, %v3553_v19, %v6842_v22  ;;  %v5743_v5 = vsel %vm989_vm9, %v3498_v54, %v5724_v18 }
 0x3cc   : > { %v2143_v59 = vsel %vm7085_vm13, %v5699_v39, %v3493_v31  ;;  %v5713_v11 = vsel %vm7086_vm14, %v3488_v14, %v5699_v39  ;;  %2301 = vmatpush.msra.mxu0 %v2065_v49  ;;  %vm7091_vm13 = vcmask 556032  }
 0x3cd   : > { %v3640_v6 = vpack.i.bf16 %v2143_v59, %v5713_v11 }
 0x3ce   : > { %3646 = vrot.lane.b32.xlu1 %v5560_v17, %s4044_s13 }
 0x3cf   : > { %3641 = vrot.lane.b32.xlu0 %v3640_v6, %s4057_s21  ;;  %3636 = vrot.lane.b32.xlu2 %v5560_v17, %s4046_s16 }
 0x3d0   : > { %v5727_v50 = vpop.permute.xlu0 %3511  ;;  %v5780_v60 = vpop.permute.xlu2 %3566 }
 0x3d1   : > { %v6849_v30 = vunpack.i.l.bf16 %v5727_v50  ;;  %v5730_v46 = vpop.permute.xlu1 %3501 }
 0x3d2   : > { %v3503_v36 = vunpack.i.l.bf16 %v5730_v46 }
 0x3d3   : > { %v2131_v25 = vsel %vm2128_vm15, %v3509_v16, %v6849_v30 }
 0x3d4   : > { %v3660_v63 = vpack.i.bf16 %v2131_v25, %v2130_v29  ;;  %v2137_v52 = vsel %vm989_vm9, %v5724_v18, %v3503_v36 }
 0x3d5   : > { %v3650_v2 = vpack.i.bf16 %v2137_v52, %v5743_v5 }
 0x3d6   : > { %3661 = vrot.lane.b32.xlu1 %v3660_v63, %s4057_s21 }
 0x3d7   : > { %3656 = vrot.lane.b32.xlu0 %v5560_v17, %s4055_s27  ;;  %3651 = vrot.lane.b32.xlu2 %v3650_v2, %s4057_s21 }
 0x3d8   : > { %v5754_v44 = vpop.permute.xlu0 %3526  ;;  %v3582_v52 = vpop.permute.xlu2 %3581 }
 0x3d9   : > { %v6847_v62 = vunpack.i.l.bf16 %v5754_v44  ;;  %v5757_v47 = vpop.permute.xlu1 %3516  ;;  %v3584_v22 = vunpack.i.h.bf16 %v3582_v52 }
 0x3da   : > { %v5760_v0 = vunpack.i.h.bf16 %v5757_v47  ;;  %v6848_v32 = vunpack.i.l.bf16 %v5757_v47 }
 0x3db   : > { %v2156_v12 = vsel %vm1975_vm0, %v3473_v40, %v3584_v22 }
 0x3dc   : > { %v2116_v10 = vsel %vm1898_vm6, %v5760_v0, %v6847_v62  ;;  %v5771_v28 = vsel %vm1898_vm6, %v6848_v32, %v5760_v0  ;;  %v6853_v62 = vunpack.i.h.bf16 %v5780_v60  ;;  %v3568_v32 = vunpack.i.l.bf16 %v5780_v60 }
 0x3dd   : > { %v3665_v20 = vpack.i.bf16 %v2116_v10, %v5771_v28 }
 0x3de   : > { %v2028_v40 = vsel %vm1601_vm10, %v3568_v32, %v6853_v62 }
 0x3df   : > { %3666 = vrot.lane.b32.xlu2 %v3665_v20, %s4057_s21 }
 0x3e0   : > { %v5775_v56 = vpop.permute.xlu0 %3541  ;;  %v3597_v33 = vpop.permute.xlu2 %3596 }
 0x3e1   : > { %v6844_v53 = vunpack.i.l.bf16 %v5775_v56  ;;  %v5778_v8 = vpop.permute.xlu1 %3531  ;;  %v3599_v24 = vunpack.i.h.bf16 %v3597_v33 }
 0x3e2   : > { %v5783_v55 = vunpack.i.h.bf16 %v5778_v8  ;;  %v6850_v23 = vunpack.i.l.bf16 %v5778_v8 }
 0x3e4   : > { %v2113_v19 = vsel %vm7087_vm5, %v5783_v55, %v6844_v53  ;;  %v5794_v49 = vsel %vm7088_vm12, %v6850_v23, %v5783_v55  ;;  %vm1991_vm5 = vcmask 523264   ;;  %vm7092_vm12 = vmmov %vm7091_vm13 }
 0x3e5   : > { %v3670_v59 = vpack.i.bf16 %v2113_v19, %v5794_v49  ;;  %v3484_v19 = vunpack.i.h.bf16 %v5652_v1 }
 0x3e7   : > { %3671 = vrot.lane.b32.xlu0 %v3670_v59, %s4057_s21  ;;  %3681 = vrot.lane.b32.xlu2 %v5560_v17, %s4057_s21  ;;  %v3474_v59 = vunpack.i.h.bf16 %v5657_v51 }
 0x3e8   : > { %v5800_v6 = vpop.permute.xlu0 %3556 }
 0x3e9   : > { %v6846_v16 = vunpack.i.l.bf16 %v5800_v6  ;;  %v5803_v29 = vpop.permute.xlu1 %3546  ;;  %v5839_v61 = vsel %vm1975_vm0, %v3474_v59, %v3468_v35 }
 0x3ea   : > { %v5806_v25 = vunpack.i.h.bf16 %v5803_v29  ;;  %v3548_v63 = vunpack.i.l.bf16 %v5803_v29 }
 0x3ec   : > { %v2110_v2 = vsel %vm7089_vm1, %v5806_v25, %v6846_v16  ;;  %v5817_v10 = vsel %vm7090_vm8, %v3548_v63, %v5806_v25  ;;  %v3494_v16 = vunpack.i.h.bf16 %v5631_v4  ;;  %vm7093_vm1 = vmmov %vm7092_vm12 }
 0x3ed   : > { %v3675_v20 = vpack.i.bf16 %v2110_v2, %v5817_v10  ;;  %v5834_v2 = vsel %vm7091_vm13, %v3484_v19, %v3478_v34  ;;  %vm1914_vm13 = vcmask 982016  }
 0x3ee   : > { %v3690_v34 = vpack.i.bf16 %v5834_v2, %v5839_v61  ;;  %v5857_v35 = vsel %vm7086_vm14, %v3494_v16, %v3488_v14 }
 0x3ef   : > { %3686 = vrot.lane.b32.xlu0 %v5560_v17, %s4056_s12  ;;  %3676 = vrot.lane.b32.xlu1 %v3675_v20, %s4057_s21  ;;  %v3695_v51 = vpack.i.bf16 %v5857_v35, %v2156_v12 }
 0x3f0   : > { %2062 = vrot.lane.b32.xlu2 %v5567_v42, %s4054_s24  ;;  %v5827_v7 = vpop.permute.xlu0 %3571 }
 0x3f1   : > { %v5829_v53 = vpop.permute.xlu1 %3561  ;;  %v6851_v30 = vunpack.i.h.bf16 %v5827_v7  ;;  %v3573_v23 = vunpack.i.l.bf16 %v5827_v7 }
 0x3f2   : > { %v6854_v17 = vunpack.i.h.bf16 %v5829_v53  ;;  %v3563_v20 = vunpack.i.l.bf16 %v5829_v53 }
 0x3f4   : > { %v2046_v58 = vsel %vm1703_vm3, %v3563_v20, %v6854_v17  ;;  %v2010_v20 = vsel %vm1499_vm2, %v3573_v23, %v6851_v30  ;;  %v3514_v30 = vunpack.i.h.bf16 %v5727_v50 }
 0x3f5   : > { %2302 = vmatpush.msra.mxu0 %v2046_v58 }
 0x3f6   : > { %v2129_v17 = vsel %vm2128_vm15, %v3514_v30, %v3508_v26  ;;  %v3544_v26 = vunpack.i.h.bf16 %v5775_v56 }
 0x3f7   : > { %3691 = vrot.lane.b32.xlu0 %v3690_v34, %s4057_s21  ;;  %2081 = vrot.lane.b32.xlu1 %v5567_v42, %s4053_s20  ;;  %v3583_v34 = vunpack.i.l.bf16 %v3582_v52 }
 0x3f8   : > { %3696 = vrot.lane.b32.xlu2 %v3695_v51, %s4057_s21  ;;  %2303 = vmatpush.msra.mxu0 %v2028_v40  ;;  %v3587_v22 = vpop.permute.xlu0 %3586 }
 0x3f9   : > { %v5869_v14 = vpop.permute.xlu1 %3576  ;;  %v3588_v51 = vunpack.i.l.bf16 %v3587_v22  ;;  %v3589_v40 = vunpack.i.h.bf16 %v3587_v22  ;;  %v1976_v23 = vsel %vm1975_vm0, %v3583_v34, %v3474_v59  ;;  %v3598_v34 = vunpack.i.l.bf16 %v3597_v33  ;;  %vm7094_vm0 = vmmov %vm7086_vm14 }
 0x3fa   : > { %v6852_v12 = vunpack.i.h.bf16 %v5869_v14  ;;  %v3578_v58 = vunpack.i.l.bf16 %v5869_v14  ;;  %2304 = vmatpush.msra.mxu0 %v2010_v20  ;;  %v3504_v20 = vunpack.i.h.bf16 %v5730_v46  ;;  %vm7095_vm8 = vmmov %vm7094_vm0  ;;  %vm7096_vm14 = vcmask 1031168  }
 0x3fb   : > { %v1960_v22 = vsel %vm7092_vm12, %v3588_v51, %v3484_v19  ;;  %vm7098_vm12 = vcmask 1014784  }
 0x3fc   : > { %v1992_v32 = vsel %vm1991_vm5, %v3578_v58, %v6852_v12  ;;  %v2150_v12 = vsel %vm7093_vm1, %v3483_v27, %v3589_v40  ;;  %v1930_v4 = vsel %vm989_vm9, %v3598_v34, %v3504_v20  ;;  %v7101_v34 = vunpack.i.l.bf16 %v5754_v44  ;;  %vm7103_vm1 = vmmov %vm7096_vm14 }
 0x3fd   : > { %2305 = vmatpush.msra.mxu0 %v1992_v32  ;;  %v1891_v32 = vpop.permute.xlu2 %1890 }
 0x3ff   : > { %2026 = vrot.lane.b32.xlu0 %v5567_v42, %s4046_s16  ;;  %2044 = vrot.lane.b32.xlu1 %v5567_v42, %s4048_s23  ;;  %s4064_s16 = smov 28  }
 0x400   : > { %2008 = vrot.lane.b32.xlu2 %v5567_v42, %s4044_s13  ;;  %2306 = vmatpush.msra.mxu0 %v1976_v23  ;;  %v5888_v52 = vpop.permute.xlu0 %3601  ;;  %v5900_v23 = vsel %vm989_vm9, %v3504_v20, %v3498_v54  ;;  %v3559_v54 = vunpack.i.h.bf16 %v5800_v6 }
 0x401   : > { %v3592_v58 = vpop.permute.xlu1 %3591  ;;  %v3700_v27 = vpack.i.bf16 %v5900_v23, %v2150_v12  ;;  %v3604_v51 = vunpack.i.h.bf16 %v5888_v52  ;;  %v3603_v40 = vunpack.i.l.bf16 %v5888_v52  ;;  %v7097_v12 = vunpack.i.l.bf16 %v5778_v8  ;;  %v6139_v52 = vld [vmem:[%s6757_s3 + $0x8] sm:$0xff] }
 0x402   : > { %v3594_v62 = vunpack.i.h.bf16 %v3592_v58  ;;  %v3593_v59 = vunpack.i.l.bf16 %v3592_v58  ;;  %2307 = vmatpush.msra.mxu0 %v1960_v22  ;;  %v5924_v33 = vsel %vm7096_vm14, %v3559_v54, %v3548_v63  ;;  %v7099_v58 = vunpack.i.l.bf16 %v5727_v50  ;;  %vm7135_vm14 = vmmov %vm7094_vm0 }
 0x403   : > { %v5929_v20 = vsel %vm7098_vm12, %v3544_v26, %v7097_v12  ;;  %v3720_v50 = vpack.i.bf16 %v5924_v33, %v7101_v34 }
 0x404   : > { %v2144_v19 = vsel %vm7094_vm0, %v3493_v31, %v3594_v62  ;;  %v1945_v1 = vsel %vm7095_vm8, %v3593_v59, %v3494_v16  ;;  %v3529_v31 = vunpack.i.h.bf16 %v5754_v44  ;;  %v1915_v16 = vsel %vm1914_vm13, %v3603_v40, %v3604_v51  ;;  %vm7134_vm8 = vmmov %vm7103_vm1 }
 0x405   : > { %v3705_v13 = vpack.i.bf16 %v2129_v17, %v2144_v19  ;;  %2308 = vmatpush.msra.mxu0 %v1945_v1  ;;  %v2138_v17 = vsel %vm989_vm9, %v3503_v36, %v3599_v24  ;;  %v7100_v36 = vunpack.i.l.bf16 %v5757_v47  ;;  %v1861_v63 = vpop.permute.xlu2 %1860 }
 0x406   : > { %v1899_v46 = vsel %vm1898_vm6, %v1891_v32, %v3529_v31  ;;  %v1868_v47 = vsel %vm7103_vm1, %v1861_v63, %v3559_v54 }
 0x407   : > { %3701 = vrot.lane.b32.xlu1 %v3700_v27, %s4057_s21  ;;  %3706 = vrot.lane.b32.xlu0 %v3705_v13, %s4057_s21  ;;  %v5939_v29 = vsel %vm1898_vm6, %v3529_v31, %v7100_v36  ;;  %v7109_v36 = vunpack.i.h.bf16 %v5829_v53  ;;  %vm7131_vm6 = vmmov %vm7094_vm0 }
 0x408   : > { %2309 = vmatpush.msra.mxu0 %v1930_v4  ;;  %v1876_v30 = vpop.permute.xlu0 %1875  ;;  %v3710_v8 = vpack.i.bf16 %v5939_v29, %v2138_v17  ;;  %v7105_v4 = vunpack.i.h.bf16 %v5637_v38 }
 0x409   : > { %v2127_v62 = vpop.permute.xlu1 %2126 }
 0x40a   : > { %v2132_v22 = vsel %vm2128_vm15, %v7099_v58, %v2127_v62  ;;  %2310 = vmatpush.msra.mxu0 %v1915_v16  ;;  %vm7102_vm15 = vmmov %vm7098_vm12  ;;  %vm3274_vm12 = vcmask 7168  }
 0x40b   : > { %v3715_v59 = vpack.i.bf16 %v5929_v20, %v2132_v22  ;;  %v1883_v19 = vsel %vm7102_vm15, %v1876_v30, %v3544_v26  ;;  %v7104_v26 = vunpack.i.l.bf16 %v5800_v6  ;;  %vm3276_vm15 = vcmask 1024  }
 0x40c   : > { %2311 = vmatpush.msra.mxu0 %v1899_v46 }
 0x40d   : > { %3716 = vrot.lane.b32.xlu2 %v3715_v59, %s4057_s21  ;;  %v3730_v24 = vpack.i.bf16 %v5567_v42, %v7104_v26  ;;  %v7107_v42 = vunpack.i.h.bf16 %v5654_v48  ;;  %v7108_v48 = vunpack.i.h.bf16 %v5691_v9 }
 0x40e   : > { %2312 = vmatpush.msra.mxu0 %v1883_v19 }
 0x40f   : > { %3721 = vrot.lane.b32.xlu0 %v3720_v50, %s4057_s21  ;;  %3711 = vrot.lane.b32.xlu1 %v3710_v8, %s4057_s21 }
 0x410   : > { %2313 = vmatpush.msra.mxu0 %v1868_v47  ;;  %v5950_v32 = vpop.permute.xlu0 %3611 }
 0x411   : > { %v6857_v1 = vunpack.i.h.bf16 %v5950_v32  ;;  %v3613_v44 = vunpack.i.l.bf16 %v5950_v32  ;;  %v5954_v27 = vpop.permute.xlu1 %3606 }
 0x412   : > { %v6858_v40 = vunpack.i.h.bf16 %v5954_v27  ;;  %v3608_v13 = vunpack.i.l.bf16 %v5954_v27  ;;  %2314 = vmatpush.msra.mxu0 %v5591_v37  ;;  %v7106_v37 = vunpack.i.l.bf16 %v5775_v56 }
 0x413   : > { %v5965_v54 = vsel %vm2083_vm7, %v3613_v44, %v6857_v1  ;;  %v2085_v62 = vsel %vm2083_vm7, %v7107_v42, %v3613_v44  ;;  %v7110_v44 = vunpack.i.h.bf16 %v5780_v60 }
 0x414   : > { %v2102_v31 = vsel %vm2100_vm4, %v7105_v4, %v3608_v13  ;;  %v5973_v30 = vsel %vm2100_vm4, %v3608_v13, %v6858_v40  ;;  %v3725_v6 = vpack.i.bf16 %v5569_v57, %v7106_v37  ;;  %vm2229_vm4 = vcmask 703488  }
 0x415   : > { %2345 = vmatpush.msra.mxu2 %v2102_v31  ;;  %3731 = vrot.lane.b32.xlu2 %v3730_v24, %s4057_s21 }
 0x417   : > { %3726 = vrot.lane.b32.xlu1 %v3725_v6, %s4057_s21  ;;  %2346 = vmatpush.msra.mxu2 %v2085_v62 }
 0x418   : > { %v5983_v38 = vpop.permute.xlu0 %3626 }
 0x419   : > { %v6856_v16 = vunpack.i.h.bf16 %v5983_v38  ;;  %v3628_v17 = vunpack.i.l.bf16 %v5983_v38  ;;  %v3617_v12 = vpop.permute.xlu1 %3616 }
 0x41a   : > { %v3619_v56 = vunpack.i.h.bf16 %v3617_v12  ;;  %v3618_v58 = vunpack.i.l.bf16 %v3617_v12 }
 0x41b   : > { %v5990_v22 = vsel %vm1703_vm3, %v3628_v17, %v6856_v16  ;;  %v2047_v63 = vsel %vm1703_vm3, %v7109_v36, %v3628_v17 }
 0x41c   : > { %v2066_v59 = vsel %vm2064_vm11, %v7108_v48, %v3618_v58  ;;  %v5996_v46 = vsel %vm2064_vm11, %v3618_v58, %v3619_v56 }
 0x41d   : > { %2347 = vmatpush.msra.mxu2 %v2066_v59 }
 0x41f   : > { %2348 = vmatpush.msra.mxu2 %v2047_v63  ;;  %v7111_v63 = vunpack.i.h.bf16 %v5827_v7 }
 0x421   : > { %v6001_v8 = vpop.permute.xlu2 %3621 }
 0x422   : > { %v3624_v34 = vunpack.i.h.bf16 %v6001_v8  ;;  %v3623_v50 = vunpack.i.l.bf16 %v6001_v8 }
 0x424   : > { %v2255_v9 = vsel %vm2229_vm4, %v3623_v50, %v3624_v34 }
 0x425   : > { %2375 = vmatpush.msrb.mxu0 %v2255_v9 }
 0x429   : > { %v6008_v19 = vpop.permute.xlu2 %3636 }
 0x42a   : > { %v6855_v47 = vunpack.i.h.bf16 %v6008_v19  ;;  %v3638_v53 = vunpack.i.l.bf16 %v6008_v19 }
 0x42c   : > { %v2029_v13 = vsel %vm1601_vm10, %v7110_v44, %v3638_v53  ;;  %v6018_v26 = vsel %vm1601_vm10, %v3638_v53, %v6855_v47  ;;  %v6057_v44 = vld [vmem:[%s6757_s3] sm:$0xff] }
 0x42d   : > { %2349 = vmatpush.msra.mxu2 %v2029_v13  ;;  %2315 = vmatmul.f32.vlgmr.msra.gmra.mxu0 %v6057_v44 }
 0x431   : > { %v6020_v24 = vpop.permute.xlu2 %3651 }
 0x432   : > { %v6859_v58 = vunpack.i.h.bf16 %v6020_v24  ;;  %v3653_v48 = vunpack.i.l.bf16 %v6020_v24 }
 0x434   : > { %v2246_v7 = vsel %vm2229_vm4, %v3653_v48, %v6859_v58  ;;  %v7112_v58 = vunpack.i.h.bf16 %v5869_v14 }
 0x438   : > { %v6022_v4 = vpop.permute.xlu1 %3631 }
 0x439   : > { %v6861_v31 = vunpack.i.h.bf16 %v6022_v4  ;;  %v3633_v37 = vunpack.i.l.bf16 %v6022_v4  ;;  %v6026_v6 = vpop.permute.xlu2 %3666 }
 0x43b   : > { %v2252_v60 = vsel %vm2229_vm4, %v3633_v37, %v6861_v31 }
 0x43c   : > { %2376 = vmatpush.msrb.mxu0 %v2252_v60  ;;  %v6863_v60 = vunpack.i.h.bf16 %v6026_v6 }
 0x440   : > { %v6033_v42 = vpop.permute.xlu1 %3646 }
 0x441   : > { %v6035_v62 = vpop.permute.xlu0 %3641  ;;  %v3648_v17 = vunpack.i.l.bf16 %v6033_v42  ;;  %v6038_v12 = vpop.permute.xlu2 %3681 }
 0x442   : > { %v6860_v59 = vunpack.i.h.bf16 %v6035_v62  ;;  %v3643_v36 = vunpack.i.l.bf16 %v6035_v62 }
 0x443   : > { %v2011_v9 = vsel %vm1499_vm2, %v7111_v63, %v3648_v17  ;;  %v3668_v63 = vunpack.i.l.bf16 %v6026_v6 }
 0x444   : > { %2350 = vmatpush.msra.mxu2 %v2011_v9  ;;  %v2249_v53 = vsel %vm2229_vm4, %v3643_v36, %v6860_v59 }
 0x445   : > { %2377 = vmatpush.msrb.mxu0 %v2249_v53  ;;  %v2240_v31 = vsel %vm2229_vm4, %v3668_v63, %v6863_v60 }
 0x447   : > { %2378 = vmatpush.msrb.mxu0 %v2246_v7 }
 0x448   : > { %v6065_v13 = vpop.permute.xlu1 %3661 }
 0x449   : > { %v6069_v9 = vpop.permute.xlu0 %3656  ;;  %v6862_v53 = vunpack.i.h.bf16 %v6065_v13  ;;  %v3663_v47 = vunpack.i.l.bf16 %v6065_v13 }
 0x44a   : > { %v3658_v16 = vunpack.i.l.bf16 %v6069_v9  ;;  %v2063_v1 = vpop.permute.xlu2 %2062 }
 0x44b   : > { %v2243_v7 = vsel %vm2229_vm4, %v3663_v47, %v6862_v53  ;;  %v6080_v40 = vsel %vm2064_vm11, %v3619_v56, %v2063_v1  ;;  %v6095_v53 = vld [vmem:[%s6757_s3 + $0x10] sm:$0xff]  ;;  %vm7130_vm11 = vmmov %vm7103_vm1 }
 0x44c   : > { %v1993_v59 = vsel %vm1991_vm5, %v7112_v58, %v3658_v16  ;;  %2379 = vmatpush.msrb.mxu0 %v2243_v7 }
 0x44d   : > { %2351 = vmatpush.msra.mxu2 %v1993_v59  ;;  %2318 = vmatmul.f32.gmra.mxu0 %v6095_v53 }
 0x44e   : > { %2380 = vmatpush.msrb.mxu0 %v2240_v31 }
 0x44f   : > { %2352 = vmatpush.msra.mxu2 %v5839_v61 }
 0x451   : > { %2353 = vmatpush.msra.mxu2 %v5834_v2  ;;  %v6867_v2 = vunpack.i.h.bf16 %v6038_v12 }
 0x452   : > { %v3697_v14 = vpop.permute.xlu2 %3696 }
 0x453   : > { %v3698_v1 = vunpack.i.l.bf16 %v3697_v14  ;;  %2354 = vmatpush.msra.mxu2 %v5857_v35 }
 0x455   : > { %2355 = vmatpush.msra.mxu2 %v5900_v23  ;;  %v2256_v56 = vsel %vm2229_vm4, %v3624_v34, %v3698_v1  ;;  %v3683_v34 = vunpack.i.l.bf16 %v6038_v12 }
 0x456   : > { %2421 = vmatpush.msra.mxu3 %v2256_v56 }
 0x459   : > { %v6103_v58 = vpop.permute.xlu0 %3671 }
 0x45a   : > { %v6864_v59 = vunpack.i.h.bf16 %v6103_v58  ;;  %v6865_v31 = vunpack.i.l.bf16 %v6103_v58 }
 0x45c   : > { %v2237_v61 = vsel %vm2229_vm4, %v6865_v31, %v6864_v59  ;;  %v2231_v31 = vsel %vm2229_vm4, %v3683_v34, %v6867_v2  ;;  %v3699_v2 = vunpack.i.h.bf16 %v3697_v14 }
 0x45d   : > { %2381 = vmatpush.msrb.mxu0 %v2237_v61 }
 0x461   : > { %v6113_v35 = vpop.permute.xlu0 %3686  ;;  %v6115_v23 = vpop.permute.xlu1 %3676 }
 0x462   : > { %v3688_v7 = vunpack.i.l.bf16 %v6113_v35  ;;  %v6866_v56 = vunpack.i.h.bf16 %v6115_v23  ;;  %v3678_v60 = vunpack.i.l.bf16 %v6115_v23 }
 0x464   : > { %v1916_v61 = vsel %vm1914_vm13, %v3604_v51, %v3688_v7  ;;  %v2234_v59 = vsel %vm2229_vm4, %v3678_v60, %v6866_v56 }
 0x465   : > { %2356 = vmatpush.msra.mxu2 %v1916_v61  ;;  %2382 = vmatpush.msrb.mxu0 %v2234_v59 }
 0x467   : > { %2357 = vmatpush.msra.mxu2 %v5939_v29  ;;  %2383 = vmatpush.msrb.mxu0 %v2231_v31 }
 0x468   : > { %3342 = vmatmul.msk.f32.vlgmr.msrb.gmra.mxu0 %vm989_vm9, %v6139_v52 }
 0x469   : > { %2391 = vmatpush.msra.mxu0 %v5973_v30  ;;  %v3692_v51 = vpop.permute.xlu0 %3691  ;;  %v6143_v56 = vpop.permute.xlu1 %2081  ;;  %2358 = vmatpush.msra.mxu2 %v5929_v20  ;;  %v3649_v30 = vunpack.i.h.bf16 %v6033_v42 }
 0x46a   : > { %v3694_v59 = vunpack.i.h.bf16 %v3692_v51  ;;  %v3693_v61 = vunpack.i.l.bf16 %v3692_v51 }
 0x46b   : > { %2392 = vmatpush.msra.mxu0 %v5965_v54  ;;  %2359 = vmatpush.msra.mxu2 %v5924_v33  ;;  %v3659_v33 = vunpack.i.h.bf16 %v6069_v9  ;;  %v2248_v54 = vsel %vm2229_vm4, %v3699_v2, %v3643_v36  ;;  %v7113_v2 = vunpack.i.h.bf16 %v6022_v4 }
 0x46c   : > { %v2254_v29 = vsel %vm2229_vm4, %v3693_v61, %v3623_v50  ;;  %v2251_v20 = vsel %vm2229_vm4, %v3694_v59, %v3633_v37  ;;  %v6180_v50 = vpop.permute.xlu2 %2008  ;;  %v3689_v37 = vunpack.i.h.bf16 %v6113_v35 }
 0x46d   : > { %2393 = vmatpush.msra.mxu0 %v5996_v46  ;;  %2329 = vmatpush.msra.mxu1 %v2254_v29  ;;  %v1994_v8 = vsel %vm1991_vm5, %v3658_v16, %v3659_v33  ;;  %vm7132_vm5 = vmmov %vm7094_vm0 }
 0x46e   : > { %2360 = vmatpush.msra.mxu2 %v5569_v57 }
 0x46f   : > { %2394 = vmatpush.msra.mxu0 %v5990_v22  ;;  %2330 = vmatpush.msra.mxu1 %v2251_v20  ;;  %v2012_v22 = vsel %vm1499_vm2, %v3648_v17, %v3649_v30 }
 0x470   : > { %2467 = vmatpush.msrb.mxu2 %v3698_v1 }
 0x471   : > { %2361 = vmatmul.f32.vlgmr.msra.gmra.mxu2 %v6057_v44  ;;  %2395 = vmatpush.msra.mxu0 %v6018_v26  ;;  %v6166_v46 = vpop.permute.xlu0 %2026  ;;  %v6168_v57 = vpop.permute.xlu1 %2044  ;;  %v6186_v26 = vld [vmem:[%s6757_s3 + $0x18] sm:$0xff] }
 0x472   : > { %2331 = vmatpush.msra.mxu1 %v2248_v54  ;;  %3343 = vmatmul.msk.f32.gmra.mxu0 %vm989_vm9, %v6186_v26 }
 0x473   : > { %2396 = vmatpush.msra.mxu0 %v2012_v22 }
 0x474   : > { %v3717_v51 = vpop.permute.xlu2 %3716 }
 0x475   : > { %2397 = vmatpush.msra.mxu0 %v1994_v8  ;;  %v3719_v29 = vunpack.i.h.bf16 %v3717_v51  ;;  %v3718_v54 = vunpack.i.l.bf16 %v3717_v51 }
 0x477   : > { %2398 = vmatpush.msra.mxu0 %v5679_v45 }
 0x479   : > { %2364 = vmatmul.f32.gmra.mxu2 %v6095_v53  ;;  %2399 = vmatpush.msra.mxu0 %v5666_v43  ;;  %v3702_v16 = vpop.permute.xlu1 %3701  ;;  %v3707_v17 = vpop.permute.xlu0 %3706 }
 0x47a   : > { %v3704_v36 = vunpack.i.h.bf16 %v3702_v16  ;;  %v3709_v14 = vunpack.i.h.bf16 %v3707_v17  ;;  %v3703_v45 = vunpack.i.l.bf16 %v3702_v16  ;;  %v3708_v1 = vunpack.i.l.bf16 %v3707_v17 }
 0x47b   : > { %2400 = vmatpush.msra.mxu0 %v5713_v11  ;;  %v1917_v11 = vsel %vm1914_vm13, %v3688_v7, %v3689_v37 }
 0x47c   : > { %2468 = vmatpush.msrb.mxu2 %v3703_v45  ;;  %v2245_v31 = vsel %vm2229_vm4, %v3704_v36, %v3653_v48  ;;  %v2253_v43 = vsel %vm2229_vm4, %v7113_v2, %v3703_v45  ;;  %v7114_v48 = vunpack.i.h.bf16 %v6035_v62  ;;  %v7115_v62 = vunpack.i.h.bf16 %v6020_v24  ;;  %v3732_v36 = vpop.permute.xlu2 %3731 }
 0x47d   : > { %2401 = vmatpush.msra.mxu0 %v5743_v5  ;;  %2332 = vmatpush.msra.mxu1 %v2245_v31  ;;  %v2242_v5 = vsel %vm2229_vm4, %v3709_v14, %v3663_v47  ;;  %v7118_v24 = vunpack.i.h.bf16 %v5954_v27  ;;  %v3733_v2 = vunpack.i.l.bf16 %v3732_v36 }
 0x47e   : > { %2422 = vmatpush.msra.mxu3 %v2253_v43  ;;  %2469 = vmatpush.msrb.mxu2 %v3708_v1  ;;  %v2250_v4 = vsel %vm2229_vm4, %v7114_v48, %v3708_v1 }
 0x47f   : > { %2402 = vmatpush.msra.mxu0 %v1917_v11  ;;  %2333 = vmatpush.msra.mxu1 %v2242_v5 }
 0x480   : > { %2423 = vmatpush.msra.mxu3 %v2250_v4 }
 0x481   : > { %2403 = vmatpush.msra.mxu0 %v5771_v28  ;;  %v3722_v59 = vpop.permute.xlu0 %3721  ;;  %v3712_v61 = vpop.permute.xlu1 %3711 }
 0x482   : > { %v3714_v20 = vunpack.i.h.bf16 %v3712_v61  ;;  %v3713_v7 = vunpack.i.l.bf16 %v3712_v61  ;;  %v3724_v22 = vunpack.i.h.bf16 %v3722_v59  ;;  %v3723_v8 = vunpack.i.l.bf16 %v3722_v59 }
 0x483   : > { %2404 = vmatpush.msra.mxu0 %v5794_v49  ;;  %v7116_v49 = vunpack.i.l.bf16 %v6103_v58 }
 0x484   : > { %2470 = vmatpush.msrb.mxu2 %v3713_v7  ;;  %v2239_v47 = vsel %vm2229_vm4, %v3714_v20, %v3668_v63  ;;  %v2247_v28 = vsel %vm2229_vm4, %v7115_v62, %v3713_v7  ;;  %v7119_v63 = vunpack.i.h.bf16 %v6026_v6 }
 0x485   : > { %2405 = vmatpush.msra.mxu0 %v5817_v10  ;;  %2334 = vmatpush.msra.mxu1 %v2239_v47  ;;  %v2236_v16 = vsel %vm2229_vm4, %v3719_v29, %v7116_v49  ;;  %v7117_v10 = vunpack.i.h.bf16 %v6065_v13  ;;  %v7120_v13 = vunpack.i.h.bf16 %v5950_v32  ;;  %v3734_v32 = vunpack.i.h.bf16 %v3732_v36 }
 0x486   : > { %2424 = vmatpush.msra.mxu3 %v2247_v28  ;;  %2471 = vmatpush.msrb.mxu2 %v3718_v54  ;;  %v2241_v14 = vsel %vm2229_vm4, %v7119_v63, %v3723_v8 }
 0x487   : > { %2406 = vmatpush.msra.mxu0 %v5553_v41  ;;  %v2244_v17 = vsel %vm2229_vm4, %v7117_v10, %v3718_v54  ;;  %2335 = vmatpush.msra.mxu1 %v2236_v16  ;;  %v2233_v41 = vsel %vm2229_vm4, %v3724_v22, %v3678_v60  ;;  %v2087_v1 = vsel %vm2083_vm7, %v7120_v13, %v6143_v56  ;;  %v7121_v60 = vunpack.i.h.bf16 %v6103_v58  ;;  %vm7129_vm7 = vmmov %vm7094_vm0 }
 0x488   : > { %2425 = vmatpush.msra.mxu3 %v2244_v17  ;;  %2472 = vmatpush.msrb.mxu2 %v3723_v8  ;;  %v7122_v56 = vunpack.i.h.bf16 %v5983_v38  ;;  %v7124_v58 = vunpack.i.h.bf16 %v6008_v19  ;;  %v7125_v38 = vunpack.i.h.bf16 %v6038_v12 }
 0x489   : > { %2437 = vmatpush.msrb.mxu0 %v7118_v24  ;;  %v3727_v45 = vpop.permute.xlu1 %3726  ;;  %2336 = vmatpush.msra.mxu1 %v2233_v41 }
 0x48a   : > { %2426 = vmatpush.msra.mxu3 %v2241_v14  ;;  %v3729_v31 = vunpack.i.h.bf16 %v3727_v45  ;;  %v3728_v27 = vunpack.i.l.bf16 %v3727_v45  ;;  %2407 = vmatmul.f32.vlgmr.msra.gmra.mxu0 %v6057_v44  ;;  %v2049_v51 = vsel %vm1703_vm3, %v7122_v56, %v6168_v57  ;;  %v2031_v11 = vsel %vm1601_vm10, %v7124_v58, %v6166_v46  ;;  %vm7126_vm3 = vmmov %vm7103_vm1 }
 0x48b   : > { %2438 = vmatpush.msrb.mxu0 %v2087_v1  ;;  %v2232_v57 = vsel %vm2229_vm4, %v7125_v38, %v3734_v32  ;;  %vm7127_vm10 = vmmov %vm7094_vm0 }
 0x48c   : > { %2473 = vmatpush.msrb.mxu2 %v3728_v27  ;;  %v2230_v6 = vsel %vm2229_vm4, %v3729_v31, %v3683_v34  ;;  %v2238_v43 = vsel %vm2229_vm4, %v7121_v60, %v3728_v27 }
 0x48d   : > { %2439 = vmatpush.msrb.mxu0 %v6080_v40  ;;  %2337 = vmatpush.msra.mxu1 %v2230_v6  ;;  %v7123_v40 = vunpack.i.h.bf16 %v6115_v23  ;;  %v2013_v23 = vsel %vm1499_vm2, %v3649_v30, %v6180_v50  ;;  %vm7128_vm2 = vmmov %vm7103_vm1 }
 0x48e   : > { %2427 = vmatpush.msra.mxu3 %v2238_v43  ;;  %3340 = vmatmul.msk.f32.vlgmr.msra.gmra.mxu1 %vm989_vm9, %v6139_v52 }
 0x48f   : > { %2440 = vmatpush.msrb.mxu0 %v2049_v51  ;;  %v2235_v34 = vsel %vm2229_vm4, %v7123_v40, %v3733_v2  ;;  %2474 = vmatpush.msrb.mxu2 %v3733_v2 }
 0x490   : > { %2428 = vmatpush.msra.mxu3 %v2235_v34 }
 0x491   : > { %2441 = vmatpush.msrb.mxu0 %v2031_v11  ;;  %2475 = vmatpush.msrb.mxu2 %v3734_v32 }
 0x492   : > { %2429 = vmatpush.msra.mxu3 %v2232_v57  ;;  %2410 = vmatmul.f32.gmra.mxu0 %v6095_v53 }
 0x493   : > { %2442 = vmatpush.msrb.mxu0 %v2013_v23  ;;  %3344 = vmatmul.msk.f32.vlgmr.msra.gmra.mxu3 %vm989_vm9, %v6139_v52 }
 0x494   : > { %3346 = vmatmul.msk.f32.vlgmr.msrb.gmra.mxu2 %vm989_vm9, %v6139_v52 }
 0x495   : > { %2443 = vmatpush.msrb.mxu0 %v3659_v33 }
 0x496   : > { %3341 = vmatmul.msk.f32.gmra.mxu1 %vm989_vm9, %v6186_v26 }
 0x497   : > { %2444 = vmatpush.msrb.mxu0 %v5649_v21 }
 0x499   : > { %2445 = vmatpush.msrb.mxu0 %v5645_v3 }
 0x49b   : > { %2446 = vmatpush.msrb.mxu0 %v5699_v39  ;;  %3345 = vmatmul.msk.f32.gmra.mxu3 %vm989_vm9, %v6186_v26 }
 0x49c   : > { %3347 = vmatmul.msk.f32.gmra.mxu2 %vm989_vm9, %v6186_v26 }
 0x49d   : > { %2447 = vmatpush.msrb.mxu0 %v5724_v18 }
 0x49f   : > { %2448 = vmatpush.msrb.mxu0 %v3689_v37 }
 0x4a1   : > { %2449 = vmatpush.msrb.mxu0 %v5760_v0 }
 0x4a3   : > { %2450 = vmatpush.msrb.mxu0 %v5783_v55 }
 0x4a5   : > { %2451 = vmatpush.msrb.mxu0 %v5806_v25 }
 0x4a7   : > { %2452 = vmatpush.msrb.mxu0 %v5555_v15 }
 0x4a8   : > { %2453 = vmatmul.f32.vlgmr.msrb.gmra.mxu0 %v6057_v44 }
 0x4aa   : > { %v2316_v3 = vpop.f32.mrf.mxu0 }
 0x4b0   : > { %2456 = vmatmul.f32.gmra.mxu0 %v6095_v53 }
 0x4ca   : > { %v2319_v21 = vpop.f32.mrf.mxu0 }
 0x4e5   : > { %v2385_v39 = vpop.f32.mrf.mxu0 }
 0x4ef   : > { %v2388_v0 = vpop.f32.mrf.mxu0 }
 0x4f4   : > { %v2362_v19 = vpop.f32.mrf.mxu2 }
 0x4f5   : > { %v6293_v18 = vadd.f32 %v2385_v39, %v2362_v19 }
 0x4f7   : > { %2491 = vrot.lane.b32.xlu0 %v6293_v18, %s4026_s26  ;;  %2521 = vrot.lane.b32.xlu1 %v6293_v18, %s4034_s15 }
 0x4fc   : > { %v2365_v15 = vpop.f32.mrf.mxu2 }
 0x4fd   : > { %v6302_v12 = vadd.f32 %v2388_v0, %v2365_v15 }
 0x507   : > { %v2408_v42 = vpop.f32.mrf.mxu0 }
 0x50b   : > { %v2339_v55 = vpop.f32.mrf.mxu1 }
 0x50c   : > { %v2340_v25 = vadd.f32 %v2339_v55, %v2316_v3 }
 0x50e   : > { %2489 = vrot.lane.b32.xlu2 %v2340_v25, %s4026_s26  ;;  %2553 = vrot.lane.b32.xlu1 %v2340_v25, %s4036_s19 }
 0x50f   : > { %2519 = vrot.lane.b32.xlu0 %v2340_v25, %s4034_s15  ;;  %v2411_v53 = vpop.f32.mrf.mxu0 }
 0x513   : > { %v2342_v44 = vpop.f32.mrf.mxu1 }
 0x514   : > { %v2343_v9 = vadd.f32 %v2342_v44, %v2319_v21 }
 0x516   : > { %2555 = vrot.lane.b32.xlu2 %v6293_v18, %s4036_s19  ;;  %2497 = vrot.lane.b32.xlu1 %v6302_v12, %s4026_s26  ;;  %v2431_v35 = vpop.f32.mrf.mxu3 }
 0x517   : > { %2495 = vrot.lane.b32.xlu0 %v2343_v9, %s4026_s26  ;;  %v6314_v52 = vadd.f32 %v2431_v35, %v2408_v42  ;;  %v2477_v33 = vpop.f32.mrf.mxu2 }
 0x51e   : > { %2529 = vrot.lane.b32.xlu2 %v6302_v12, %s4034_s15  ;;  %2527 = vrot.lane.b32.xlu1 %v2343_v9, %s4034_s15  ;;  %v2434_v46 = vpop.f32.mrf.mxu3 }
 0x51f   : > { %2563 = vrot.lane.b32.xlu0 %v6302_v12, %s4036_s19  ;;  %v6321_v50 = vadd.f32 %v2434_v46, %v2411_v53  ;;  %v2480_v37 = vpop.f32.mrf.mxu2 }
 0x525   : > { %v2454_v30 = vpop.f32.mrf.mxu0 }
 0x526   : > { %2561 = vrot.lane.b32.xlu2 %v2343_v9, %s4036_s19  ;;  %2523 = vrot.lane.b32.xlu1 %v6314_v52, %s4034_s15  ;;  %v2478_v5 = vadd.f32 %v2477_v33, %v2454_v30 }
 0x527   : > { %2493 = vrot.lane.b32.xlu0 %v6314_v52, %s4026_s26 }
 0x52d   : > { %v2457_v26 = vpop.f32.mrf.mxu0 }
 0x52e   : > { %2557 = vrot.lane.b32.xlu2 %v6314_v52, %s4036_s19  ;;  %2531 = vrot.lane.b32.xlu1 %v6321_v50, %s4034_s15  ;;  %v2481_v48 = vadd.f32 %v2480_v37, %v2457_v26 }
 0x52f   : > { %2499 = vrot.lane.b32.xlu0 %v6321_v50, %s4026_s26  ;;  %s4058_s26 = smov 4  }
 0x536   : > { %2567 = vrot.lane.b32.xlu1 %v2481_v48, %s4036_s19  ;;  %2525 = vrot.lane.b32.xlu2 %v2478_v5, %s4034_s15 }
 0x537   : > { %2565 = vrot.lane.b32.xlu0 %v6321_v50, %s4036_s19 }
 0x53e   : > { %2533 = vrot.lane.b32.xlu2 %v2481_v48, %s4034_s15  ;;  %s4059_s15 = smov 116  }
 0x53f   : > { %2559 = vrot.lane.b32.xlu0 %v2478_v5, %s4036_s19  ;;  %s7133_s19 = smov 40   ;;  %v405_v5 = vld [vmem:[%s6758_s4 + $0x70] sm:$0xff] }
 0x568   : > { %v2490_v4 = vpop.permute.xlu2 %2489 }
 0x569   : > { %v2522_v59 = vpop.permute.xlu1 %2521  ;;  %v2492_v61 = vpop.permute.xlu0 %2491 }
 0x56a   : > { %v2501_v20 = vsel %vm7126_vm3, %v2490_v4, %v2492_v61 }
 0x56b   : > { %v2511_v54 = vmax.f32 %v2340_v25, %v2501_v20  ;;  %v403_v20 = vld [vmem:[%s6758_s4 + $0x60] sm:$0xff] }
 0x570   : > { %v2556_v29 = vpop.permute.xlu2 %2555 }
 0x578   : > { %v6340_v49 = vpop.permute.xlu2 %2529 }
 0x580   : > { %v2554_v7 = vpop.permute.xlu1 %2553  ;;  %v2562_v41 = vpop.permute.xlu2 %2561 }
 0x581   : > { %v2520_v22 = vpop.permute.xlu0 %2519  ;;  %v2569_v28 = vsel %vm7127_vm10, %v2554_v7, %v2556_v29 }
 0x582   : > { %v2535_v47 = vsel %vm989_vm9, %v2520_v22, %v2522_v59  ;;  %v402_v22 = vld [vmem:[%s6758_s4 + $0x58] sm:$0xff] }
 0x583   : > { %v2547_v62 = vmax.f32 %v2511_v54, %v2535_v47  ;;  %v406_v47 = vld [vmem:[%s6758_s4 + $0x78] sm:$0xff] }
 0x585   : > { %v6338_v8 = vmax.f32 %v2547_v62, %v2569_v28 }
 0x587   : > { %2625 = vrot.lane.b32.xlu2 %v6338_v8, %s4058_s26  ;;  %2619 = vrot.lane.b32.xlu1 %v6338_v8, %s4053_s20 }
 0x588   : > { %2601 = vrot.lane.b32.xlu0 %v6338_v8, %s4059_s15  ;;  %v2498_v16 = vpop.permute.xlu1 %2497  ;;  %v2558_v6 = vpop.permute.xlu2 %2557 }
 0x589   : > { %v2496_v10 = vpop.permute.xlu0 %2495  ;;  %v2570_v56 = vsel %vm7131_vm6, %v2556_v29, %v2558_v6 }
 0x58a   : > { %v2503_v17 = vsel %vm7128_vm2, %v2496_v10, %v2498_v16 }
 0x58b   : > { %v2514_v36 = vmax.f32 %v2343_v9, %v2503_v17  ;;  %v399_v17 = vld [vmem:[%s6758_s4 + $0x40] sm:$0xff] }
 0x58f   : > { %2607 = vrot.lane.b32.xlu2 %v6338_v8, %s4044_s13  ;;  %2613 = vrot.lane.b32.xlu1 %v6338_v8, %s4048_s23 }
 0x590   : > { %v2528_v24 = vpop.permute.xlu1 %2527  ;;  %v2526_v34 = vpop.permute.xlu2 %2525 }
 0x591   : > { %v2538_v63 = vsel %vm989_vm9, %v2528_v24, %v6340_v49  ;;  %v2564_v14 = vpop.permute.xlu0 %2563 }
 0x592   : > { %v2550_v45 = vmax.f32 %v2514_v36, %v2538_v63  ;;  %v2572_v13 = vsel %vm7129_vm7, %v2562_v41, %v2564_v14  ;;  %v400_v63 = vld [vmem:[%s6758_s4 + $0x48] sm:$0xff] }
 0x594   : > { %v6356_v1 = vmax.f32 %v2550_v45, %v2572_v13 }
 0x596   : > { %2621 = vrot.lane.b32.xlu0 %v6356_v1, %s4053_s20  ;;  %s4063_s20 = smov 24  }
 0x597   : > { %2595 = vrot.lane.b32.xlu1 %v6338_v8, %s4056_s12  ;;  %2615 = vrot.lane.b32.xlu2 %v6356_v1, %s4048_s23  ;;  %s4062_s23 = smov 20  }
 0x598   : > { %v2524_v31 = vpop.permute.xlu1 %2523  ;;  %v2534_v39 = vpop.permute.xlu2 %2533 }
 0x599   : > { %v2494_v27 = vpop.permute.xlu0 %2493  ;;  %v2536_v43 = vsel %vm989_vm9, %v2522_v59, %v2524_v31  ;;  %v2537_v57 = vsel %vm989_vm9, %v2524_v31, %v2526_v34 }
 0x59a   : > { %v2502_v2 = vsel %vm7130_vm11, %v2492_v61, %v2494_v27  ;;  %v2513_v38 = vmax.f32 %v6314_v52, %v2494_v27  ;;  %v404_v61 = vld [vmem:[%s6758_s4 + $0x68] sm:$0xff] }
 0x59b   : > { %v2512_v60 = vmax.f32 %v6293_v18, %v2502_v2 }
 0x59c   : > { %v2549_v23 = vmax.f32 %v2513_v38, %v2537_v57  ;;  %v397_v38 = vld [vmem:[%s6758_s4 + $0x30] sm:$0xff] }
 0x59d   : > { %v2548_v32 = vmax.f32 %v2512_v60, %v2536_v43  ;;  %v396_v60 = vld [vmem:[%s6758_s4 + $0x28] sm:$0xff] }
 0x59e   : > { %2609 = vrot.lane.b32.xlu0 %v6356_v1, %s4044_s13  ;;  %s4061_s13 = smov 48  }
 0x59f   : > { %v2582_v51 = vmax.f32 %v2548_v32, %v2570_v56  ;;  %2597 = vrot.lane.b32.xlu2 %v6356_v1, %s4056_s12  ;;  %2627 = vrot.lane.b32.xlu1 %v6356_v1, %s4058_s26  ;;  %s4060_s12 = smov 36   ;;  %v398_v56 = vld [vmem:[%s6758_s4 + $0x38] sm:$0xff] }
 0x5a0   : > { %v2532_v11 = vpop.permute.xlu1 %2531 }
 0x5a1   : > { %v2500_v40 = vpop.permute.xlu0 %2499  ;;  %v2540_v55 = vsel %vm989_vm9, %v2532_v11, %v2534_v39  ;;  %v2539_v53 = vsel %vm989_vm9, %v6340_v49, %v2532_v11  ;;  %v401_v49 = vld [vmem:[%s6758_s4 + $0x50] sm:$0xff]  ;;  %v395_v39 = vld [vmem:[%s6758_s4 + $0x20] sm:$0xff]  ;;  %vm3247_vm9 = vcmask 1043456  }
 0x5a2   : > { %v2516_v18 = vmax.f32 %v6321_v50, %v2500_v40  ;;  %v2504_v42 = vsel %vm7134_vm8, %v2498_v16, %v2500_v40 }
 0x5a3   : > { %v2515_v9 = vmax.f32 %v6302_v12, %v2504_v42 }
 0x5a4   : > { %v2552_v15 = vmax.f32 %v2516_v18, %v2540_v55 }
 0x5a5   : > { %v2551_v52 = vmax.f32 %v2515_v9, %v2539_v53 }
 0x5a6   : > { %2591 = vrot.lane.b32.xlu0 %v6356_v1, %s4028_s28 }
 0x5a7   : > { %2603 = vrot.lane.b32.xlu1 %v6356_v1, %s4059_s15 }
 0x5a8   : > { %v2568_v0 = vpop.permute.xlu1 %2567 }
 0x5a9   : > { %v2566_v58 = vpop.permute.xlu0 %2565 }
 0x5aa   : > { %v2574_v25 = vsel %vm7094_vm0, %v2566_v58, %v2568_v0  ;;  %v2573_v35 = vsel %vm7135_vm14, %v2564_v14, %v2566_v58 }
 0x5ab   : > { %v2586_v44 = vmax.f32 %v2552_v15, %v2574_v25  ;;  %v2585_v30 = vmax.f32 %v2551_v52, %v2573_v35  ;;  %v394_v15 = vld [vmem:[%s6758_s4 + $0x18] sm:$0xff]  ;;  %v392_v52 = vld [vmem:[%s6758_s4 + $0x8] sm:$0xff] }
 0x5b1   : > { %v2560_v3 = vpop.permute.xlu0 %2559 }
 0x5b2   : > { %v2571_v21 = vsel %vm7132_vm5, %v2558_v6, %v2560_v3 }
 0x5b3   : > { %v2583_v19 = vmax.f32 %v2549_v23, %v2571_v21 }
 0x5b5   : > { %2665 = vrot.lane.b32.xlu1 %v2583_v19, %s4039_s22  ;;  %2671 = vrot.lane.b32.xlu0 %v2583_v19, %s7133_s19 }
 0x5b6   : > { %2677 = vrot.lane.b32.xlu2 %v2583_v19, %s4060_s12 }
 0x5bd   : > { %2673 = vrot.lane.b32.xlu1 %v2586_v44, %s7133_s19  ;;  %2679 = vrot.lane.b32.xlu0 %v2586_v44, %s4060_s12 }
 0x5be   : > { %2659 = vrot.lane.b32.xlu2 %v2583_v19, %s4061_s13 }
 0x5c5   : > { %2653 = vrot.lane.b32.xlu1 %v2585_v30, %s4062_s23  ;;  %2661 = vrot.lane.b32.xlu0 %v2586_v44, %s4061_s13 }
 0x5c6   : > { %2667 = vrot.lane.b32.xlu2 %v2586_v44, %s4039_s22 }
 0x5cd   : > { %2647 = vrot.lane.b32.xlu1 %v2585_v30, %s4063_s20  ;;  %2651 = vrot.lane.b32.xlu0 %v2582_v51, %s4062_s23 }
 0x5ce   : > { %2589 = vrot.lane.b32.xlu2 %v6338_v8, %s4028_s28 }
 0x5d5   : > { %2639 = vrot.lane.b32.xlu1 %v2582_v51, %s4064_s16  ;;  %2641 = vrot.lane.b32.xlu0 %v2585_v30, %s4064_s16  ;;  %s3364_s16 = sshll.u32 %s7137_s18, 4 }
 0x5d6   : > { %2645 = vrot.lane.b32.xlu2 %v2582_v51, %s4063_s20  ;;  %s383_s30 = scalar_lea.vmem %s6765_s11, %s3364_s16 }
 0x5dd   : > { %2633 = vrot.lane.b32.xlu0 %v2582_v51, %s4065_s25 }
 0x5de   : > { %2635 = vrot.lane.b32.xlu2 %v2585_v30, %s4065_s25 }
 0x5e1   : > { %v2626_v12 = vpop.permute.xlu2 %2625 }
 0x5e2   : > { %v2697_v29 = vadd.f32 %v2626_v12, %v405_v5 }
 0x5e4   : > { %v2729_v54 = vsub.f32 0.0, %v2697_v29  ;;  %v391_v29 = vld [vmem:[%s6758_s4] sm:$0xff] }
 0x5e6   : > { %v2775_v41 = vmul.f32 1.442695, %v2729_v54 }
 0x5e8   : > { %3760 = vpow2.f32 %v2775_v41 }
 0x5e9   : > { %v2608_v33 = vpop.permute.xlu2 %2607 }
 0x5ea   : > { %v2691_v27 = vadd.f32 %v2608_v33, %v399_v17 }
 0x5ec   : > { %v2723_v58 = vsub.f32 0.0, %v2691_v27 }
 0x5ee   : > { %v3761_v0 = vpop.eup %3760  ;;  %v2763_v55 = vmul.f32 1.442695, %v2723_v58 }
 0x5ef   : > { %v2825_v12 = vadd.f32 1.0, %v3761_v0 }
 0x5f1   : > { %v2616_v50 = vpop.permute.xlu2 %2615 }
 0x5f2   : > { %v2694_v36 = vadd.f32 %v2616_v50, %v402_v22 }
 0x5f4   : > { %v2726_v6 = vsub.f32 0.0, %v2694_v36  ;;  %v421_v36 = vld [vmem:[%s6758_s4 + $0xf0] sm:$0xff] }
 0x5f6   : > { %v2769_v23 = vmul.f32 1.442695, %v2726_v6 }
 0x5f9   : > { %v2620_v46 = vpop.permute.xlu1 %2619  ;;  %v2598_v48 = vpop.permute.xlu2 %2597 }
 0x5fa   : > { %v2602_v26 = vpop.permute.xlu0 %2601  ;;  %v2695_v62 = vadd.f32 %v2620_v46, %v403_v20  ;;  %v2688_v11 = vadd.f32 %v2598_v48, %v396_v60 }
 0x5fb   : > { %v2689_v19 = vadd.f32 %v2602_v26, %v397_v38 }
 0x5fc   : > { %v2727_v45 = vsub.f32 0.0, %v2695_v62  ;;  %v2720_v25 = vsub.f32 0.0, %v2688_v11 }
 0x5fd   : > { %v2721_v33 = vsub.f32 0.0, %v2689_v19 }
 0x5fe   : > { %v2771_v51 = vmul.f32 1.442695, %v2727_v45  ;;  %v2757_v26 = vmul.f32 1.442695, %v2720_v25  ;;  %v418_v45 = vld [vmem:[%s6758_s4 + $0xd8] sm:$0xff] }
 0x601   : > { %v2614_v37 = vpop.permute.xlu1 %2613 }
 0x602   : > { %v2693_v13 = vadd.f32 %v2614_v37, %v401_v49  ;;  %v393_v49 = vld [vmem:[%s6758_s4 + $0x10] sm:$0xff] }
 0x604   : > { %v2725_v40 = vsub.f32 0.0, %v2693_v13 }
 0x606   : > { %v2767_v18 = vmul.f32 1.442695, %v2725_v40 }
 0x608   : > { %v2622_v59 = vpop.permute.xlu0 %2621 }
 0x609   : > { %v2596_v4 = vpop.permute.xlu1 %2595  ;;  %v2696_v7 = vadd.f32 %v2622_v59, %v404_v61  ;;  %v2684_v59 = vadd.f32 %v6356_v1, %v392_v52 }
 0x60a   : > { %v2687_v44 = vadd.f32 %v2596_v4, %v395_v39 }
 0x60b   : > { %v2728_v16 = vsub.f32 0.0, %v2696_v7  ;;  %v2759_v7 = vmul.f32 1.442695, %v2721_v33  ;;  %v2716_v1 = vsub.f32 0.0, %v2684_v59  ;;  %v417_v33 = vld [vmem:[%s6758_s4 + $0xd0] sm:$0xff] }
 0x60c   : > { %v2719_v48 = vsub.f32 0.0, %v2687_v44 }
 0x60d   : > { %v2773_v2 = vmul.f32 1.442695, %v2728_v16  ;;  %v2683_v16 = vadd.f32 %v6338_v8, %v391_v29  ;;  %v2749_v60 = vmul.f32 1.442695, %v2716_v1 }
 0x60e   : > { %v2755_v62 = vmul.f32 1.442695, %v2719_v48 }
 0x60f   : > { %3762 = vpow2.f32 %v2773_v2 }
 0x610   : > { %v6410_v28 = vpop.permute.xlu2 %2677  ;;  %v2610_v14 = vpop.permute.xlu0 %2609 }
 0x611   : > { %v2628_v10 = vpop.permute.xlu1 %2627  ;;  %v2692_v32 = vadd.f32 %v2610_v14, %v400_v63  ;;  %v2713_v6 = vadd.f32 %v6410_v28, %v421_v36  ;;  %v420_v28 = vld [vmem:[%s6758_s4 + $0xe8] sm:$0xff] }
 0x612   : > { %v2698_v24 = vadd.f32 %v2628_v10, %v406_v47 }
 0x613   : > { %v2724_v3 = vsub.f32 0.0, %v2692_v32  ;;  %v2745_v39 = vsub.f32 0.0, %v2713_v6 }
 0x614   : > { %v2730_v31 = vsub.f32 0.0, %v2698_v24 }
 0x615   : > { %v2765_v9 = vmul.f32 1.442695, %v2724_v3  ;;  %v3763_v35 = vpop.eup %3762  ;;  %v422_v3 = vld [vmem:[%s6758_s4 + $0xf8] sm:$0xff] }
 0x616   : > { %v2777_v43 = vmul.f32 1.442695, %v2730_v31  ;;  %v2824_v61 = vadd.f32 1.0, %v3763_v35 }
 0x618   : > { %v6427_v34 = vpop.permute.xlu2 %2659  ;;  %3764 = vpow2.f32 %v2777_v43  ;;  %v2592_v42 = vpop.permute.xlu0 %2591  ;;  %v2715_v43 = vsub.f32 0.0, %v2683_v16  ;;  %v414_v16 = vld [vmem:[%s6758_s4 + $0xb8] sm:$0xff] }
 0x619   : > { %v2604_v57 = vpop.permute.xlu1 %2603  ;;  %3766 = vpow2.f32 %v2771_v51  ;;  %v2686_v46 = vadd.f32 %v2592_v42, %v394_v15 }
 0x61a   : > { %v2690_v21 = vadd.f32 %v2604_v57, %v398_v56  ;;  %3768 = vpow2.f32 %v2769_v23  ;;  %v419_v23 = vld [vmem:[%s6758_s4 + $0xe0] sm:$0xff]  ;;  %v2747_v19 = vmul.f32 1.442695, %v2715_v43 }
 0x61b   : > { %3770 = vpow2.f32 %v2767_v18  ;;  %v2718_v54 = vsub.f32 0.0, %v2686_v46 }
 0x61c   : > { %v2722_v53 = vsub.f32 0.0, %v2690_v21  ;;  %3772 = vpow2.f32 %v2763_v55 }
 0x61d   : > { %3774 = vpow2.f32 %v2765_v9  ;;  %v2753_v14 = vmul.f32 1.442695, %v2718_v54  ;;  %v415_v9 = vld [vmem:[%s6758_s4 + $0xc0] sm:$0xff] }
 0x61e   : > { %v3765_v30 = vpop.eup %3764  ;;  %v2761_v4 = vmul.f32 1.442695, %v2722_v53  ;;  %v2707_v48 = vadd.f32 %v6427_v34, %v415_v9 }
 0x61f   : > { %v2826_v37 = vadd.f32 1.0, %v3765_v30  ;;  %v3767_v5 = vpop.eup %3766 }
 0x620   : > { %v2668_v50 = vpop.permute.xlu2 %2667  ;;  %v3769_v20 = vpop.eup %3768  ;;  %v2823_v22 = vadd.f32 1.0, %v3767_v5 }
 0x621   : > { %3776 = vrcp.f32 %v2826_v37  ;;  %v3771_v47 = vpop.eup %3770  ;;  %v2822_v17 = vadd.f32 1.0, %v3769_v20  ;;  %v2710_v51 = vadd.f32 %v2668_v50, %v418_v45  ;;  %v2807_v50 = vmul.f32 1.442695, %v2745_v39 }
 0x622   : > { %3778 = vrcp.f32 %v2825_v12  ;;  %v3773_v10 = vpop.eup %3772  ;;  %v2821_v8 = vadd.f32 1.0, %v3771_v47 }
 0x623   : > { %3780 = vpow2.f32 %v2757_v26  ;;  %v3775_v63 = vpop.eup %3774  ;;  %v2819_v38 = vadd.f32 1.0, %v3773_v10  ;;  %v2742_v25 = vsub.f32 0.0, %v2710_v51  ;;  %v411_v51 = vld [vmem:[%s6758_s4 + $0xa0] sm:$0xff] }
 0x624   : > { %3782 = vpow2.f32 %v2761_v4  ;;  %v2820_v56 = vadd.f32 1.0, %v3775_v63 }
 0x625   : > { %3784 = vrcp.f32 %v2824_v61  ;;  %v2801_v61 = vmul.f32 1.442695, %v2742_v25 }
 0x626   : > { %3786 = vpow2.f32 %v2759_v7 }
 0x627   : > { %v6452_v24 = vpop.permute.xlu1 %2665  ;;  %v2672_v41 = vpop.permute.xlu0 %2671  ;;  %3788 = vrcp.f32 %v2823_v22  ;;  %v416_v22 = vld [vmem:[%s6758_s4 + $0xc8] sm:$0xff] }
 0x628   : > { %v2590_v13 = vpop.permute.xlu2 %2589  ;;  %v3777_v31 = vpop.eup %3776  ;;  %3790 = vpow2.f32 %v2755_v62  ;;  %v2711_v53 = vadd.f32 %v2672_v41, %v419_v23  ;;  %v2709_v29 = vadd.f32 %v6452_v24, %v417_v33 }
 0x629   : > { %v2685_v27 = vadd.f32 %v2590_v13, %v393_v49  ;;  %v3779_v2 = vpop.eup %3778  ;;  %2890 = vmatpush.msrb.mxu3 %v3777_v31  ;;  %3792 = vrcp.f32 %v2822_v17  ;;  %v2739_v49 = vsub.f32 0.0, %v2707_v48  ;;  %v410_v48 = vld [vmem:[%s6758_s4 + $0x98] sm:$0xff] }
 0x62a   : > { %v3781_v32 = vpop.eup %3780  ;;  %3794 = vpow2.f32 %v2753_v14  ;;  %v2743_v20 = vsub.f32 0.0, %v2711_v53  ;;  %v2741_v24 = vsub.f32 0.0, %v2709_v29  ;;  %v423_v29 = vld [vmem:[%s6759_s5] sm:$0xff] }
 0x62b   : > { %v2717_v40 = vsub.f32 0.0, %v2685_v27  ;;  %v3783_v58 = vpop.eup %3782  ;;  %2891 = vmatpush.msrb.mxu3 %v3779_v2  ;;  %3796 = vrcp.f32 %v2821_v8  ;;  %v2816_v0 = vadd.f32 1.0, %v3781_v32 }
 0x62c   : > { %v3785_v11 = vpop.eup %3784  ;;  %3798 = vpow2.f32 %v2749_v60  ;;  %v2818_v55 = vadd.f32 1.0, %v3783_v58  ;;  %v2803_v41 = vmul.f32 1.442695, %v2743_v20  ;;  %v2795_v60 = vmul.f32 1.442695, %v2739_v49  ;;  %v413_v58 = vld [vmem:[%s6758_s4 + $0xb0] sm:$0xff] }
 0x62d   : > { %v2751_v57 = vmul.f32 1.442695, %v2717_v40  ;;  %v3787_v21 = vpop.eup %3786  ;;  %2892 = vmatpush.msrb.mxu3 %v3785_v11  ;;  %3800 = vrcp.f32 %v2820_v56  ;;  %v2799_v32 = vmul.f32 1.442695, %v2741_v24  ;;  %v412_v40 = vld [vmem:[%s6758_s4 + $0xa8] sm:$0xff] }
 0x62e   : > { %v3789_v18 = vpop.eup %3788  ;;  %v2817_v12 = vadd.f32 1.0, %v3787_v21 }
 0x62f   : > { %v2674_v15 = vpop.permute.xlu1 %2673  ;;  %v2680_v42 = vpop.permute.xlu0 %2679  ;;  %3802 = vpow2.f32 %v2751_v57  ;;  %2893 = vmatpush.msrb.mxu3 %v3789_v18 }
 0x630   : > { %v3791_v44 = vpop.eup %3790  ;;  %v2712_v35 = vadd.f32 %v2674_v15, %v420_v28  ;;  %v2714_v52 = vadd.f32 %v2680_v42, %v422_v3  ;;  %3804 = vrcp.f32 %v2819_v38  ;;  %v2646_v13 = vpop.permute.xlu2 %2645 }
 0x631   : > { %v3793_v30 = vpop.eup %3792  ;;  %3806 = vpow2.f32 %v2747_v19  ;;  %v2815_v5 = vadd.f32 1.0, %v3791_v44  ;;  %v2703_v19 = vadd.f32 %v2646_v13, %v411_v51 }
 0x632   : > { %v3795_v46 = vpop.eup %3794  ;;  %v2744_v26 = vsub.f32 0.0, %v2712_v35  ;;  %2894 = vmatpush.msrb.mxu3 %v3793_v30  ;;  %3808 = vrcp.f32 %v2818_v55  ;;  %v2746_v4 = vsub.f32 0.0, %v2714_v52  ;;  %v408_v52 = vld [vmem:[%s6758_s4 + $0x88] sm:$0xff] }
 0x633   : > { %v3797_v37 = vpop.eup %3796  ;;  %3810 = vrcp.f32 %v2816_v0  ;;  %v2814_v54 = vadd.f32 1.0, %v3795_v46  ;;  %v2735_v46 = vsub.f32 0.0, %v2703_v19 }
 0x634   : > { %v3799_v59 = vpop.eup %3798  ;;  %2895 = vmatpush.msrb.mxu3 %v3797_v37  ;;  %3812 = vrcp.f32 %v2817_v12  ;;  %v2805_v62 = vmul.f32 1.442695, %v2744_v26  ;;  %v2809_v1 = vmul.f32 1.442695, %v2746_v4 }
 0x635   : > { %v3801_v7 = vpop.eup %3800  ;;  %3814 = vpow2.f32 %v2807_v50  ;;  %v2812_v2 = vadd.f32 1.0, %v3799_v59 }
 0x636   : > { %v3803_v47 = vpop.eup %3802  ;;  %2896 = vmatpush.msrb.mxu3 %v3801_v7  ;;  %3816 = vrcp.f32 %v2815_v5  ;;  %v409_v5 = vld [vmem:[%s6758_s4 + $0x90] sm:$0xff] }
 0x637   : > { %v3805_v34 = vpop.eup %3804  ;;  %v2654_v10 = vpop.permute.xlu1 %2653  ;;  %3818 = vpow2.f32 %v2801_v61  ;;  %v2813_v45 = vadd.f32 1.0, %v3803_v47 }
 0x638   : > { %v2662_v17 = vpop.permute.xlu0 %2661  ;;  %v3807_v36 = vpop.eup %3806  ;;  %2897 = vmatpush.msrb.mxu3 %v3805_v34  ;;  %3820 = vrcp.f32 %v2814_v54  ;;  %v2706_v8 = vadd.f32 %v2654_v10, %v414_v16 }
 0x639   : > { %v2708_v63 = vadd.f32 %v2662_v17, %v416_v22  ;;  %v3809_v14 = vpop.eup %3808  ;;  %3822 = vpow2.f32 %v2805_v62  ;;  %v2811_v11 = vadd.f32 1.0, %v3807_v36  ;;  %v2636_v30 = vpop.permute.xlu2 %2635  ;;  %v2787_v62 = vmul.f32 1.442695, %v2735_v46 }
 0x63a   : > { %v3811_v31 = vpop.eup %3810  ;;  %2898 = vmatpush.msrb.mxu3 %v3809_v14  ;;  %3824 = vpow2.f32 %v2809_v1  ;;  %v2738_v57 = vsub.f32 0.0, %v2706_v8  ;;  %v2700_v61 = vadd.f32 %v2636_v30, %v408_v52  ;;  %v407_v8 = vld [vmem:[%s6758_s4 + $0x80] sm:$0xff]  ;;  %v429_v30 = vld [vmem:[%s6759_s5 + $0x30] sm:$0xff] }
 0x63b   : > { %v2740_v27 = vsub.f32 0.0, %v2708_v63  ;;  %v3813_v6 = vpop.eup %3812  ;;  %3826 = vpow2.f32 %v2803_v41 }
 0x63c   : > { %v3815_v43 = vpop.eup %3814  ;;  %2899 = vmatpush.msrb.mxu3 %v3813_v6  ;;  %3828 = vrcp.f32 %v2813_v45  ;;  %v2793_v44 = vmul.f32 1.442695, %v2738_v57  ;;  %v2732_v17 = vsub.f32 0.0, %v2700_v61  ;;  %v425_v6 = vld [vmem:[%s6759_s5 + $0x10] sm:$0xff]  ;;  %v428_v61 = vld [vmem:[%s6759_s5 + $0x28] sm:$0xff] }
 0x63d   : > { %v3817_v56 = vpop.eup %3816  ;;  %v2797_v23 = vmul.f32 1.442695, %v2740_v27  ;;  %3830 = vrcp.f32 %v2812_v2  ;;  %v2841_v25 = vadd.f32 1.0, %v3815_v43 }
 0x63e   : > { %v3819_v38 = vpop.eup %3818  ;;  %2900 = vmatpush.msrb.mxu3 %v3811_v31  ;;  %3832 = vpow2.f32 %v2795_v60  ;;  %v2781_v2 = vmul.f32 1.442695, %v2732_v17  ;;  %v449_v17 = vld [vmem:[%s6759_s5 + $0xd0] sm:$0xff] }
 0x63f   : > { %v3821_v28 = vpop.eup %3820  ;;  %v2648_v3 = vpop.permute.xlu1 %2647  ;;  %3834 = vpow2.f32 %v2799_v32  ;;  %v2838_v37 = vadd.f32 1.0, %v3819_v38 }
 0x640   : > { %v2652_v21 = vpop.permute.xlu0 %2651  ;;  %v3823_v39 = vpop.eup %3822  ;;  %2901 = vmatpush.msrb.mxu3 %v3817_v56  ;;  %v2704_v18 = vadd.f32 %v2648_v3, %v412_v40  ;;  %3836 = vrcp.f32 %v2811_v11 }
 0x641   : > { %v2705_v0 = vadd.f32 %v2652_v21, %v413_v58  ;;  %v3825_v55 = vpop.eup %3824  ;;  %3838 = vpow2.f32 %v2797_v23  ;;  %v2840_v35 = vadd.f32 1.0, %v3823_v39 }
 0x642   : > { %v3827_v15 = vpop.eup %3826  ;;  %v2842_v42 = vadd.f32 1.0, %v3825_v55  ;;  %2902 = vmatpush.msrb.mxu3 %v3821_v28  ;;  %v2736_v12 = vsub.f32 0.0, %v2704_v18  ;;  %v427_v18 = vld [vmem:[%s6759_s5 + $0x20] sm:$0xff] }
 0x643   : > { %v2737_v9 = vsub.f32 0.0, %v2705_v0  ;;  %v3829_v53 = vpop.eup %3828  ;;  %v2839_v59 = vadd.f32 1.0, %v3827_v15 }
 0x644   : > { %v3831_v33 = vpop.eup %3830  ;;  %3840 = vrcp.f32 %v2842_v42  ;;  %2903 = vmatpush.msrb.mxu3 %v3829_v53  ;;  %v2789_v7 = vmul.f32 1.442695, %v2736_v12 }
 0x645   : > { %v2791_v50 = vmul.f32 1.442695, %v2737_v9  ;;  %v3833_v26 = vpop.eup %3832  ;;  %3842 = vrcp.f32 %v2841_v25 }
 0x646   : > { %v3835_v4 = vpop.eup %3834  ;;  %3844 = vpow2.f32 %v2793_v44  ;;  %2904 = vmatpush.msrb.mxu3 %v3831_v33  ;;  %v2835_v1 = vadd.f32 1.0, %v3833_v26 }
 0x647   : > { %v3837_v20 = vpop.eup %3836  ;;  %3846 = vrcp.f32 %v2840_v35  ;;  %v2640_v54 = vpop.permute.xlu1 %2639  ;;  %v2837_v16 = vadd.f32 1.0, %v3835_v4  ;;  %v426_v4 = vld [vmem:[%s6759_s5 + $0x18] sm:$0xff] }
 0x648   : > { %v2642_v22 = vpop.permute.xlu0 %2641  ;;  %v3839_v47 = vpop.eup %3838  ;;  %3848 = vpow2.f32 %v2791_v50  ;;  %2905 = vmatpush.msrb.mxu3 %v3837_v20  ;;  %v2701_v34 = vadd.f32 %v2640_v54, %v409_v5  ;;  %v424_v5 = vld [vmem:[%s6759_s5 + $0x8] sm:$0xff]  ;;  %v430_v20 = vld [vmem:[%s6759_s5 + $0x38] sm:$0xff] }
 0x649   : > { %v2702_v49 = vadd.f32 %v2642_v22, %v410_v48  ;;  %3850 = vrcp.f32 %v2838_v37  ;;  %2906 = vmatmul.f32.vlgmr.msrb.gmra.mxu3 %v423_v29  ;;  %v2836_v63 = vadd.f32 1.0, %v3839_v47  ;;  %v431_v37 = vld [vmem:[%s6759_s5 + $0x40] sm:$0xff]  ;;  %v433_v48 = vld [vmem:[%s6759_s5 + $0x50] sm:$0xff]  ;;  %v432_v54 = vld [vmem:[%s6759_s5 + $0x48] sm:$0xff] }
 0x64a   : > { %v3841_v10 = vpop.eup %3840  ;;  %3852 = vrcp.f32 %v2839_v59  ;;  %v2733_v36 = vsub.f32 0.0, %v2701_v34  ;;  %v435_v59 = vld [vmem:[%s6759_s5 + $0x60] sm:$0xff]  ;;  %v437_v29 = vld [vmem:[%s6759_s5 + $0x70] sm:$0xff]  ;;  %v434_v47 = vld [vmem:[%s6759_s5 + $0x58] sm:$0xff] }
 0x64b   : > { %v2734_v24 = vsub.f32 0.0, %v2702_v49  ;;  %v3843_v41 = vpop.eup %3842  ;;  %3854 = vpow2.f32 %v2789_v7  ;;  %2952 = vmatpush.msrb.mxu1 %v3841_v10  ;;  %v439_v7 = vld [vmem:[%s6759_s5 + $0x80] sm:$0xff]  ;;  %v441_v22 = vld [vmem:[%s6759_s5 + $0x90] sm:$0xff]  ;;  %v436_v34 = vld [vmem:[%s6759_s5 + $0x68] sm:$0xff] }
 0x64c   : > { %v3845_v14 = vpop.eup %3844  ;;  %3856 = vpow2.f32 %v2787_v62  ;;  %v2783_v31 = vmul.f32 1.442695, %v2733_v36  ;;  %v443_v62 = vld [vmem:[%s6759_s5 + $0xa0] sm:$0xff]  ;;  %v445_v49 = vld [vmem:[%s6759_s5 + $0xb0] sm:$0xff]  ;;  %v440_v10 = vld [vmem:[%s6759_s5 + $0x88] sm:$0xff] }
 0x64d   : > { %v2785_v45 = vmul.f32 1.442695, %v2734_v24  ;;  %v3847_v13 = vpop.eup %3846  ;;  %3858 = vrcp.f32 %v2835_v1  ;;  %2953 = vmatpush.msrb.mxu1 %v3843_v41  ;;  %v2834_v56 = vadd.f32 1.0, %v3845_v14  ;;  %v438_v1 = vld [vmem:[%s6759_s5 + $0x78] sm:$0xff]  ;;  %v451_v24 = vld [vmem:[%s6759_s5 + $0xe0] sm:$0xff]  ;;  %v444_v41 = vld [vmem:[%s6759_s5 + $0xa8] sm:$0xff] }
 0x64e   : > { %v3849_v27 = vpop.eup %3848  ;;  %3860 = vrcp.f32 %v2837_v16  ;;  %v447_v16 = vld [vmem:[%s6759_s5 + $0xc0] sm:$0xff]  ;;  %v442_v36 = vld [vmem:[%s6759_s5 + $0x98] sm:$0xff]  ;;  %v448_v14 = vld [vmem:[%s6759_s5 + $0xc8] sm:$0xff] }
 0x64f   : > { %v3851_v60 = vpop.eup %3850  ;;  %3862 = vrcp.f32 %v2836_v63  ;;  %2954 = vmatpush.msrb.mxu1 %v3847_v13  ;;  %v2833_v58 = vadd.f32 1.0, %v3849_v27  ;;  %v446_v63 = vld [vmem:[%s6759_s5 + $0xb8] sm:$0xff] }
 0x650   : > { %v2634_v43 = vpop.permute.xlu0 %2633  ;;  %v3853_v32 = vpop.eup %3852  ;;  %3864 = vpow2.f32 %v2785_v45  ;;  %v450_v13 = vld [vmem:[%s6759_s5 + $0xd8] sm:$0xff] }
 0x651   : > { %v2699_v51 = vadd.f32 %v2634_v43, %v407_v8  ;;  %v3855_v40 = vpop.eup %3854  ;;  %3866 = vpow2.f32 %v2783_v31  ;;  %2955 = vmatpush.msrb.mxu1 %v3853_v32  ;;  %2909 = vmatmul.f32.gmra.mxu3 %v425_v6  ;;  %v452_v8 = vld [vmem:[%s6759_s5 + $0xe8] sm:$0xff] }
 0x652   : > { %v3857_v11 = vpop.eup %3856  ;;  %3868 = vpow2.f32 %v2781_v2  ;;  %v2832_v28 = vadd.f32 1.0, %v3855_v40  ;;  %v2875_v2 = vld [vmem:[%s6760_s6] sm:$0xff] }
 0x653   : > { %v2731_v38 = vsub.f32 0.0, %v2699_v51  ;;  %v3859_v57 = vpop.eup %3858  ;;  %2956 = vmatpush.msrb.mxu1 %v3851_v60  ;;  %3870 = vrcp.f32 %v2834_v56  ;;  %v2831_v39 = vadd.f32 1.0, %v3857_v11  ;;  %v2876_v56 = vld [vmem:[%s6760_s6 + $0x8] sm:$0xff] }
 0x654   : > { %v3861_v23 = vpop.eup %3860  ;;  %3872 = vrcp.f32 %v2833_v58 }
 0x655   : > { %v2779_v3 = vmul.f32 1.442695, %v2731_v38  ;;  %v3863_v21 = vpop.eup %3862  ;;  %2957 = vmatpush.msrb.mxu1 %v3861_v23  ;;  %v2877_v38 = vld [vmem:[%s6760_s6 + $0x10] sm:$0xff] }
 0x656   : > { %v3865_v19 = vpop.eup %3864 }
 0x657   : > { %3874 = vpow2.f32 %v2779_v3  ;;  %v3867_v0 = vpop.eup %3866  ;;  %v2830_v55 = vadd.f32 1.0, %v3865_v19  ;;  %2958 = vmatpush.msrb.mxu1 %v3863_v21  ;;  %v2878_v21 = vld [vmem:[%s6760_s6 + $0x18] sm:$0xff] }
 0x658   : > { %v3869_v25 = vpop.eup %3868  ;;  %3876 = vrcp.f32 %v2832_v28  ;;  %v2829_v42 = vadd.f32 1.0, %v3867_v0  ;;  %v2879_v0 = vld [vmem:[%s6760_s6 + $0x20] sm:$0xff] }
 0x659   : > { %3878 = vrcp.f32 %v2831_v39  ;;  %2959 = vmatpush.msrb.mxu1 %v3859_v57  ;;  %2912 = vmatmul.f32.gmra.mxu3 %v427_v18  ;;  %v3871_v15 = vpop.eup %3870  ;;  %v2828_v9 = vadd.f32 1.0, %v3869_v25 }
 0x65a   : > { %3880 = vrcp.f32 %v2830_v55  ;;  %v3873_v44 = vpop.eup %3872 }
 0x65b   : > { %2960 = vmatpush.msrb.mxu1 %v3871_v15  ;;  %3882 = vrcp.f32 %v2829_v42 }
 0x65c   : > { %3884 = vrcp.f32 %v2828_v9 }
 0x65d   : > { %v3875_v53 = vpop.eup %3874  ;;  %2961 = vmatpush.msrb.mxu1 %v3873_v44  ;;  %v2880_v44 = vld [vmem:[%s6760_s6 + $0x28] sm:$0xff] }
 0x65e   : > { %v2827_v35 = vadd.f32 1.0, %v3875_v53  ;;  %v3877_v52 = vpop.eup %3876 }
 0x65f   : > { %v3879_v12 = vpop.eup %3878  ;;  %2962 = vmatpush.msrb.mxu1 %v3877_v52 }
 0x660   : > { %v3881_v33 = vpop.eup %3880  ;;  %3886 = vrcp.f32 %v2827_v35 }
 0x661   : > { %2963 = vmatpush.msrb.mxu1 %v3879_v12  ;;  %2915 = vmatmul.f32.gmra.mxu3 %v429_v30  ;;  %v3883_v46 = vpop.eup %3882  ;;  %v2881_v30 = vld [vmem:[%s6760_s6 + $0x30] sm:$0xff] }
 0x662   : > { %v3885_v50 = vpop.eup %3884 }
 0x663   : > { %2964 = vmatpush.msrb.mxu1 %v3881_v33 }
 0x665   : > { %2965 = vmatpush.msrb.mxu1 %v3883_v46 }
 0x666   : > { %v3887_v26 = vpop.eup %3886 }
 0x667   : > { %2966 = vmatpush.msrb.mxu1 %v3885_v50 }
 0x669   : > { %2967 = vmatpush.msrb.mxu1 %v3887_v26  ;;  %2918 = vmatmul.f32.gmra.mxu3 %v431_v37  ;;  %v2882_v26 = vld [vmem:[%s6760_s6 + $0x38] sm:$0xff] }
 0x66a   : > { %2968 = vmatmul.f32.vlgmr.msrb.gmra.mxu1 %v424_v5 }
 0x671   : > { %2921 = vmatmul.f32.gmra.mxu3 %v433_v48 }
 0x672   : > { %2971 = vmatmul.f32.gmra.mxu1 %v426_v4 }
 0x679   : > { %2924 = vmatmul.f32.gmra.mxu3 %v435_v59 }
 0x67a   : > { %2974 = vmatmul.f32.gmra.mxu1 %v428_v61 }
 0x681   : > { %2927 = vmatmul.f32.gmra.mxu3 %v437_v29 }
 0x682   : > { %2977 = vmatmul.f32.gmra.mxu1 %v430_v20 }
 0x689   : > { %2930 = vmatmul.f32.gmra.mxu3 %v439_v7 }
 0x68a   : > { %2980 = vmatmul.f32.gmra.mxu1 %v432_v54 }
 0x691   : > { %2933 = vmatmul.f32.gmra.mxu3 %v441_v22 }
 0x692   : > { %2983 = vmatmul.f32.gmra.mxu1 %v434_v47 }
 0x699   : > { %2936 = vmatmul.f32.gmra.mxu3 %v443_v62 }
 0x69a   : > { %2986 = vmatmul.f32.gmra.mxu1 %v436_v34  ;;  %v2888_v34 = vld [vmem:[%s6760_s6 + $0x68] sm:$0xff] }
 0x6a1   : > { %2939 = vmatmul.f32.gmra.mxu3 %v445_v49  ;;  %v2887_v49 = vld [vmem:[%s6760_s6 + $0x60] sm:$0xff] }
 0x6a2   : > { %2989 = vmatmul.f32.gmra.mxu1 %v438_v1 }
 0x6a9   : > { %2942 = vmatmul.f32.gmra.mxu3 %v447_v16  ;;  %v2886_v16 = vld [vmem:[%s6760_s6 + $0x58] sm:$0xff] }
 0x6aa   : > { %2992 = vmatmul.f32.gmra.mxu1 %v440_v10 }
 0x6b1   : > { %2945 = vmatmul.f32.gmra.mxu3 %v449_v17  ;;  %v2885_v17 = vld [vmem:[%s6760_s6 + $0x50] sm:$0xff] }
 0x6b2   : > { %2995 = vmatmul.f32.gmra.mxu1 %v442_v36 }
 0x6b9   : > { %2948 = vmatmul.f32.gmra.mxu3 %v451_v24 }
 0x6ba   : > { %2998 = vmatmul.f32.gmra.mxu1 %v444_v41 }
 0x6c2   : > { %3001 = vmatmul.f32.gmra.mxu1 %v446_v63  ;;  %v2884_v63 = vld [vmem:[%s6760_s6 + $0x48] sm:$0xff] }
 0x6ca   : > { %3004 = vmatmul.f32.gmra.mxu1 %v448_v14 }
 0x6cc   : > { %v2907_v45 = vpop.f32.mrf.mxu3 }
 0x6cd   : > { %v2908_v6 = vadd.f32 %v2907_v45, %v2875_v2  ;;  %v2889_v45 = vld [vmem:[%s6760_s6 + $0x70] sm:$0xff] }
 0x6d2   : > { %3007 = vmatmul.f32.gmra.mxu1 %v450_v13 }
 0x6d4   : > { %v2910_v31 = vpop.f32.mrf.mxu3 }
 0x6d5   : > { %v2911_v51 = vadd.f32 %v2910_v31, %v2876_v56 }
 0x6da   : > { %3010 = vmatmul.f32.gmra.mxu1 %v452_v8  ;;  %v2883_v8 = vld [vmem:[%s6760_s6 + $0x40] sm:$0xff] }
 0x6dc   : > { %v2913_v27 = vpop.f32.mrf.mxu3 }
 0x6dd   : > { %v2914_v57 = vadd.f32 %v2913_v27, %v2877_v38 }
 0x6e4   : > { %v2916_v60 = vpop.f32.mrf.mxu3 }
 0x6e5   : > { %v2917_v39 = vadd.f32 %v2916_v60, %v2878_v21 }
 0x6e7   : > { %v2969_v43 = vpop.f32.mrf.mxu1 }
 0x6e8   : > { %v6595_v32 = vadd.f32 %v2969_v43, %v2908_v6 }
 0x6ec   : > { %v2919_v40 = vpop.f32.mrf.mxu3 }
 0x6ed   : > { %v2920_v25 = vadd.f32 %v2919_v40, %v2879_v0 }
 0x6ef   : > { %v2972_v58 = vpop.f32.mrf.mxu1 }
 0x6f0   : > { %v6600_v11 = vadd.f32 %v2972_v58, %v2911_v51 }
 0x6f4   : > { %v2922_v28 = vpop.f32.mrf.mxu3 }
 0x6f5   : > { %v2923_v53 = vadd.f32 %v2922_v28, %v2880_v44 }
 0x6f7   : > { %v2975_v23 = vpop.f32.mrf.mxu1 }
 0x6f8   : > { %v6605_v3 = vadd.f32 %v2975_v23, %v2914_v57 }
 0x6fc   : > { %v2925_v55 = vpop.f32.mrf.mxu3 }
 0x6fd   : > { %v2926_v12 = vadd.f32 %v2925_v55, %v2881_v30 }
 0x6ff   : > { %v2978_v19 = vpop.f32.mrf.mxu1 }
 0x700   : > { %v6610_v18 = vadd.f32 %v2978_v19, %v2917_v39 }
 0x704   : > { %v2928_v9 = vpop.f32.mrf.mxu3 }
 0x705   : > { %v2929_v37 = vadd.f32 %v2928_v9, %v2882_v26 }
 0x707   : > { %v2981_v15 = vpop.f32.mrf.mxu1 }
 0x708   : > { %v6615_v42 = vadd.f32 %v2981_v15, %v2920_v25 }
 0x70c   : > { %v2931_v33 = vpop.f32.mrf.mxu3 }
 0x70d   : > { %v2932_v56 = vadd.f32 %v2931_v33, %v2883_v8 }
 0x70f   : > { %v2984_v35 = vpop.f32.mrf.mxu1 }
 0x710   : > { %v6620_v52 = vadd.f32 %v2984_v35, %v2923_v53 }
 0x712   : > { %v3019_v26 = vsub.f32 0.0, %v6620_v52  ;;  %v3016_v52 = vsub.f32 0.0, %v6605_v3 }
 0x714   : > { %v2934_v48 = vpop.f32.mrf.mxu3 }
 0x715   : > { %v2935_v27 = vadd.f32 %v2934_v48, %v2884_v63 }
 0x717   : > { %v2987_v46 = vpop.f32.mrf.mxu1 }
 0x718   : > { %v6625_v50 = vadd.f32 %v2987_v46, %v2926_v12 }
 0x71a   : > { %v3020_v30 = vsub.f32 0.0, %v6625_v50  ;;  %v3017_v50 = vsub.f32 0.0, %v6610_v18 }
 0x71c   : > { %v2937_v61 = vpop.f32.mrf.mxu3 }
 0x71d   : > { %v2938_v31 = vadd.f32 %v2937_v61, %v2885_v17  ;;  %v3018_v61 = vsub.f32 0.0, %v6615_v42  ;;  %v3015_v42 = vsub.f32 0.0, %v6600_v11  ;;  %v3033_v17 = vmul.f32 1.442695, %v3016_v52  ;;  %v3097_v52 = vld [vmem:[%s6762_s8 + $0x40] sm:$0xff] }
 0x71f   : > { %v2990_v5 = vpop.f32.mrf.mxu1 }
 0x720   : > { %v2991_v4 = vadd.f32 %v2990_v5, %v2929_v37 }
 0x722   : > { %v3021_v9 = vsub.f32 0.0, %v2991_v4 }
 0x724   : > { %v2940_v20 = vpop.f32.mrf.mxu3  ;;  %v3043_v37 = vmul.f32 1.442695, %v3021_v9  ;;  %v454_v9 = vld [vmem:[%s6761_s7 + $0x8] sm:$0xff] }
 0x725   : > { %v2941_v24 = vadd.f32 %v2940_v20, %v2886_v16 }
 0x727   : > { %v2993_v59 = vpop.f32.mrf.mxu1 }
 0x728   : > { %v2994_v21 = vadd.f32 %v2993_v59, %v2932_v56 }
 0x72a   : > { %v3022_v15 = vsub.f32 0.0, %v2994_v21 }
 0x72c   : > { %v2943_v54 = vpop.f32.mrf.mxu3  ;;  %v3045_v12 = vmul.f32 1.442695, %v3022_v15  ;;  %v453_v15 = vld [vmem:[%s6761_s7] sm:$0xff] }
 0x72d   : > { %v2944_v10 = vadd.f32 %v2943_v54, %v2887_v49  ;;  %v3035_v49 = vmul.f32 1.442695, %v3017_v50 }
 0x72f   : > { %v2996_v29 = vpop.f32.mrf.mxu1 }
 0x730   : > { %v2997_v58 = vadd.f32 %v2996_v29, %v2935_v27  ;;  %v3041_v29 = vmul.f32 1.442695, %v3020_v30  ;;  %v457_v30 = vld [vmem:[%s6761_s7 + $0x20] sm:$0xff] }
 0x732   : > { %v3023_v0 = vsub.f32 0.0, %v2997_v58 }
 0x734   : > { %v2946_v62 = vpop.f32.mrf.mxu3  ;;  %v3047_v53 = vmul.f32 1.442695, %v3023_v0 }
 0x735   : > { %v2947_v1 = vadd.f32 %v2946_v62, %v2888_v34 }
 0x737   : > { %v2999_v7 = vpop.f32.mrf.mxu1 }
 0x738   : > { %v3000_v51 = vadd.f32 %v2999_v7, %v2938_v31  ;;  %v3039_v7 = vmul.f32 1.442695, %v3019_v26  ;;  %v461_v26 = vld [vmem:[%s6761_s7 + $0x40] sm:$0xff] }
 0x73a   : > { %v3024_v39 = vsub.f32 0.0, %v3000_v51 }
 0x73c   : > { %v2949_v13 = vpop.f32.mrf.mxu3  ;;  %v3049_v44 = vmul.f32 1.442695, %v3024_v39 }
 0x73d   : > { %v2950_v60 = vadd.f32 %v2949_v13, %v2889_v45 }
 0x73f   : > { %v3002_v22 = vpop.f32.mrf.mxu1 }
 0x740   : > { %v3003_v2 = vadd.f32 %v3002_v22, %v2941_v24 }
 0x742   : > { %v3025_v38 = vsub.f32 0.0, %v3003_v2 }
 0x744   : > { %v3051_v55 = vmul.f32 1.442695, %v3025_v38 }
 0x747   : > { %v3005_v47 = vpop.f32.mrf.mxu1 }
 0x748   : > { %v3006_v14 = vadd.f32 %v3005_v47, %v2944_v10  ;;  %v3037_v47 = vmul.f32 1.442695, %v3018_v61  ;;  %v3014_v10 = vsub.f32 0.0, %v6595_v32 }
 0x74a   : > { %v3026_v43 = vsub.f32 0.0, %v3006_v14  ;;  %v3029_v45 = vmul.f32 1.442695, %v3014_v10 }
 0x74c   : > { %v3053_v28 = vmul.f32 1.442695, %v3026_v43 }
 0x74f   : > { %v3008_v36 = vpop.f32.mrf.mxu1 }
 0x750   : > { %v3009_v41 = vadd.f32 %v3008_v36, %v2947_v1 }
 0x752   : > { %v3027_v6 = vsub.f32 0.0, %v3009_v41  ;;  %v3031_v41 = vmul.f32 1.442695, %v3015_v42 }
 0x754   : > { %v3055_v57 = vmul.f32 1.442695, %v3027_v6 }
 0x756   : > { %3888 = vpow2.f32 %v3055_v57 }
 0x757   : > { %v3011_v40 = vpop.f32.mrf.mxu1  ;;  %3890 = vpow2.f32 %v3053_v28 }
 0x758   : > { %v3012_v23 = vadd.f32 %v3011_v40, %v2950_v60 }
 0x75a   : > { %v3028_v19 = vsub.f32 0.0, %v3012_v23 }
 0x75c   : > { %v3057_v25 = vmul.f32 1.442695, %v3028_v19  ;;  %v3889_v35 = vpop.eup %3888 }
 0x75d   : > { %v3891_v33 = vpop.eup %3890  ;;  %v3072_v5 = vadd.f32 1.0, %v3889_v35  ;;  %v456_v35 = vld [vmem:[%s6761_s7 + $0x18] sm:$0xff] }
 0x75e   : > { %3892 = vpow2.f32 %v3057_v25  ;;  %v3071_v4 = vadd.f32 1.0, %v3891_v33  ;;  %v459_v33 = vld [vmem:[%s6761_s7 + $0x30] sm:$0xff] }
 0x75f   : > { %3894 = vpow2.f32 %v3051_v55 }
 0x760   : > { %3896 = vpow2.f32 %v3049_v44 }
 0x761   : > { %3898 = vpow2.f32 %v3047_v53  ;;  %v455_v53 = vld [vmem:[%s6761_s7 + $0x10] sm:$0xff] }
 0x762   : > { %3900 = vpow2.f32 %v3045_v12  ;;  %v458_v12 = vld [vmem:[%s6761_s7 + $0x28] sm:$0xff] }
 0x764   : > { %v3893_v46 = vpop.eup %3892 }
 0x765   : > { %v3073_v48 = vadd.f32 1.0, %v3893_v46  ;;  %v3895_v59 = vpop.eup %3894  ;;  %v460_v46 = vld [vmem:[%s6761_s7 + $0x38] sm:$0xff] }
 0x766   : > { %v3897_v20 = vpop.eup %3896  ;;  %v3070_v54 = vadd.f32 1.0, %v3895_v59 }
 0x767   : > { %3902 = vrcp.f32 %v3073_v48  ;;  %v3899_v22 = vpop.eup %3898  ;;  %v3069_v62 = vadd.f32 1.0, %v3897_v20 }
 0x768   : > { %3904 = vpow2.f32 %v3043_v37  ;;  %v3901_v34 = vpop.eup %3900  ;;  %v3068_v16 = vadd.f32 1.0, %v3899_v22  ;;  %v462_v37 = vld [vmem:[%s6761_s7 + $0x48] sm:$0xff] }
 0x769   : > { %3906 = vrcp.f32 %v3072_v5  ;;  %v3067_v3 = vadd.f32 1.0, %v3901_v34  ;;  %v463_v5 = vld [vmem:[%s6761_s7 + $0x50] sm:$0xf]  ;;  %v3098_v22 = vld [vmem:[%s6762_s8 + $0x48] sm:$0xff]  ;;  %v3096_v34 = vld [vmem:[%s6762_s8 + $0x38] sm:$0xff] }
 0x76a   : > { %3908 = vpow2.f32 %v3041_v29 }
 0x76b   : > { %3910 = vrcp.f32 %v3071_v4 }
 0x76c   : > { %3912 = vpow2.f32 %v3039_v7 }
 0x76d   : > { %v3903_v1 = vpop.eup %3902  ;;  %3914 = vrcp.f32 %v3070_v54 }
 0x76e   : > { %v3905_v18 = vpop.eup %3904  ;;  %3916 = vpow2.f32 %v3037_v47  ;;  %3134 = vmatpush.msra.mxu2 %v3903_v1 }
 0x76f   : > { %v3907_v36 = vpop.eup %3906  ;;  %3918 = vrcp.f32 %v3069_v62  ;;  %v3066_v11 = vadd.f32 1.0, %v3905_v18  ;;  %v3094_v18 = vld [vmem:[%s6762_s8 + $0x28] sm:$0xff] }
 0x770   : > { %v3909_v24 = vpop.eup %3908  ;;  %3920 = vpow2.f32 %v3035_v49  ;;  %3135 = vmatpush.msra.mxu2 %v3907_v36  ;;  %v3095_v49 = vld [vmem:[%s6762_s8 + $0x30] sm:$0xff] }
 0x771   : > { %v3911_v63 = vpop.eup %3910  ;;  %3922 = vrcp.f32 %v3068_v16  ;;  %v3065_v31 = vadd.f32 1.0, %v3909_v24 }
 0x772   : > { %v3913_v14 = vpop.eup %3912  ;;  %3924 = vpow2.f32 %v3033_v17  ;;  %3136 = vmatpush.msra.mxu2 %v3911_v63  ;;  %v3099_v17 = vld [vmem:[%s6762_s8 + $0x50] sm:$0xf] }
 0x773   : > { %v3915_v13 = vpop.eup %3914  ;;  %3926 = vrcp.f32 %v3067_v3  ;;  %v3064_v27 = vadd.f32 1.0, %v3913_v14  ;;  %v3093_v3 = vld [vmem:[%s6762_s8 + $0x20] sm:$0xff] }
 0x774   : > { %v3917_v32 = vpop.eup %3916  ;;  %3928 = vpow2.f32 %v3031_v41  ;;  %3137 = vmatpush.msra.mxu2 %v3915_v13  ;;  %v3092_v41 = vld [vmem:[%s6762_s8 + $0x18] sm:$0xff] }
 0x775   : > { %v3919_v8 = vpop.eup %3918  ;;  %3930 = vrcp.f32 %v3066_v11  ;;  %v3063_v60 = vadd.f32 1.0, %v3917_v32 }
 0x776   : > { %v3921_v2 = vpop.eup %3920  ;;  %3932 = vpow2.f32 %v3029_v45  ;;  %3138 = vmatpush.msra.mxu2 %v3919_v8 }
 0x777   : > { %v3923_v6 = vpop.eup %3922  ;;  %3934 = vrcp.f32 %v3065_v31  ;;  %v3062_v51 = vadd.f32 1.0, %v3921_v2 }
 0x778   : > { %v3925_v43 = vpop.eup %3924  ;;  %3139 = vmatpush.msra.mxu2 %v3923_v6  ;;  %3936 = vrcp.f32 %v3064_v27  ;;  %v3091_v27 = vld [vmem:[%s6762_s8 + $0x10] sm:$0xff] }
 0x779   : > { %v3927_v56 = vpop.eup %3926  ;;  %v3061_v38 = vadd.f32 1.0, %v3925_v43  ;;  %3938 = vrcp.f32 %v3063_v60 }
 0x77a   : > { %v3929_v40 = vpop.eup %3928  ;;  %3140 = vmatpush.msra.mxu2 %v3927_v56  ;;  %3940 = vrcp.f32 %v3062_v51  ;;  %v3090_v56 = vld [vmem:[%s6762_s8 + $0x8] sm:$0xff] }
 0x77b   : > { %v3931_v58 = vpop.eup %3930  ;;  %v3060_v28 = vadd.f32 1.0, %v3929_v40  ;;  %3942 = vrcp.f32 %v3061_v38  ;;  %v3089_v38 = vld [vmem:[%s6762_s8] sm:$0xff] }
 0x77c   : > { %v3933_v57 = vpop.eup %3932  ;;  %3141 = vmatpush.msra.mxu2 %v3931_v58 }
 0x77d   : > { %v3935_v23 = vpop.eup %3934  ;;  %v3059_v39 = vadd.f32 1.0, %v3933_v57  ;;  %3944 = vrcp.f32 %v3060_v28 }
 0x77e   : > { %3142 = vmatpush.msra.mxu2 %v3935_v23  ;;  %v3937_v21 = vpop.eup %3936 }
 0x77f   : > { %v3939_v19 = vpop.eup %3938  ;;  %3946 = vrcp.f32 %v3059_v39 }
 0x780   : > { %3143 = vmatpush.msra.mxu2 %v3937_v21  ;;  %v3941_v0 = vpop.eup %3940 }
 0x781   : > { %v3943_v55 = vpop.eup %3942 }
 0x782   : > { %3144 = vmatpush.msra.mxu2 %v3939_v19 }
 0x783   : > { %v3945_v25 = vpop.eup %3944 }
 0x784   : > { %3145 = vmatpush.msra.mxu2 %v3941_v0 }
 0x785   : > { %v3947_v44 = vpop.eup %3946 }
 0x786   : > { %3146 = vmatpush.msra.mxu2 %v3943_v55 }
 0x788   : > { %3147 = vmatpush.msra.mxu2 %v3945_v25 }
 0x78a   : > { %3148 = vmatpush.msra.mxu2 %v3947_v44 }
 0x78b   : > { %3348 = vmatmul.msk.f32.vlgmr.msra.gmra.mxu2 %vm1914_vm13, %v453_v15 }
 0x793   : > { %3349 = vmatmul.msk.f32.gmra.mxu2 %vm1914_vm13, %v454_v9 }
 0x79b   : > { %3350 = vmatmul.msk.f32.gmra.mxu2 %vm1914_vm13, %v455_v53 }
 0x7a3   : > { %3351 = vmatmul.msk.f32.gmra.mxu2 %vm1914_vm13, %v456_v35 }
 0x7ab   : > { %3352 = vmatmul.msk.f32.gmra.mxu2 %vm1914_vm13, %v457_v30 }
 0x7b3   : > { %3353 = vmatmul.msk.f32.gmra.mxu2 %vm1914_vm13, %v458_v12 }
 0x7bb   : > { %3354 = vmatmul.msk.f32.gmra.mxu2 %vm1914_vm13, %v459_v33 }
 0x7c3   : > { %3355 = vmatmul.msk.f32.gmra.mxu2 %vm1914_vm13, %v460_v46 }
 0x7cb   : > { %3356 = vmatmul.msk.f32.gmra.mxu2 %vm1914_vm13, %v461_v26 }
 0x7d3   : > { %3357 = vmatmul.msk.f32.gmra.mxu2 %vm1914_vm13, %v462_v37 }
 0x7db   : > { %3358 = vmatmul.msk.f32.gmra.mxu2 %vm1914_vm13, %v463_v5  ;;  %vm3240_vm13 = vcmask 687104  }
 0x80e   : > { %v3150_v48 = vpop.f32.mrf.mxu2 }
 0x80f   : > { %v3151_v39 = vadd.f32 %v3150_v48, %v3089_v38 }
 0x811   : > { %v3183_v30 = vsub.f32 0.0, %v3151_v39 }
 0x813   : > { %v3194_v48 = vmul.f32 1.442695, %v3183_v30 }
 0x816   : > { %v3153_v59 = vpop.f32.mrf.mxu2 }
 0x817   : > { %v3154_v57 = vadd.f32 %v3153_v59, %v3090_v56 }
 0x819   : > { %v3184_v15 = vsub.f32 0.0, %v3154_v57 }
 0x81b   : > { %v3196_v26 = vmul.f32 1.442695, %v3184_v15 }
 0x81e   : > { %v3156_v61 = vpop.f32.mrf.mxu2 }
 0x81f   : > { %v3157_v51 = vadd.f32 %v3156_v61, %v3091_v27 }
 0x821   : > { %v3185_v19 = vsub.f32 0.0, %v3157_v51 }
 0x823   : > { %v3198_v12 = vmul.f32 1.442695, %v3185_v19 }
 0x826   : > { %v3159_v29 = vpop.f32.mrf.mxu2 }
 0x827   : > { %v3160_v2 = vadd.f32 %v3159_v29, %v3092_v41 }
 0x829   : > { %v3186_v23 = vsub.f32 0.0, %v3160_v2 }
 0x82b   : > { %v3200_v44 = vmul.f32 1.442695, %v3186_v23 }
 0x82e   : > { %v3162_v4 = vpop.f32.mrf.mxu2 }
 0x82f   : > { %v3163_v31 = vadd.f32 %v3162_v4, %v3093_v3 }
 0x831   : > { %v3187_v40 = vsub.f32 0.0, %v3163_v31 }
 0x833   : > { %v3202_v0 = vmul.f32 1.442695, %v3187_v40 }
 0x836   : > { %v3165_v20 = vpop.f32.mrf.mxu2 }
 0x837   : > { %v3166_v63 = vadd.f32 %v3165_v20, %v3094_v18 }
 0x839   : > { %v3188_v6 = vsub.f32 0.0, %v3166_v63  ;;  %v465_v63 = vld [vmem:[%s6763_s9 + $0x8] sm:$0x3] }
 0x83b   : > { %v3204_v28 = vmul.f32 1.442695, %v3188_v6 }
 0x83e   : > { %v3168_v50 = vpop.f32.mrf.mxu2 }
 0x83f   : > { %v3169_v36 = vadd.f32 %v3168_v50, %v3095_v49 }
 0x841   : > { %v3189_v32 = vsub.f32 0.0, %v3169_v36 }
 0x843   : > { %v3206_v58 = vmul.f32 1.442695, %v3189_v32 }
 0x846   : > { %v3171_v7 = vpop.f32.mrf.mxu2 }
 0x847   : > { %v3172_v1 = vadd.f32 %v3171_v7, %v3096_v34 }
 0x849   : > { %v3190_v11 = vsub.f32 0.0, %v3172_v1 }
 0x84b   : > { %v3208_v60 = vmul.f32 1.442695, %v3190_v11  ;;  %v3238_v11 = vld [vmem:[%s6764_s10] sm:$0xff] }
 0x84e   : > { %v3174_v54 = vpop.f32.mrf.mxu2 }
 0x84f   : > { %v3175_v42 = vadd.f32 %v3174_v54, %v3097_v52 }
 0x851   : > { %v3191_v10 = vsub.f32 0.0, %v3175_v42 }
 0x853   : > { %v3210_v13 = vmul.f32 1.442695, %v3191_v10 }
 0x856   : > { %v3177_v47 = vpop.f32.mrf.mxu2 }
 0x857   : > { %v3178_v62 = vadd.f32 %v3177_v47, %v3098_v22 }
 0x859   : > { %v3192_v16 = vsub.f32 0.0, %v3178_v62 }
 0x85b   : > { %v3212_v14 = vmul.f32 1.442695, %v3192_v16 }
 0x85d   : > { %3948 = vpow2.f32 %v3212_v14 }
 0x85e   : > { %v3180_v24 = vpop.f32.mrf.mxu2  ;;  %3950 = vpow2.f32 %v3210_v13  ;;  %v3239_v13 = vld [vmem:[%s6764_s10 + $0x8] sm:$0x3] }
 0x85f   : > { %v3181_v45 = vadd.f32 %v3180_v24, %v3099_v17  ;;  %v464_v24 = vld [vmem:[%s6763_s9] sm:$0xff] }
 0x861   : > { %v3193_v8 = vsub.f32 0.0, %v3181_v45 }
 0x863   : > { %v3214_v43 = vmul.f32 1.442695, %v3193_v8  ;;  %v3949_v21 = vpop.eup %3948 }
 0x864   : > { %v3951_v55 = vpop.eup %3950  ;;  %v3225_v9 = vadd.f32 1.0, %v3949_v21 }
 0x865   : > { %3952 = vpow2.f32 %v3214_v43  ;;  %v3224_v33 = vadd.f32 1.0, %v3951_v55 }
 0x866   : > { %3954 = vpow2.f32 %v3208_v60 }
 0x867   : > { %3956 = vpow2.f32 %v3206_v58 }
 0x868   : > { %3958 = vpow2.f32 %v3204_v28 }
 0x869   : > { %3960 = vpow2.f32 %v3202_v0 }
 0x86b   : > { %v3953_v25 = vpop.eup %3952 }
 0x86c   : > { %v3226_v53 = vadd.f32 1.0, %v3953_v25  ;;  %v3955_v35 = vpop.eup %3954 }
 0x86d   : > { %v3957_v46 = vpop.eup %3956  ;;  %v3223_v37 = vadd.f32 1.0, %v3955_v35 }
 0x86e   : > { %3962 = vrcp.f32 %v3226_v53  ;;  %v3959_v5 = vpop.eup %3958  ;;  %v3222_v59 = vadd.f32 1.0, %v3957_v46 }
 0x86f   : > { %3964 = vpow2.f32 %v3200_v44  ;;  %v3961_v61 = vpop.eup %3960  ;;  %v3221_v4 = vadd.f32 1.0, %v3959_v5 }
 0x870   : > { %3966 = vrcp.f32 %v3225_v9  ;;  %v3220_v7 = vadd.f32 1.0, %v3961_v61 }
 0x871   : > { %3968 = vpow2.f32 %v3198_v12 }
 0x872   : > { %3970 = vrcp.f32 %v3224_v33 }
 0x873   : > { %3972 = vpow2.f32 %v3196_v26 }
 0x874   : > { %v3963_v29 = vpop.eup %3962  ;;  %3974 = vrcp.f32 %v3223_v37 }
 0x875   : > { %v3965_v20 = vpop.eup %3964  ;;  %3976 = vpow2.f32 %v3194_v48  ;;  %3359 = vmatpush.msk.msra.mxu0 %vm3247_vm9, %v3963_v29 }
 0x876   : > { %v3967_v50 = vpop.eup %3966  ;;  %3978 = vrcp.f32 %v3222_v59  ;;  %v3219_v52 = vadd.f32 1.0, %v3965_v20 }
 0x877   : > { %v3969_v54 = vpop.eup %3968  ;;  %3257 = vmatpush.msra.mxu0 %v3967_v50  ;;  %3980 = vrcp.f32 %v3221_v4 }
 0x878   : > { %v3971_v22 = vpop.eup %3970  ;;  %v3218_v34 = vadd.f32 1.0, %v3969_v54  ;;  %3982 = vrcp.f32 %v3220_v7 }
 0x879   : > { %v3973_v47 = vpop.eup %3972  ;;  %3258 = vmatpush.msra.mxu0 %v3971_v22  ;;  %3984 = vrcp.f32 %v3219_v52 }
 0x87a   : > { %v3975_v62 = vpop.eup %3974  ;;  %v3217_v1 = vadd.f32 1.0, %v3973_v47  ;;  %3986 = vrcp.f32 %v3218_v34 }
 0x87b   : > { %v3977_v42 = vpop.eup %3976  ;;  %3259 = vmatpush.msra.mxu0 %v3975_v62 }
 0x87c   : > { %v3979_v49 = vpop.eup %3978  ;;  %v3216_v18 = vadd.f32 1.0, %v3977_v42  ;;  %3988 = vrcp.f32 %v3217_v1 }
 0x87d   : > { %3260 = vmatpush.msra.mxu0 %v3979_v49  ;;  %v3981_v16 = vpop.eup %3980 }
 0x87e   : > { %v3983_v10 = vpop.eup %3982  ;;  %3990 = vrcp.f32 %v3216_v18 }
 0x87f   : > { %3261 = vmatpush.msra.mxu0 %v3981_v16  ;;  %v3985_v17 = vpop.eup %3984 }
 0x880   : > { %v3987_v36 = vpop.eup %3986 }
 0x881   : > { %3262 = vmatpush.msra.mxu0 %v3983_v10 }
 0x882   : > { %v3989_v3 = vpop.eup %3988 }
 0x883   : > { %3263 = vmatpush.msra.mxu0 %v3985_v17 }
 0x884   : > { %v3991_v41 = vpop.eup %3990 }
 0x885   : > { %3264 = vmatpush.msra.mxu0 %v3987_v36 }
 0x887   : > { %3265 = vmatpush.msra.mxu0 %v3989_v3 }
 0x889   : > { %3266 = vmatpush.msra.mxu0 %v3991_v41 }
 0x88a   : > { %3360 = vmatmul.msk.f32.vlgmr.msra.gmra.mxu0 %vm3240_vm13, %v464_v24 }
 0x892   : > { %3361 = vmatmul.msk.f32.gmra.mxu0 %vm3240_vm13, %v465_v63 }
 0x907   : > { %v3268_v14 = vpop.f32.mrf.mxu0 }
 0x908   : > { %v3269_v45 = vadd.f32 %v3268_v14, %v3238_v11 }
 0x90a   : > { %3275 = vst.msk [vmem:[%s383_s30] sm:$0xff] %vm3274_vm12, %v3269_v45 }
 0x90f   : > { %v3271_v31 = vpop.f32.mrf.mxu0 }
 0x910   : > { %v3272_v32 = vadd.f32 %v3271_v31, %v3239_v13 }
 0x912   : > { %3277 = vst.msk [vmem:[%s383_s30 + $0x8] sm:$0x3] %vm3276_vm15, %v3272_v32 }
 0x913 PF: > { %s21_s17 = sadd.s32 1, %s3998_s17  }
 0x914   : > { %p18_p4 = scmp.ge.s32.totalorder %s21_s17, 4  }
 0x916   :  { %20 = sbr.rel (!%p18_p4) target bundleno = 1 (0x1), region = 94 }

</bundles_post_ra>
